<compile_context>
chip_gen: v7x
topology: tpu7x:2x2x1
jax: 0.10.0
libtpu: 0.0.40
codegen_flags: <defaults>
</compile_context>

<pallas_src>
import jax
import jax.numpy as jnp
from jax.experimental import pallas as pl
from jax.experimental.pallas import tpu as pltpu

LSTM_SIZE = 128
EMBED_DIM = 128
NUM_LAYERS = 3
SUBLANE = 8          # fp32 sublane count  -> batch padding multiple
LANE = 128           # lane width          -> vocab padding multiple
MAX_TIME_CHUNK = 32  # timesteps processed per grid step in the recurrence


def _round_up(x, m):
    return ((x + m - 1) // m) * m


# ----------------------------------------------------------------------------
# Batched matmul + bias (input projections and FC), grid 'parallel' over M,N
# ----------------------------------------------------------------------------
def _matmul_bias_kernel(x_ref, w_ref, b_ref, o_ref):
    o_ref[...] = (
        jnp.dot(x_ref[...], w_ref[...], preferred_element_type=jnp.float32)
        + b_ref[...]
    )


def matmul_bias(x2d, w, b):
    """(M, K) @ (K, N) + (1, N) -> (M, N).  K is not tiled (K == 128 here)."""
    M, K = x2d.shape
    _, N = w.shape

    tm = min(256, _round_up(M, SUBLANE))
    M_pad = _round_up(M, tm)
    if M_pad != M:
        x2d = jnp.pad(x2d, ((0, M_pad - M), (0, 0)))

    if N % 512 == 0:
        tn = 512
    elif N % 256 == 0:
        tn = 256
    else:
        tn = 128  # N is always a multiple of 128 by construction

    out = pl.pallas_call(
        _matmul_bias_kernel,
        grid=(M_pad // tm, N // tn),
        in_specs=[
            pl.BlockSpec((tm, K), lambda i, j: (i, 0)),
            pl.BlockSpec((K, tn), lambda i, j: (0, j)),
            pl.BlockSpec((1, tn), lambda i, j: (0, j)),
        ],
        out_specs=pl.BlockSpec((tm, tn), lambda i, j: (i, j)),
        out_shape=jax.ShapeDtypeStruct((M_pad, N), jnp.float32),
        compiler_params=pltpu.CompilerParams(
            dimension_semantics=("parallel", "parallel")),
    )(x2d, w, b)
    return out[:M] if M_pad != M else out


# ----------------------------------------------------------------------------
# Recurrent LSTM kernel: gates_x precomputed; per step only h @ W_hh + gates
# ----------------------------------------------------------------------------
def _make_lstm_rec_kernel(tc, t_real, t_pad):
    need_mask = (t_pad != t_real)
    H = LSTM_SIZE

    def kernel(gx_ref, whh_ref, h0_ref, c0_ref, y_ref, h_ref, c_ref):
        @pl.when(pl.program_id(0) == 0)
        def _():
            h_ref[...] = h0_ref[...]
            c_ref[...] = c0_ref[...]

        base_t = pl.program_id(0) * tc
        for i in range(tc):  # static unroll over the time chunk
            h_prev = h_ref[...]
            c_prev = c_ref[...]
            gates = gx_ref[i] + jnp.dot(h_prev, whh_ref[...],
                                        preferred_element_type=jnp.float32)
            i_g = jax.nn.sigmoid(gates[:, 0 * H:1 * H])
            f_g = jax.nn.sigmoid(gates[:, 1 * H:2 * H])
            g_g = jnp.tanh(gates[:, 2 * H:3 * H])
            o_g = jax.nn.sigmoid(gates[:, 3 * H:4 * H])
            c_new = f_g * c_prev + i_g * g_g
            h_new = o_g * jnp.tanh(c_new)
            if need_mask:  # only emitted when T was padded to a chunk multiple
                valid = (base_t + i) < t_real
                h_new = jnp.where(valid, h_new, h_prev)
                c_new = jnp.where(valid, c_new, c_prev)
            h_ref[...] = h_new
            c_ref[...] = c_new
            y_ref[i] = h_new

    return kernel


def lstm_recurrence(gates_x, whh_t, h0, c0, t_real):
    """gates_x: (T, B_pad, 4H) -> (y (T,B_pad,H), h_final, c_final)."""
    _, B_pad, G = gates_x.shape
    H = LSTM_SIZE

    tc = min(t_real, MAX_TIME_CHUNK)
    t_pad = _round_up(t_real, tc)
    if t_pad != gates_x.shape[0]:
        gates_x = jnp.pad(gates_x, ((0, t_pad - gates_x.shape[0]), (0, 0), (0, 0)))

    y, h_f, c_f = pl.pallas_call(
        _make_lstm_rec_kernel(tc, t_real, t_pad),
        grid=(t_pad // tc,),
        in_specs=[
            pl.BlockSpec((tc, B_pad, G), lambda s: (s, 0, 0)),  # gates_x chunk
            pl.BlockSpec((H, G), lambda s: (0, 0)),             # W_hh (resident)
            pl.BlockSpec((B_pad, H), lambda s: (0, 0)),          # h0
            pl.BlockSpec((B_pad, H), lambda s: (0, 0)),          # c0
        ],
        out_specs=(
            pl.BlockSpec((tc, B_pad, H), lambda s: (s, 0, 0)),   # y chunk
            pl.BlockSpec((B_pad, H), lambda s: (0, 0)),          # h carry/final
            pl.BlockSpec((B_pad, H), lambda s: (0, 0)),          # c carry/final
        ),
        out_shape=(
            jax.ShapeDtypeStruct((t_pad, B_pad, H), jnp.float32),
            jax.ShapeDtypeStruct((B_pad, H), jnp.float32),
            jax.ShapeDtypeStruct((B_pad, H), jnp.float32),
        ),
        compiler_params=pltpu.CompilerParams(
            dimension_semantics=("arbitrary",)),  # recurrence: must be serial
    )(gates_x, whh_t, h0, c0)
    return y[:t_real], h_f, c_f


# ----------------------------------------------------------------------------
# Model forward (embedding -> 3-layer LSTM -> Linear)
# ----------------------------------------------------------------------------
def model_forward(params, tokens, prev_state):
    """tokens: (T, B) int32 ; prev_state: ((L,B,H), (L,B,H)) -> (logits, state)."""
    h0, c0 = prev_state
    T, B = tokens.shape
    H = LSTM_SIZE
    B_pad = _round_up(B, SUBLANE)

    # Embedding gather (glue, plain JAX), then pad batch to sublane multiple.
    x = jnp.take(params["embedding"], tokens, axis=0)            # (T, B, E)
    if B_pad != B:
        x = jnp.pad(x, ((0, 0), (0, B_pad - B), (0, 0)))
        h0 = jnp.pad(h0, ((0, 0), (0, B_pad - B), (0, 0)))
        c0 = jnp.pad(c0, ((0, 0), (0, B_pad - B), (0, 0)))

    h_finals, c_finals = [], []
    for layer in range(NUM_LAYERS):
        d_in = x.shape[-1]
        # Hoisted input projection: one big MXU matmul (bias folded in).
        gates_x = matmul_bias(x.reshape(T * B_pad, d_in),
                              params["wih_t"][layer], params["bias"][layer])
        gates_x = gates_x.reshape(T, B_pad, 4 * H)
        # Serial recurrence: only h @ W_hh per step.
        x, h_f, c_f = lstm_recurrence(gates_x, params["whh_t"][layer],
                                      h0[layer], c0[layer], T)
        h_finals.append(h_f)
        c_finals.append(c_f)
        # TODO(synk): inter-layer dropout (p=0.2) would be applied here in
        #             training mode.

    # Batched FC over the whole sequence (near-peak MXU, lane-dense stores).
    logits2d = matmul_bias(x.reshape(T * B_pad, H),
                           params["fc_w_t"], params["fc_b"])
    V = params["n_vocab"]
    logits = logits2d.reshape(T, B_pad, -1)[:, :B, :V]

    state = (jnp.stack(h_finals, axis=0)[:, :B, :],
             jnp.stack(c_finals, axis=0)[:, :B, :])
    return logits, state


# ----------------------------------------------------------------------------
# Deterministic parameter init (shapes follow nn.Embedding / nn.LSTM / nn.Linear)
# ----------------------------------------------------------------------------
def init_params(key, n_vocab):
    keys = jax.random.split(key, 1 + 4 * NUM_LAYERS + 2)
    k = iter(keys)
    scale = 1.0 / jnp.sqrt(LSTM_SIZE)
    v_pad = max(LANE, _round_up(n_vocab, LANE))

    params = {"n_vocab": n_vocab}
    params["embedding"] = jax.random.normal(next(k), (n_vocab, EMBED_DIM),
                                            dtype=jnp.float32)

    wih_t, whh_t, bias = [], [], []
    for layer in range(NUM_LAYERS):
        d_in = EMBED_DIM if layer == 0 else LSTM_SIZE
        # Stored pre-transposed: W_ih^T (d_in, 4H), W_hh^T (H, 4H).
        wih_t.append(jax.random.uniform(next(k), (d_in, 4 * LSTM_SIZE),
                                        minval=-scale, maxval=scale,
                                        dtype=jnp.float32))
        whh_t.append(jax.random.uniform(next(k), (LSTM_SIZE, 4 * LSTM_SIZE),
                                        minval=-scale, maxval=scale,
                                        dtype=jnp.float32))
        b_ih = jax.random.uniform(next(k), (4 * LSTM_SIZE,),
                                  minval=-scale, maxval=scale, dtype=jnp.float32)
        b_hh = jax.random.uniform(next(k), (4 * LSTM_SIZE,),
                                  minval=-scale, maxval=scale, dtype=jnp.float32)
        bias.append((b_ih + b_hh).reshape(1, 4 * LSTM_SIZE))
    params["wih_t"] = wih_t
    params["whh_t"] = whh_t
    params["bias"] = bias

    fc_w_t = jax.random.uniform(next(k), (LSTM_SIZE, n_vocab),
                                minval=-scale, maxval=scale, dtype=jnp.float32)
    fc_b = jax.random.uniform(next(k), (1, n_vocab),
                              minval=-scale, maxval=scale, dtype=jnp.float32)
    # Pad the vocab (N) dimension to a lane multiple for unmasked stores.
    params["fc_w_t"] = jnp.pad(fc_w_t, ((0, 0), (0, v_pad - n_vocab)))
    params["fc_b"] = jnp.pad(fc_b, ((0, 0), (0, v_pad - n_vocab)))
    return params


def init_state(batch):
    # Mirrors Model.init_state (zeros for h and c).
    return (jnp.zeros((NUM_LAYERS, batch, LSTM_SIZE), jnp.float32),
            jnp.zeros((NUM_LAYERS, batch, LSTM_SIZE), jnp.float32))


# ----------------------------------------------------------------------------
if __name__ == "__main__":
    SEQ_LEN = 8
    BATCH = 2
    N_VOCAB = 50

    key = jax.random.PRNGKey(0)
    k_params, k_tokens = jax.random.split(key)

    params = init_params(k_params, N_VOCAB)
    tokens = jax.random.randint(k_tokens, (SEQ_LEN, BATCH), 0, N_VOCAB,
                                dtype=jnp.int32)
    state0 = init_state(BATCH)

    fwd = jax.jit(lambda tok, st: model_forward(params, tok, st))
    logits, (h_n, c_n) = fwd(tokens, state0)
    jax.block_until_ready((logits, h_n, c_n))

    assert logits.shape == (SEQ_LEN, BATCH, N_VOCAB)
    assert h_n.shape == (NUM_LAYERS, BATCH, LSTM_SIZE)
    assert c_n.shape == (NUM_LAYERS, BATCH, LSTM_SIZE)
    assert bool(jnp.all(jnp.isfinite(logits)))
    assert bool(jnp.all(jnp.isfinite(h_n))) and bool(jnp.all(jnp.isfinite(c_n)))

    print("KERNEL_OK")
</pallas_src>

<mosaic_0001>
module attributes {stable_mosaic.version = 11 : i64} {
  func.func @_matmul_bias_kernel(%arg0: i32, %arg1: i32, %arg2: memref<64x128xf32, #tpu.memory_space<vmem>>, %arg3: memref<128x512xf32, #tpu.memory_space<vmem>>, %arg4: memref<1x512xf32, #tpu.memory_space<vmem>>, %arg5: memref<64x512xf32, #tpu.memory_space<vmem>>) attributes {dimension_semantics = [#tpu.dimension_semantics<parallel>, #tpu.dimension_semantics<parallel>], iteration_bounds = array<i64: 1, 1>, scalar_prefetch = 0 : i64, scratch_operands = 0 : i64, tpu.core_type = #tpu.core_type<tc>, window_params = [{transform_indices = @transform_0, window_bounds = array<i64: 64, 128>}, {transform_indices = @transform_1, window_bounds = array<i64: 128, 512>}, {transform_indices = @transform_2, window_bounds = array<i64: 1, 512>}, {transform_indices = @transform_3, window_bounds = array<i64: 64, 512>}]} {
    %c0 = arith.constant 0 : index
    %c0_0 = arith.constant 0 : index
    %0 = vector.load %arg2[%c0, %c0_0] : memref<64x128xf32, #tpu.memory_space<vmem>>, vector<64x128xf32>
    %c0_1 = arith.constant 0 : index
    %c0_2 = arith.constant 0 : index
    %1 = vector.load %arg3[%c0_1, %c0_2] : memref<128x512xf32, #tpu.memory_space<vmem>>, vector<128x512xf32>
    %cst = arith.constant dense<0.000000e+00> : vector<64x512xf32>
    %2 = tpu.matmul %0, %1, %cst {dimension_numbers = #tpu.dot_dimension_numbers<[1], [0], [0], [1], [0, 0, 1, 1], [], []>} : vector<64x128xf32>, vector<128x512xf32>, vector<64x512xf32> -> vector<64x512xf32>
    %c0_3 = arith.constant 0 : index
    %c0_4 = arith.constant 0 : index
    %3 = vector.load %arg4[%c0_3, %c0_4] : memref<1x512xf32, #tpu.memory_space<vmem>>, vector<1x512xf32>
    %4 = vector.broadcast %3 : vector<1x512xf32> to vector<64x512xf32>
    %5 = arith.addf %2, %4 : vector<64x512xf32>
    %c0_5 = arith.constant 0 : index
    %c0_6 = arith.constant 0 : index
    %6 = vector.load %arg5[%c0_5, %c0_6] : memref<64x512xf32, #tpu.memory_space<vmem>>, vector<64x512xf32>
    tpu.vector_store %arg5[%c0_5, %c0_6], %5 {strides = array<i32>} : memref<64x512xf32, #tpu.memory_space<vmem>>, vector<64x512xf32>,
    return
  }
  func.func @transform_0(%arg0: i32, %arg1: i32) -> (i32, i32) {
    %c0_i32 = arith.constant 0 : i32
    %c0_i32_0 = arith.constant 0 : i32
    return %arg0, %c0_i32 : i32, i32
  }
  func.func @transform_1(%arg0: i32, %arg1: i32) -> (i32, i32) {
    %c0_i32 = arith.constant 0 : i32
    %c0_i32_0 = arith.constant 0 : i32
    return %c0_i32, %arg1 : i32, i32
  }
  func.func @transform_2(%arg0: i32, %arg1: i32) -> (i32, i32) {
    %c0_i32 = arith.constant 0 : i32
    %c0_i32_0 = arith.constant 0 : i32
    return %c0_i32, %arg1 : i32, i32
  }
  func.func @transform_3(%arg0: i32, %arg1: i32) -> (i32, i32) {
    %c0_i32 = arith.constant 0 : i32
    return %arg0, %arg1 : i32, i32
  }
}

module attributes {stable_mosaic.version = 11 : i64} {
  func.func @_matmul_bias_kernel(%arg0: i32, %arg1: i32, %arg2: memref<64x128xf32, #tpu.memory_space<vmem>>, %arg3: memref<128x512xf32, #tpu.memory_space<vmem>>, %arg4: memref<1x512xf32, #tpu.memory_space<vmem>>, %arg5: memref<64x512xf32, #tpu.memory_space<vmem>>) attributes {dimension_semantics = [#tpu.dimension_semantics<parallel>, #tpu.dimension_semantics<parallel>], iteration_bounds = array<i64: 1, 1>, scalar_prefetch = 0 : i64, scratch_operands = 0 : i64, tpu.core_type = #tpu.core_type<tc>, window_params = [{transform_indices = @transform_0, window_bounds = array<i64: 64, 128>}, {transform_indices = @transform_1, window_bounds = array<i64: 128, 512>}, {transform_indices = @transform_2, window_bounds = array<i64: 1, 512>}, {transform_indices = @transform_3, window_bounds = array<i64: 64, 512>}]} {
    %c0 = arith.constant 0 : index
    %c0_0 = arith.constant 0 : index
    %0 = vector.load %arg2[%c0, %c0_0] : memref<64x128xf32, #tpu.memory_space<vmem>>, vector<64x128xf32>
    %c0_1 = arith.constant 0 : index
    %c0_2 = arith.constant 0 : index
    %1 = vector.load %arg3[%c0_1, %c0_2] : memref<128x512xf32, #tpu.memory_space<vmem>>, vector<128x512xf32>
    %cst = arith.constant dense<0.000000e+00> : vector<64x512xf32>
    %2 = tpu.matmul %0, %1, %cst {dimension_numbers = #tpu.dot_dimension_numbers<[1], [0], [0], [1], [0, 0, 1, 1], [], []>} : vector<64x128xf32>, vector<128x512xf32>, vector<64x512xf32> -> vector<64x512xf32>
    %c0_3 = arith.constant 0 : index
    %c0_4 = arith.constant 0 : index
    %3 = vector.load %arg4[%c0_3, %c0_4] : memref<1x512xf32, #tpu.memory_space<vmem>>, vector<1x512xf32>
    %4 = vector.broadcast %3 : vector<1x512xf32> to vector<64x512xf32>
    %5 = arith.addf %2, %4 : vector<64x512xf32>
    %c0_5 = arith.constant 0 : index
    %c0_6 = arith.constant 0 : index
    %6 = vector.load %arg5[%c0_5, %c0_6] : memref<64x512xf32, #tpu.memory_space<vmem>>, vector<64x512xf32>
    tpu.vector_store %arg5[%c0_5, %c0_6], %5 {strides = array<i32>} : memref<64x512xf32, #tpu.memory_space<vmem>>, vector<64x512xf32>,
    return
  }
  func.func @transform_0(%arg0: i32, %arg1: i32) -> (i32, i32) {
    %c0_i32 = arith.constant 0 : i32
    %c0_i32_0 = arith.constant 0 : i32
    return %arg0, %c0_i32 : i32, i32
  }
  func.func @transform_1(%arg0: i32, %arg1: i32) -> (i32, i32) {
    %c0_i32 = arith.constant 0 : i32
    %c0_i32_0 = arith.constant 0 : i32
    return %c0_i32, %arg1 : i32, i32
  }
  func.func @transform_2(%arg0: i32, %arg1: i32) -> (i32, i32) {
    %c0_i32 = arith.constant 0 : i32
    %c0_i32_0 = arith.constant 0 : i32
    return %c0_i32, %arg1 : i32, i32
  }
  func.func @transform_3(%arg0: i32, %arg1: i32) -> (i32, i32) {
    %c0_i32 = arith.constant 0 : i32
    return %arg0, %arg1 : i32, i32
  }
}

module attributes {stable_mosaic.version = 11 : i64} {
  func.func @_matmul_bias_kernel(%arg0: i32, %arg1: i32, %arg2: memref<64x128xf32, #tpu.memory_space<vmem>>, %arg3: memref<128x128xf32, #tpu.memory_space<vmem>>, %arg4: memref<1x128xf32, #tpu.memory_space<vmem>>, %arg5: memref<64x128xf32, #tpu.memory_space<vmem>>) attributes {dimension_semantics = [#tpu.dimension_semantics<parallel>, #tpu.dimension_semantics<parallel>], iteration_bounds = array<i64: 1, 1>, scalar_prefetch = 0 : i64, scratch_operands = 0 : i64, tpu.core_type = #tpu.core_type<tc>, window_params = [{transform_indices = @transform_0, window_bounds = array<i64: 64, 128>}, {transform_indices = @transform_1, window_bounds = array<i64: 128, 128>}, {transform_indices = @transform_2, window_bounds = array<i64: 1, 128>}, {transform_indices = @transform_3, window_bounds = array<i64: 64, 128>}]} {
    %c0 = arith.constant 0 : index
    %c0_0 = arith.constant 0 : index
    %0 = vector.load %arg2[%c0, %c0_0] : memref<64x128xf32, #tpu.memory_space<vmem>>, vector<64x128xf32>
    %c0_1 = arith.constant 0 : index
    %c0_2 = arith.constant 0 : index
    %1 = vector.load %arg3[%c0_1, %c0_2] : memref<128x128xf32, #tpu.memory_space<vmem>>, vector<128x128xf32>
    %cst = arith.constant dense<0.000000e+00> : vector<64x128xf32>
    %2 = tpu.matmul %0, %1, %cst {dimension_numbers = #tpu.dot_dimension_numbers<[1], [0], [0], [1], [0, 0, 1, 1], [], []>} : vector<64x128xf32>, vector<128x128xf32>, vector<64x128xf32> -> vector<64x128xf32>
    %c0_3 = arith.constant 0 : index
    %c0_4 = arith.constant 0 : index
    %3 = vector.load %arg4[%c0_3, %c0_4] : memref<1x128xf32, #tpu.memory_space<vmem>>, vector<1x128xf32>
    %4 = vector.broadcast %3 : vector<1x128xf32> to vector<64x128xf32>
    %5 = arith.addf %2, %4 : vector<64x128xf32>
    %c0_5 = arith.constant 0 : index
    %c0_6 = arith.constant 0 : index
    %6 = vector.load %arg5[%c0_5, %c0_6] : memref<64x128xf32, #tpu.memory_space<vmem>>, vector<64x128xf32>
    tpu.vector_store %arg5[%c0_5, %c0_6], %5 {strides = array<i32>} : memref<64x128xf32, #tpu.memory_space<vmem>>, vector<64x128xf32>,
    return
  }
  func.func @transform_0(%arg0: i32, %arg1: i32) -> (i32, i32) {
    %c0_i32 = arith.constant 0 : i32
    %c0_i32_0 = arith.constant 0 : i32
    return %arg0, %c0_i32 : i32, i32
  }
  func.func @transform_1(%arg0: i32, %arg1: i32) -> (i32, i32) {
    %c0_i32 = arith.constant 0 : i32
    %c0_i32_0 = arith.constant 0 : i32
    return %c0_i32, %arg1 : i32, i32
  }
  func.func @transform_2(%arg0: i32, %arg1: i32) -> (i32, i32) {
    %c0_i32 = arith.constant 0 : i32
    %c0_i32_0 = arith.constant 0 : i32
    return %c0_i32, %arg1 : i32, i32
  }
  func.func @transform_3(%arg0: i32, %arg1: i32) -> (i32, i32) {
    %c0_i32 = arith.constant 0 : i32
    return %arg0, %arg1 : i32, i32
  }
}

module attributes {stable_mosaic.version = 11 : i64} {
  func.func @kernel(%arg0: i32, %arg1: memref<8x8x512xf32, #tpu.memory_space<vmem>>, %arg2: memref<128x512xf32, #tpu.memory_space<vmem>>, %arg3: memref<8x128xf32, #tpu.memory_space<vmem>>, %arg4: memref<8x128xf32, #tpu.memory_space<vmem>>, %arg5: memref<8x8x128xf32, #tpu.memory_space<vmem>>, %arg6: memref<8x128xf32, #tpu.memory_space<vmem>>, %arg7: memref<8x128xf32, #tpu.memory_space<vmem>>) attributes {dimension_semantics = [#tpu.dimension_semantics<arbitrary>], iteration_bounds = array<i64: 1>, scalar_prefetch = 0 : i64, scratch_operands = 0 : i64, tpu.core_type = #tpu.core_type<tc>, window_params = [{transform_indices = @transform_0, window_bounds = array<i64: 8, 8, 512>}, {pipeline_mode = #tpu.pipeline_mode<synchronous>, transform_indices = @transform_1, window_bounds = array<i64: 128, 512>}, {pipeline_mode = #tpu.pipeline_mode<synchronous>, transform_indices = @transform_2, window_bounds = array<i64: 8, 128>}, {pipeline_mode = #tpu.pipeline_mode<synchronous>, transform_indices = @transform_3, window_bounds = array<i64: 8, 128>}, {transform_indices = @transform_4, window_bounds = array<i64: 8, 8, 128>}, {pipeline_mode = #tpu.pipeline_mode<synchronous>, transform_indices = @transform_5, window_bounds = array<i64: 8, 128>}, {pipeline_mode = #tpu.pipeline_mode<synchronous>, transform_indices = @transform_6, window_bounds = array<i64: 8, 128>}]} {
    %c0_i32 = arith.constant 0 : i32
    %0 = arith.cmpi eq, %arg0, %c0_i32 : i32
    %1 = arith.extui %0 : i1 to i32
    %c0_i32_0 = arith.constant 0 : i32
    %2 = arith.cmpi ne, %1, %c0_i32_0 : i32
    scf.if %2 {
      %c0_152 = arith.constant 0 : index
      %c0_153 = arith.constant 0 : index
      %299 = vector.load %arg3[%c0_152, %c0_153] : memref<8x128xf32, #tpu.memory_space<vmem>>, vector<8x128xf32>
      %c0_154 = arith.constant 0 : index
      %c0_155 = arith.constant 0 : index
      %300 = vector.load %arg6[%c0_154, %c0_155] : memref<8x128xf32, #tpu.memory_space<vmem>>, vector<8x128xf32>
      tpu.vector_store %arg6[%c0_154, %c0_155], %299 {strides = array<i32>} : memref<8x128xf32, #tpu.memory_space<vmem>>, vector<8x128xf32>,
      %c0_156 = arith.constant 0 : index
      %c0_157 = arith.constant 0 : index
      %301 = vector.load %arg4[%c0_156, %c0_157] : memref<8x128xf32, #tpu.memory_space<vmem>>, vector<8x128xf32>
      %c0_158 = arith.constant 0 : index
      %c0_159 = arith.constant 0 : index
      %302 = vector.load %arg7[%c0_158, %c0_159] : memref<8x128xf32, #tpu.memory_space<vmem>>, vector<8x128xf32>
      tpu.vector_store %arg7[%c0_158, %c0_159], %301 {strides = array<i32>} : memref<8x128xf32, #tpu.memory_space<vmem>>, vector<8x128xf32>,
    } else {
    }
    %c0 = arith.constant 0 : index
    %c0_1 = arith.constant 0 : index
    %3 = vector.load %arg6[%c0, %c0_1] : memref<8x128xf32, #tpu.memory_space<vmem>>, vector<8x128xf32>
    %c0_2 = arith.constant 0 : index
    %c0_3 = arith.constant 0 : index
    %4 = vector.load %arg7[%c0_2, %c0_3] : memref<8x128xf32, #tpu.memory_space<vmem>>, vector<8x128xf32>
    %c0_4 = arith.constant 0 : index
    %c0_5 = arith.constant 0 : index
    %c0_6 = arith.constant 0 : index
    %5 = vector.load %arg1[%c0_4, %c0_5, %c0_6] : memref<8x8x512xf32, #tpu.memory_space<vmem>>, vector<1x8x512xf32>
    %6 = vector.shape_cast %5 : vector<1x8x512xf32> to vector<8x512xf32>
    %c0_7 = arith.constant 0 : index
    %c0_8 = arith.constant 0 : index
    %7 = vector.load %arg2[%c0_7, %c0_8] : memref<128x512xf32, #tpu.memory_space<vmem>>, vector<128x512xf32>
    %cst = arith.constant dense<0.000000e+00> : vector<8x512xf32>
    %8 = tpu.matmul %3, %7, %cst {dimension_numbers = #tpu.dot_dimension_numbers<[1], [0], [0], [1], [0, 0, 1, 1], [], []>} : vector<8x128xf32>, vector<128x512xf32>, vector<8x512xf32> -> vector<8x512xf32>
    %9 = arith.addf %6, %8 : vector<8x512xf32>
    %10 = vector.extract_strided_slice %9 {offsets = [0, 0], sizes = [8, 128], strides = [1, 1]} : vector<8x512xf32> to vector<8x128xf32>
    %11 = arith.negf %10 : vector<8x128xf32>
    %12 = math.exp %11 : vector<8x128xf32>
    %cst_9 = arith.constant 1.000000e+00 : f32
    %13 = vector.broadcast %cst_9 : f32 to vector<8x128xf32>
    %14 = arith.addf %13, %12 : vector<8x128xf32>
    %15 = arith.divf %13, %14 : vector<8x128xf32>
    %16 = vector.extract_strided_slice %9 {offsets = [0, 128], sizes = [8, 128], strides = [1, 1]} : vector<8x512xf32> to vector<8x128xf32>
    %17 = arith.negf %16 : vector<8x128xf32>
    %18 = math.exp %17 : vector<8x128xf32>
    %cst_10 = arith.constant 1.000000e+00 : f32
    %19 = vector.broadcast %cst_10 : f32 to vector<8x128xf32>
    %20 = arith.addf %19, %18 : vector<8x128xf32>
    %21 = arith.divf %19, %20 : vector<8x128xf32>
    %22 = vector.extract_strided_slice %9 {offsets = [0, 256], sizes = [8, 128], strides = [1, 1]} : vector<8x512xf32> to vector<8x128xf32>
    %23 = math.tanh %22 : vector<8x128xf32>
    %24 = vector.extract_strided_slice %9 {offsets = [0, 384], sizes = [8, 128], strides = [1, 1]} : vector<8x512xf32> to vector<8x128xf32>
    %25 = arith.negf %24 : vector<8x128xf32>
    %26 = math.exp %25 : vector<8x128xf32>
    %cst_11 = arith.constant 1.000000e+00 : f32
    %27 = vector.broadcast %cst_11 : f32 to vector<8x128xf32>
    %28 = arith.addf %27, %26 : vector<8x128xf32>
    %29 = arith.divf %27, %28 : vector<8x128xf32>
    %30 = arith.mulf %21, %4 : vector<8x128xf32>
    %31 = arith.mulf %15, %23 : vector<8x128xf32>
    %32 = arith.addf %30, %31 : vector<8x128xf32>
    %33 = math.tanh %32 : vector<8x128xf32>
    %34 = arith.mulf %29, %33 : vector<8x128xf32>
    %c0_12 = arith.constant 0 : index
    %c0_13 = arith.constant 0 : index
    %35 = vector.load %arg6[%c0_12, %c0_13] : memref<8x128xf32, #tpu.memory_space<vmem>>, vector<8x128xf32>
    tpu.vector_store %arg6[%c0_12, %c0_13], %34 {strides = array<i32>} : memref<8x128xf32, #tpu.memory_space<vmem>>, vector<8x128xf32>,
    %c0_14 = arith.constant 0 : index
    %c0_15 = arith.constant 0 : index
    %36 = vector.load %arg7[%c0_14, %c0_15] : memref<8x128xf32, #tpu.memory_space<vmem>>, vector<8x128xf32>
    tpu.vector_store %arg7[%c0_14, %c0_15], %32 {strides = array<i32>} : memref<8x128xf32, #tpu.memory_space<vmem>>, vector<8x128xf32>,
    %c0_16 = arith.constant 0 : index
    %c0_17 = arith.constant 0 : index
    %c0_18 = arith.constant 0 : index
    %37 = vector.load %arg5[%c0_16, %c0_17, %c0_18] : memref<8x8x128xf32, #tpu.memory_space<vmem>>, vector<1x8x128xf32>
    %38 = vector.shape_cast %37 : vector<1x8x128xf32> to vector<8x128xf32>
    %39 = vector.shape_cast %34 : vector<8x128xf32> to vector<1x8x128xf32>
    tpu.vector_store %arg5[%c0_16, %c0_17, %c0_18], %39 {strides = array<i32>} : memref<8x8x128xf32, #tpu.memory_space<vmem>>, vector<1x8x128xf32>,
    %c0_19 = arith.constant 0 : index
    %c0_20 = arith.constant 0 : index
    %40 = vector.load %arg6[%c0_19, %c0_20] : memref<8x128xf32, #tpu.memory_space<vmem>>, vector<8x128xf32>
    %c0_21 = arith.constant 0 : index
    %c0_22 = arith.constant 0 : index
    %41 = vector.load %arg7[%c0_21, %c0_22] : memref<8x128xf32, #tpu.memory_space<vmem>>, vector<8x128xf32>
    %c1 = arith.constant 1 : index
    %c0_23 = arith.constant 0 : index
    %c0_24 = arith.constant 0 : index
    %42 = vector.load %arg1[%c1, %c0_23, %c0_24] : memref<8x8x512xf32, #tpu.memory_space<vmem>>, vector<1x8x512xf32>
    %43 = vector.shape_cast %42 : vector<1x8x512xf32> to vector<8x512xf32>
    %c0_25 = arith.constant 0 : index
    %c0_26 = arith.constant 0 : index
    %44 = vector.load %arg2[%c0_25, %c0_26] : memref<128x512xf32, #tpu.memory_space<vmem>>, vector<128x512xf32>
    %cst_27 = arith.constant dense<0.000000e+00> : vector<8x512xf32>
    %45 = tpu.matmul %40, %44, %cst_27 {dimension_numbers = #tpu.dot_dimension_numbers<[1], [0], [0], [1], [0, 0, 1, 1], [], []>} : vector<8x128xf32>, vector<128x512xf32>, vector<8x512xf32> -> vector<8x512xf32>
    %46 = arith.addf %43, %45 : vector<8x512xf32>
    %47 = vector.extract_strided_slice %46 {offsets = [0, 0], sizes = [8, 128], strides = [1, 1]} : vector<8x512xf32> to vector<8x128xf32>
    %48 = arith.negf %47 : vector<8x128xf32>
    %49 = math.exp %48 : vector<8x128xf32>
    %cst_28 = arith.constant 1.000000e+00 : f32
    %50 = vector.broadcast %cst_28 : f32 to vector<8x128xf32>
    %51 = arith.addf %50, %49 : vector<8x128xf32>
    %52 = arith.divf %50, %51 : vector<8x128xf32>
    %53 = vector.extract_strided_slice %46 {offsets = [0, 128], sizes = [8, 128], strides = [1, 1]} : vector<8x512xf32> to vector<8x128xf32>
    %54 = arith.negf %53 : vector<8x128xf32>
    %55 = math.exp %54 : vector<8x128xf32>
    %cst_29 = arith.constant 1.000000e+00 : f32
    %56 = vector.broadcast %cst_29 : f32 to vector<8x128xf32>
    %57 = arith.addf %56, %55 : vector<8x128xf32>
    %58 = arith.divf %56, %57 : vector<8x128xf32>
    %59 = vector.extract_strided_slice %46 {offsets = [0, 256], sizes = [8, 128], strides = [1, 1]} : vector<8x512xf32> to vector<8x128xf32>
    %60 = math.tanh %59 : vector<8x128xf32>
    %61 = vector.extract_strided_slice %46 {offsets = [0, 384], sizes = [8, 128], strides = [1, 1]} : vector<8x512xf32> to vector<8x128xf32>
    %62 = arith.negf %61 : vector<8x128xf32>
    %63 = math.exp %62 : vector<8x128xf32>
    %cst_30 = arith.constant 1.000000e+00 : f32
    %64 = vector.broadcast %cst_30 : f32 to vector<8x128xf32>
    %65 = arith.addf %64, %63 : vector<8x128xf32>
    %66 = arith.divf %64, %65 : vector<8x128xf32>
    %67 = arith.mulf %58, %41 : vector<8x128xf32>
    %68 = arith.mulf %52, %60 : vector<8x128xf32>
    %69 = arith.addf %67, %68 : vector<8x128xf32>
    %70 = math.tanh %69 : vector<8x128xf32>
    %71 = arith.mulf %66, %70 : vector<8x128xf32>
    %c0_31 = arith.constant 0 : index
    %c0_32 = arith.constant 0 : index
    %72 = vector.load %arg6[%c0_31, %c0_32] : memref<8x128xf32, #tpu.memory_space<vmem>>, vector<8x128xf32>
    tpu.vector_store %arg6[%c0_31, %c0_32], %71 {strides = array<i32>} : memref<8x128xf32, #tpu.memory_space<vmem>>, vector<8x128xf32>,
    %c0_33 = arith.constant 0 : index
    %c0_34 = arith.constant 0 : index
    %73 = vector.load %arg7[%c0_33, %c0_34] : memref<8x128xf32, #tpu.memory_space<vmem>>, vector<8x128xf32>
    tpu.vector_store %arg7[%c0_33, %c0_34], %69 {strides = array<i32>} : memref<8x128xf32, #tpu.memory_space<vmem>>, vector<8x128xf32>,
    %c1_35 = arith.constant 1 : index
    %c0_36 = arith.constant 0 : index
    %c0_37 = arith.constant 0 : index
    %74 = vector.load %arg5[%c1_35, %c0_36, %c0_37] : memref<8x8x128xf32, #tpu.memory_space<vmem>>, vector<1x8x128xf32>
    %75 = vector.shape_cast %74 : vector<1x8x128xf32> to vector<8x128xf32>
    %76 = vector.shape_cast %71 : vector<8x128xf32> to vector<1x8x128xf32>
    tpu.vector_store %arg5[%c1_35, %c0_36, %c0_37], %76 {strides = array<i32>} : memref<8x8x128xf32, #tpu.memory_space<vmem>>, vector<1x8x128xf32>,
    %c0_38 = arith.constant 0 : index
    %c0_39 = arith.constant 0 : index
    %77 = vector.load %arg6[%c0_38, %c0_39] : memref<8x128xf32, #tpu.memory_space<vmem>>, vector<8x128xf32>
    %c0_40 = arith.constant 0 : index
    %c0_41 = arith.constant 0 : index
    %78 = vector.load %arg7[%c0_40, %c0_41] : memref<8x128xf32, #tpu.memory_space<vmem>>, vector<8x128xf32>
    %c2 = arith.constant 2 : index
    %c0_42 = arith.constant 0 : index
    %c0_43 = arith.constant 0 : index
    %79 = vector.load %arg1[%c2, %c0_42, %c0_43] : memref<8x8x512xf32, #tpu.memory_space<vmem>>, vector<1x8x512xf32>
    %80 = vector.shape_cast %79 : vector<1x8x512xf32> to vector<8x512xf32>
    %c0_44 = arith.constant 0 : index
    %c0_45 = arith.constant 0 : index
    %81 = vector.load %arg2[%c0_44, %c0_45] : memref<128x512xf32, #tpu.memory_space<vmem>>, vector<128x512xf32>
    %cst_46 = arith.constant dense<0.000000e+00> : vector<8x512xf32>
    %82 = tpu.matmul %77, %81, %cst_46 {dimension_numbers = #tpu.dot_dimension_numbers<[1], [0], [0], [1], [0, 0, 1, 1], [], []>} : vector<8x128xf32>, vector<128x512xf32>, vector<8x512xf32> -> vector<8x512xf32>
    %83 = arith.addf %80, %82 : vector<8x512xf32>
    %84 = vector.extract_strided_slice %83 {offsets = [0, 0], sizes = [8, 128], strides = [1, 1]} : vector<8x512xf32> to vector<8x128xf32>
    %85 = arith.negf %84 : vector<8x128xf32>
    %86 = math.exp %85 : vector<8x128xf32>
    %cst_47 = arith.constant 1.000000e+00 : f32
    %87 = vector.broadcast %cst_47 : f32 to vector<8x128xf32>
    %88 = arith.addf %87, %86 : vector<8x128xf32>
    %89 = arith.divf %87, %88 : vector<8x128xf32>
    %90 = vector.extract_strided_slice %83 {offsets = [0, 128], sizes = [8, 128], strides = [1, 1]} : vector<8x512xf32> to vector<8x128xf32>
    %91 = arith.negf %90 : vector<8x128xf32>
    %92 = math.exp %91 : vector<8x128xf32>
    %cst_48 = arith.constant 1.000000e+00 : f32
    %93 = vector.broadcast %cst_48 : f32 to vector<8x128xf32>
    %94 = arith.addf %93, %92 : vector<8x128xf32>
    %95 = arith.divf %93, %94 : vector<8x128xf32>
    %96 = vector.extract_strided_slice %83 {offsets = [0, 256], sizes = [8, 128], strides = [1, 1]} : vector<8x512xf32> to vector<8x128xf32>
    %97 = math.tanh %96 : vector<8x128xf32>
    %98 = vector.extract_strided_slice %83 {offsets = [0, 384], sizes = [8, 128], strides = [1, 1]} : vector<8x512xf32> to vector<8x128xf32>
    %99 = arith.negf %98 : vector<8x128xf32>
    %100 = math.exp %99 : vector<8x128xf32>
    %cst_49 = arith.constant 1.000000e+00 : f32
    %101 = vector.broadcast %cst_49 : f32 to vector<8x128xf32>
    %102 = arith.addf %101, %100 : vector<8x128xf32>
    %103 = arith.divf %101, %102 : vector<8x128xf32>
    %104 = arith.mulf %95, %78 : vector<8x128xf32>
    %105 = arith.mulf %89, %97 : vector<8x128xf32>
    %106 = arith.addf %104, %105 : vector<8x128xf32>
    %107 = math.tanh %106 : vector<8x128xf32>
    %108 = arith.mulf %103, %107 : vector<8x128xf32>
    %c0_50 = arith.constant 0 : index
    %c0_51 = arith.constant 0 : index
    %109 = vector.load %arg6[%c0_50, %c0_51] : memref<8x128xf32, #tpu.memory_space<vmem>>, vector<8x128xf32>
    tpu.vector_store %arg6[%c0_50, %c0_51], %108 {strides = array<i32>} : memref<8x128xf32, #tpu.memory_space<vmem>>, vector<8x128xf32>,
    %c0_52 = arith.constant 0 : index
    %c0_53 = arith.constant 0 : index
    %110 = vector.load %arg7[%c0_52, %c0_53] : memref<8x128xf32, #tpu.memory_space<vmem>>, vector<8x128xf32>
    tpu.vector_store %arg7[%c0_52, %c0_53], %106 {strides = array<i32>} : memref<8x128xf32, #tpu.memory_space<vmem>>, vector<8x128xf32>,
    %c2_54 = arith.constant 2 : index
    %c0_55 = arith.constant 0 : index
    %c0_56 = arith.constant 0 : index
    %111 = vector.load %arg5[%c2_54, %c0_55, %c0_56] : memref<8x8x128xf32, #tpu.memory_space<vmem>>, vector<1x8x128xf32>
    %112 = vector.shape_cast %111 : vector<1x8x128xf32> to vector<8x128xf32>
    %113 = vector.shape_cast %108 : vector<8x128xf32> to vector<1x8x128xf32>
    tpu.vector_store %arg5[%c2_54, %c0_55, %c0_56], %113 {strides = array<i32>} : memref<8x8x128xf32, #tpu.memory_space<vmem>>, vector<1x8x128xf32>,
    %c0_57 = arith.constant 0 : index
    %c0_58 = arith.constant 0 : index
    %114 = vector.load %arg6[%c0_57, %c0_58] : memref<8x128xf32, #tpu.memory_space<vmem>>, vector<8x128xf32>
    %c0_59 = arith.constant 0 : index
    %c0_60 = arith.constant 0 : index
    %115 = vector.load %arg7[%c0_59, %c0_60] : memref<8x128xf32, #tpu.memory_space<vmem>>, vector<8x128xf32>
    %c3 = arith.constant 3 : index
    %c0_61 = arith.constant 0 : index
    %c0_62 = arith.constant 0 : index
    %116 = vector.load %arg1[%c3, %c0_61, %c0_62] : memref<8x8x512xf32, #tpu.memory_space<vmem>>, vector<1x8x512xf32>
    %117 = vector.shape_cast %116 : vector<1x8x512xf32> to vector<8x512xf32>
    %c0_63 = arith.constant 0 : index
    %c0_64 = arith.constant 0 : index
    %118 = vector.load %arg2[%c0_63, %c0_64] : memref<128x512xf32, #tpu.memory_space<vmem>>, vector<128x512xf32>
    %cst_65 = arith.constant dense<0.000000e+00> : vector<8x512xf32>
    %119 = tpu.matmul %114, %118, %cst_65 {dimension_numbers = #tpu.dot_dimension_numbers<[1], [0], [0], [1], [0, 0, 1, 1], [], []>} : vector<8x128xf32>, vector<128x512xf32>, vector<8x512xf32> -> vector<8x512xf32>
    %120 = arith.addf %117, %119 : vector<8x512xf32>
    %121 = vector.extract_strided_slice %120 {offsets = [0, 0], sizes = [8, 128], strides = [1, 1]} : vector<8x512xf32> to vector<8x128xf32>
    %122 = arith.negf %121 : vector<8x128xf32>
    %123 = math.exp %122 : vector<8x128xf32>
    %cst_66 = arith.constant 1.000000e+00 : f32
    %124 = vector.broadcast %cst_66 : f32 to vector<8x128xf32>
    %125 = arith.addf %124, %123 : vector<8x128xf32>
    %126 = arith.divf %124, %125 : vector<8x128xf32>
    %127 = vector.extract_strided_slice %120 {offsets = [0, 128], sizes = [8, 128], strides = [1, 1]} : vector<8x512xf32> to vector<8x128xf32>
    %128 = arith.negf %127 : vector<8x128xf32>
    %129 = math.exp %128 : vector<8x128xf32>
    %cst_67 = arith.constant 1.000000e+00 : f32
    %130 = vector.broadcast %cst_67 : f32 to vector<8x128xf32>
    %131 = arith.addf %130, %129 : vector<8x128xf32>
    %132 = arith.divf %130, %131 : vector<8x128xf32>
    %133 = vector.extract_strided_slice %120 {offsets = [0, 256], sizes = [8, 128], strides = [1, 1]} : vector<8x512xf32> to vector<8x128xf32>
    %134 = math.tanh %133 : vector<8x128xf32>
    %135 = vector.extract_strided_slice %120 {offsets = [0, 384], sizes = [8, 128], strides = [1, 1]} : vector<8x512xf32> to vector<8x128xf32>
    %136 = arith.negf %135 : vector<8x128xf32>
    %137 = math.exp %136 : vector<8x128xf32>
    %cst_68 = arith.constant 1.000000e+00 : f32
    %138 = vector.broadcast %cst_68 : f32 to vector<8x128xf32>
    %139 = arith.addf %138, %137 : vector<8x128xf32>
    %140 = arith.divf %138, %139 : vector<8x128xf32>
    %141 = arith.mulf %132, %115 : vector<8x128xf32>
    %142 = arith.mulf %126, %134 : vector<8x128xf32>
    %143 = arith.addf %141, %142 : vector<8x128xf32>
    %144 = math.tanh %143 : vector<8x128xf32>
    %145 = arith.mulf %140, %144 : vector<8x128xf32>
    %c0_69 = arith.constant 0 : index
    %c0_70 = arith.constant 0 : index
    %146 = vector.load %arg6[%c0_69, %c0_70] : memref<8x128xf32, #tpu.memory_space<vmem>>, vector<8x128xf32>
    tpu.vector_store %arg6[%c0_69, %c0_70], %145 {strides = array<i32>} : memref<8x128xf32, #tpu.memory_space<vmem>>, vector<8x128xf32>,
    %c0_71 = arith.constant 0 : index
    %c0_72 = arith.constant 0 : index
    %147 = vector.load %arg7[%c0_71, %c0_72] : memref<8x128xf32, #tpu.memory_space<vmem>>, vector<8x128xf32>
    tpu.vector_store %arg7[%c0_71, %c0_72], %143 {strides = array<i32>} : memref<8x128xf32, #tpu.memory_space<vmem>>, vector<8x128xf32>,
    %c3_73 = arith.constant 3 : index
    %c0_74 = arith.constant 0 : index
    %c0_75 = arith.constant 0 : index
    %148 = vector.load %arg5[%c3_73, %c0_74, %c0_75] : memref<8x8x128xf32, #tpu.memory_space<vmem>>, vector<1x8x128xf32>
    %149 = vector.shape_cast %148 : vector<1x8x128xf32> to vector<8x128xf32>
    %150 = vector.shape_cast %145 : vector<8x128xf32> to vector<1x8x128xf32>
    tpu.vector_store %arg5[%c3_73, %c0_74, %c0_75], %150 {strides = array<i32>} : memref<8x8x128xf32, #tpu.memory_space<vmem>>, vector<1x8x128xf32>,
    %c0_76 = arith.constant 0 : index
    %c0_77 = arith.constant 0 : index
    %151 = vector.load %arg6[%c0_76, %c0_77] : memref<8x128xf32, #tpu.memory_space<vmem>>, vector<8x128xf32>
    %c0_78 = arith.constant 0 : index
    %c0_79 = arith.constant 0 : index
    %152 = vector.load %arg7[%c0_78, %c0_79] : memref<8x128xf32, #tpu.memory_space<vmem>>, vector<8x128xf32>
    %c4 = arith.constant 4 : index
    %c0_80 = arith.constant 0 : index
    %c0_81 = arith.constant 0 : index
    %153 = vector.load %arg1[%c4, %c0_80, %c0_81] : memref<8x8x512xf32, #tpu.memory_space<vmem>>, vector<1x8x512xf32>
    %154 = vector.shape_cast %153 : vector<1x8x512xf32> to vector<8x512xf32>
    %c0_82 = arith.constant 0 : index
    %c0_83 = arith.constant 0 : index
    %155 = vector.load %arg2[%c0_82, %c0_83] : memref<128x512xf32, #tpu.memory_space<vmem>>, vector<128x512xf32>
    %cst_84 = arith.constant dense<0.000000e+00> : vector<8x512xf32>
    %156 = tpu.matmul %151, %155, %cst_84 {dimension_numbers = #tpu.dot_dimension_numbers<[1], [0], [0], [1], [0, 0, 1, 1], [], []>} : vector<8x128xf32>, vector<128x512xf32>, vector<8x512xf32> -> vector<8x512xf32>
    %157 = arith.addf %154, %156 : vector<8x512xf32>
    %158 = vector.extract_strided_slice %157 {offsets = [0, 0], sizes = [8, 128], strides = [1, 1]} : vector<8x512xf32> to vector<8x128xf32>
    %159 = arith.negf %158 : vector<8x128xf32>
    %160 = math.exp %159 : vector<8x128xf32>
    %cst_85 = arith.constant 1.000000e+00 : f32
    %161 = vector.broadcast %cst_85 : f32 to vector<8x128xf32>
    %162 = arith.addf %161, %160 : vector<8x128xf32>
    %163 = arith.divf %161, %162 : vector<8x128xf32>
    %164 = vector.extract_strided_slice %157 {offsets = [0, 128], sizes = [8, 128], strides = [1, 1]} : vector<8x512xf32> to vector<8x128xf32>
    %165 = arith.negf %164 : vector<8x128xf32>
    %166 = math.exp %165 : vector<8x128xf32>
    %cst_86 = arith.constant 1.000000e+00 : f32
    %167 = vector.broadcast %cst_86 : f32 to vector<8x128xf32>
    %168 = arith.addf %167, %166 : vector<8x128xf32>
    %169 = arith.divf %167, %168 : vector<8x128xf32>
    %170 = vector.extract_strided_slice %157 {offsets = [0, 256], sizes = [8, 128], strides = [1, 1]} : vector<8x512xf32> to vector<8x128xf32>
    %171 = math.tanh %170 : vector<8x128xf32>
    %172 = vector.extract_strided_slice %157 {offsets = [0, 384], sizes = [8, 128], strides = [1, 1]} : vector<8x512xf32> to vector<8x128xf32>
    %173 = arith.negf %172 : vector<8x128xf32>
    %174 = math.exp %173 : vector<8x128xf32>
    %cst_87 = arith.constant 1.000000e+00 : f32
    %175 = vector.broadcast %cst_87 : f32 to vector<8x128xf32>
    %176 = arith.addf %175, %174 : vector<8x128xf32>
    %177 = arith.divf %175, %176 : vector<8x128xf32>
    %178 = arith.mulf %169, %152 : vector<8x128xf32>
    %179 = arith.mulf %163, %171 : vector<8x128xf32>
    %180 = arith.addf %178, %179 : vector<8x128xf32>
    %181 = math.tanh %180 : vector<8x128xf32>
    %182 = arith.mulf %177, %181 : vector<8x128xf32>
    %c0_88 = arith.constant 0 : index
    %c0_89 = arith.constant 0 : index
    %183 = vector.load %arg6[%c0_88, %c0_89] : memref<8x128xf32, #tpu.memory_space<vmem>>, vector<8x128xf32>
    tpu.vector_store %arg6[%c0_88, %c0_89], %182 {strides = array<i32>} : memref<8x128xf32, #tpu.memory_space<vmem>>, vector<8x128xf32>,
    %c0_90 = arith.constant 0 : index
    %c0_91 = arith.constant 0 : index
    %184 = vector.load %arg7[%c0_90, %c0_91] : memref<8x128xf32, #tpu.memory_space<vmem>>, vector<8x128xf32>
    tpu.vector_store %arg7[%c0_90, %c0_91], %180 {strides = array<i32>} : memref<8x128xf32, #tpu.memory_space<vmem>>, vector<8x128xf32>,
    %c4_92 = arith.constant 4 : index
    %c0_93 = arith.constant 0 : index
    %c0_94 = arith.constant 0 : index
    %185 = vector.load %arg5[%c4_92, %c0_93, %c0_94] : memref<8x8x128xf32, #tpu.memory_space<vmem>>, vector<1x8x128xf32>
    %186 = vector.shape_cast %185 : vector<1x8x128xf32> to vector<8x128xf32>
    %187 = vector.shape_cast %182 : vector<8x128xf32> to vector<1x8x128xf32>
    tpu.vector_store %arg5[%c4_92, %c0_93, %c0_94], %187 {strides = array<i32>} : memref<8x8x128xf32, #tpu.memory_space<vmem>>, vector<1x8x128xf32>,
    %c0_95 = arith.constant 0 : index
    %c0_96 = arith.constant 0 : index
    %188 = vector.load %arg6[%c0_95, %c0_96] : memref<8x128xf32, #tpu.memory_space<vmem>>, vector<8x128xf32>
    %c0_97 = arith.constant 0 : index
    %c0_98 = arith.constant 0 : index
    %189 = vector.load %arg7[%c0_97, %c0_98] : memref<8x128xf32, #tpu.memory_space<vmem>>, vector<8x128xf32>
    %c5 = arith.constant 5 : index
    %c0_99 = arith.constant 0 : index
    %c0_100 = arith.constant 0 : index
    %190 = vector.load %arg1[%c5, %c0_99, %c0_100] : memref<8x8x512xf32, #tpu.memory_space<vmem>>, vector<1x8x512xf32>
    %191 = vector.shape_cast %190 : vector<1x8x512xf32> to vector<8x512xf32>
    %c0_101 = arith.constant 0 : index
    %c0_102 = arith.constant 0 : index
    %192 = vector.load %arg2[%c0_101, %c0_102] : memref<128x512xf32, #tpu.memory_space<vmem>>, vector<128x512xf32>
    %cst_103 = arith.constant dense<0.000000e+00> : vector<8x512xf32>
    %193 = tpu.matmul %188, %192, %cst_103 {dimension_numbers = #tpu.dot_dimension_numbers<[1], [0], [0], [1], [0, 0, 1, 1], [], []>} : vector<8x128xf32>, vector<128x512xf32>, vector<8x512xf32> -> vector<8x512xf32>
    %194 = arith.addf %191, %193 : vector<8x512xf32>
    %195 = vector.extract_strided_slice %194 {offsets = [0, 0], sizes = [8, 128], strides = [1, 1]} : vector<8x512xf32> to vector<8x128xf32>
    %196 = arith.negf %195 : vector<8x128xf32>
    %197 = math.exp %196 : vector<8x128xf32>
    %cst_104 = arith.constant 1.000000e+00 : f32
    %198 = vector.broadcast %cst_104 : f32 to vector<8x128xf32>
    %199 = arith.addf %198, %197 : vector<8x128xf32>
    %200 = arith.divf %198, %199 : vector<8x128xf32>
    %201 = vector.extract_strided_slice %194 {offsets = [0, 128], sizes = [8, 128], strides = [1, 1]} : vector<8x512xf32> to vector<8x128xf32>
    %202 = arith.negf %201 : vector<8x128xf32>
    %203 = math.exp %202 : vector<8x128xf32>
    %cst_105 = arith.constant 1.000000e+00 : f32
    %204 = vector.broadcast %cst_105 : f32 to vector<8x128xf32>
    %205 = arith.addf %204, %203 : vector<8x128xf32>
    %206 = arith.divf %204, %205 : vector<8x128xf32>
    %207 = vector.extract_strided_slice %194 {offsets = [0, 256], sizes = [8, 128], strides = [1, 1]} : vector<8x512xf32> to vector<8x128xf32>
    %208 = math.tanh %207 : vector<8x128xf32>
    %209 = vector.extract_strided_slice %194 {offsets = [0, 384], sizes = [8, 128], strides = [1, 1]} : vector<8x512xf32> to vector<8x128xf32>
    %210 = arith.negf %209 : vector<8x128xf32>
    %211 = math.exp %210 : vector<8x128xf32>
    %cst_106 = arith.constant 1.000000e+00 : f32
    %212 = vector.broadcast %cst_106 : f32 to vector<8x128xf32>
    %213 = arith.addf %212, %211 : vector<8x128xf32>
    %214 = arith.divf %212, %213 : vector<8x128xf32>
    %215 = arith.mulf %206, %189 : vector<8x128xf32>
    %216 = arith.mulf %200, %208 : vector<8x128xf32>
    %217 = arith.addf %215, %216 : vector<8x128xf32>
    %218 = math.tanh %217 : vector<8x128xf32>
    %219 = arith.mulf %214, %218 : vector<8x128xf32>
    %c0_107 = arith.constant 0 : index
    %c0_108 = arith.constant 0 : index
    %220 = vector.load %arg6[%c0_107, %c0_108] : memref<8x128xf32, #tpu.memory_space<vmem>>, vector<8x128xf32>
    tpu.vector_store %arg6[%c0_107, %c0_108], %219 {strides = array<i32>} : memref<8x128xf32, #tpu.memory_space<vmem>>, vector<8x128xf32>,
    %c0_109 = arith.constant 0 : index
    %c0_110 = arith.constant 0 : index
    %221 = vector.load %arg7[%c0_109, %c0_110] : memref<8x128xf32, #tpu.memory_space<vmem>>, vector<8x128xf32>
    tpu.vector_store %arg7[%c0_109, %c0_110], %217 {strides = array<i32>} : memref<8x128xf32, #tpu.memory_space<vmem>>, vector<8x128xf32>,
    %c5_111 = arith.constant 5 : index
    %c0_112 = arith.constant 0 : index
    %c0_113 = arith.constant 0 : index
    %222 = vector.load %arg5[%c5_111, %c0_112, %c0_113] : memref<8x8x128xf32, #tpu.memory_space<vmem>>, vector<1x8x128xf32>
    %223 = vector.shape_cast %222 : vector<1x8x128xf32> to vector<8x128xf32>
    %224 = vector.shape_cast %219 : vector<8x128xf32> to vector<1x8x128xf32>
    tpu.vector_store %arg5[%c5_111, %c0_112, %c0_113], %224 {strides = array<i32>} : memref<8x8x128xf32, #tpu.memory_space<vmem>>, vector<1x8x128xf32>,
    %c0_114 = arith.constant 0 : index
    %c0_115 = arith.constant 0 : index
    %225 = vector.load %arg6[%c0_114, %c0_115] : memref<8x128xf32, #tpu.memory_space<vmem>>, vector<8x128xf32>
    %c0_116 = arith.constant 0 : index
    %c0_117 = arith.constant 0 : index
    %226 = vector.load %arg7[%c0_116, %c0_117] : memref<8x128xf32, #tpu.memory_space<vmem>>, vector<8x128xf32>
    %c6 = arith.constant 6 : index
    %c0_118 = arith.constant 0 : index
    %c0_119 = arith.constant 0 : index
    %227 = vector.load %arg1[%c6, %c0_118, %c0_119] : memref<8x8x512xf32, #tpu.memory_space<vmem>>, vector<1x8x512xf32>
    %228 = vector.shape_cast %227 : vector<1x8x512xf32> to vector<8x512xf32>
    %c0_120 = arith.constant 0 : index
    %c0_121 = arith.constant 0 : index
    %229 = vector.load %arg2[%c0_120, %c0_121] : memref<128x512xf32, #tpu.memory_space<vmem>>, vector<128x512xf32>
    %cst_122 = arith.constant dense<0.000000e+00> : vector<8x512xf32>
    %230 = tpu.matmul %225, %229, %cst_122 {dimension_numbers = #tpu.dot_dimension_numbers<[1], [0], [0], [1], [0, 0, 1, 1], [], []>} : vector<8x128xf32>, vector<128x512xf32>, vector<8x512xf32> -> vector<8x512xf32>
    %231 = arith.addf %228, %230 : vector<8x512xf32>
    %232 = vector.extract_strided_slice %231 {offsets = [0, 0], sizes = [8, 128], strides = [1, 1]} : vector<8x512xf32> to vector<8x128xf32>
    %233 = arith.negf %232 : vector<8x128xf32>
    %234 = math.exp %233 : vector<8x128xf32>
    %cst_123 = arith.constant 1.000000e+00 : f32
    %235 = vector.broadcast %cst_123 : f32 to vector<8x128xf32>
    %236 = arith.addf %235, %234 : vector<8x128xf32>
    %237 = arith.divf %235, %236 : vector<8x128xf32>
    %238 = vector.extract_strided_slice %231 {offsets = [0, 128], sizes = [8, 128], strides = [1, 1]} : vector<8x512xf32> to vector<8x128xf32>
    %239 = arith.negf %238 : vector<8x128xf32>
    %240 = math.exp %239 : vector<8x128xf32>
    %cst_124 = arith.constant 1.000000e+00 : f32
    %241 = vector.broadcast %cst_124 : f32 to vector<8x128xf32>
    %242 = arith.addf %241, %240 : vector<8x128xf32>
    %243 = arith.divf %241, %242 : vector<8x128xf32>
    %244 = vector.extract_strided_slice %231 {offsets = [0, 256], sizes = [8, 128], strides = [1, 1]} : vector<8x512xf32> to vector<8x128xf32>
    %245 = math.tanh %244 : vector<8x128xf32>
    %246 = vector.extract_strided_slice %231 {offsets = [0, 384], sizes = [8, 128], strides = [1, 1]} : vector<8x512xf32> to vector<8x128xf32>
    %247 = arith.negf %246 : vector<8x128xf32>
    %248 = math.exp %247 : vector<8x128xf32>
    %cst_125 = arith.constant 1.000000e+00 : f32
    %249 = vector.broadcast %cst_125 : f32 to vector<8x128xf32>
    %250 = arith.addf %249, %248 : vector<8x128xf32>
    %251 = arith.divf %249, %250 : vector<8x128xf32>
    %252 = arith.mulf %243, %226 : vector<8x128xf32>
    %253 = arith.mulf %237, %245 : vector<8x128xf32>
    %254 = arith.addf %252, %253 : vector<8x128xf32>
    %255 = math.tanh %254 : vector<8x128xf32>
    %256 = arith.mulf %251, %255 : vector<8x128xf32>
    %c0_126 = arith.constant 0 : index
    %c0_127 = arith.constant 0 : index
    %257 = vector.load %arg6[%c0_126, %c0_127] : memref<8x128xf32, #tpu.memory_space<vmem>>, vector<8x128xf32>
    tpu.vector_store %arg6[%c0_126, %c0_127], %256 {strides = array<i32>} : memref<8x128xf32, #tpu.memory_space<vmem>>, vector<8x128xf32>,
    %c0_128 = arith.constant 0 : index
    %c0_129 = arith.constant 0 : index
    %258 = vector.load %arg7[%c0_128, %c0_129] : memref<8x128xf32, #tpu.memory_space<vmem>>, vector<8x128xf32>
    tpu.vector_store %arg7[%c0_128, %c0_129], %254 {strides = array<i32>} : memref<8x128xf32, #tpu.memory_space<vmem>>, vector<8x128xf32>,
    %c6_130 = arith.constant 6 : index
    %c0_131 = arith.constant 0 : index
    %c0_132 = arith.constant 0 : index
    %259 = vector.load %arg5[%c6_130, %c0_131, %c0_132] : memref<8x8x128xf32, #tpu.memory_space<vmem>>, vector<1x8x128xf32>
    %260 = vector.shape_cast %259 : vector<1x8x128xf32> to vector<8x128xf32>
    %261 = vector.shape_cast %256 : vector<8x128xf32> to vector<1x8x128xf32>
    tpu.vector_store %arg5[%c6_130, %c0_131, %c0_132], %261 {strides = array<i32>} : memref<8x8x128xf32, #tpu.memory_space<vmem>>, vector<1x8x128xf32>,
    %c0_133 = arith.constant 0 : index
    %c0_134 = arith.constant 0 : index
    %262 = vector.load %arg6[%c0_133, %c0_134] : memref<8x128xf32, #tpu.memory_space<vmem>>, vector<8x128xf32>
    %c0_135 = arith.constant 0 : index
    %c0_136 = arith.constant 0 : index
    %263 = vector.load %arg7[%c0_135, %c0_136] : memref<8x128xf32, #tpu.memory_space<vmem>>, vector<8x128xf32>
    %c7 = arith.constant 7 : index
    %c0_137 = arith.constant 0 : index
    %c0_138 = arith.constant 0 : index
    %264 = vector.load %arg1[%c7, %c0_137, %c0_138] : memref<8x8x512xf32, #tpu.memory_space<vmem>>, vector<1x8x512xf32>
    %265 = vector.shape_cast %264 : vector<1x8x512xf32> to vector<8x512xf32>
    %c0_139 = arith.constant 0 : index
    %c0_140 = arith.constant 0 : index
    %266 = vector.load %arg2[%c0_139, %c0_140] : memref<128x512xf32, #tpu.memory_space<vmem>>, vector<128x512xf32>
    %cst_141 = arith.constant dense<0.000000e+00> : vector<8x512xf32>
    %267 = tpu.matmul %262, %266, %cst_141 {dimension_numbers = #tpu.dot_dimension_numbers<[1], [0], [0], [1], [0, 0, 1, 1], [], []>} : vector<8x128xf32>, vector<128x512xf32>, vector<8x512xf32> -> vector<8x512xf32>
    %268 = arith.addf %265, %267 : vector<8x512xf32>
    %269 = vector.extract_strided_slice %268 {offsets = [0, 0], sizes = [8, 128], strides = [1, 1]} : vector<8x512xf32> to vector<8x128xf32>
    %270 = arith.negf %269 : vector<8x128xf32>
    %271 = math.exp %270 : vector<8x128xf32>
    %cst_142 = arith.constant 1.000000e+00 : f32
    %272 = vector.broadcast %cst_142 : f32 to vector<8x128xf32>
    %273 = arith.addf %272, %271 : vector<8x128xf32>
    %274 = arith.divf %272, %273 : vector<8x128xf32>
    %275 = vector.extract_strided_slice %268 {offsets = [0, 128], sizes = [8, 128], strides = [1, 1]} : vector<8x512xf32> to vector<8x128xf32>
    %276 = arith.negf %275 : vector<8x128xf32>
    %277 = math.exp %276 : vector<8x128xf32>
    %cst_143 = arith.constant 1.000000e+00 : f32
    %278 = vector.broadcast %cst_143 : f32 to vector<8x128xf32>
    %279 = arith.addf %278, %277 : vector<8x128xf32>
    %280 = arith.divf %278, %279 : vector<8x128xf32>
    %281 = vector.extract_strided_slice %268 {offsets = [0, 256], sizes = [8, 128], strides = [1, 1]} : vector<8x512xf32> to vector<8x128xf32>
    %282 = math.tanh %281 : vector<8x128xf32>
    %283 = vector.extract_strided_slice %268 {offsets = [0, 384], sizes = [8, 128], strides = [1, 1]} : vector<8x512xf32> to vector<8x128xf32>
    %284 = arith.negf %283 : vector<8x128xf32>
    %285 = math.exp %284 : vector<8x128xf32>
    %cst_144 = arith.constant 1.000000e+00 : f32
    %286 = vector.broadcast %cst_144 : f32 to vector<8x128xf32>
    %287 = arith.addf %286, %285 : vector<8x128xf32>
    %288 = arith.divf %286, %287 : vector<8x128xf32>
    %289 = arith.mulf %280, %263 : vector<8x128xf32>
    %290 = arith.mulf %274, %282 : vector<8x128xf32>
    %291 = arith.addf %289, %290 : vector<8x128xf32>
    %292 = math.tanh %291 : vector<8x128xf32>
    %293 = arith.mulf %288, %292 : vector<8x128xf32>
    %c0_145 = arith.constant 0 : index
    %c0_146 = arith.constant 0 : index
    %294 = vector.load %arg6[%c0_145, %c0_146] : memref<8x128xf32, #tpu.memory_space<vmem>>, vector<8x128xf32>
    tpu.vector_store %arg6[%c0_145, %c0_146], %293 {strides = array<i32>} : memref<8x128xf32, #tpu.memory_space<vmem>>, vector<8x128xf32>,
    %c0_147 = arith.constant 0 : index
    %c0_148 = arith.constant 0 : index
    %295 = vector.load %arg7[%c0_147, %c0_148] : memref<8x128xf32, #tpu.memory_space<vmem>>, vector<8x128xf32>
    tpu.vector_store %arg7[%c0_147, %c0_148], %291 {strides = array<i32>} : memref<8x128xf32, #tpu.memory_space<vmem>>, vector<8x128xf32>,
    %c7_149 = arith.constant 7 : index
    %c0_150 = arith.constant 0 : index
    %c0_151 = arith.constant 0 : index
    %296 = vector.load %arg5[%c7_149, %c0_150, %c0_151] : memref<8x8x128xf32, #tpu.memory_space<vmem>>, vector<1x8x128xf32>
    %297 = vector.shape_cast %296 : vector<1x8x128xf32> to vector<8x128xf32>
    %298 = vector.shape_cast %293 : vector<8x128xf32> to vector<1x8x128xf32>
    tpu.vector_store %arg5[%c7_149, %c0_150, %c0_151], %298 {strides = array<i32>} : memref<8x8x128xf32, #tpu.memory_space<vmem>>, vector<1x8x128xf32>,
    return
  }
  func.func @transform_0(%arg0: i32) -> (i32, i32, i32) {
    %c0_i32 = arith.constant 0 : i32
    %c0_i32_0 = arith.constant 0 : i32
    %c0_i32_1 = arith.constant 0 : i32
    return %arg0, %c0_i32, %c0_i32_0 : i32, i32, i32
  }
  func.func @transform_1(%arg0: i32) -> (i32, i32) {
    %c0_i32 = arith.constant 0 : i32
    %c0_i32_0 = arith.constant 0 : i32
    %c0_i32_1 = arith.constant 0 : i32
    return %c0_i32, %c0_i32_0 : i32, i32
  }
  func.func @transform_2(%arg0: i32) -> (i32, i32) {
    %c0_i32 = arith.constant 0 : i32
    %c0_i32_0 = arith.constant 0 : i32
    %c0_i32_1 = arith.constant 0 : i32
    return %c0_i32, %c0_i32_0 : i32, i32
  }
  func.func @transform_3(%arg0: i32) -> (i32, i32) {
    %c0_i32 = arith.constant 0 : i32
    %c0_i32_0 = arith.constant 0 : i32
    %c0_i32_1 = arith.constant 0 : i32
    return %c0_i32, %c0_i32_0 : i32, i32
  }
  func.func @transform_4(%arg0: i32) -> (i32, i32, i32) {
    %c0_i32 = arith.constant 0 : i32
    %c0_i32_0 = arith.constant 0 : i32
    %c0_i32_1 = arith.constant 0 : i32
    return %arg0, %c0_i32, %c0_i32_0 : i32, i32, i32
  }
  func.func @transform_5(%arg0: i32) -> (i32, i32) {
    %c0_i32 = arith.constant 0 : i32
    %c0_i32_0 = arith.constant 0 : i32
    %c0_i32_1 = arith.constant 0 : i32
    return %c0_i32, %c0_i32_0 : i32, i32
  }
  func.func @transform_6(%arg0: i32) -> (i32, i32) {
    %c0_i32 = arith.constant 0 : i32
    %c0_i32_0 = arith.constant 0 : i32
    %c0_i32_1 = arith.constant 0 : i32
    return %c0_i32, %c0_i32_0 : i32, i32
  }
}

</mosaic_0001>

<bundles_post_ra>
// kernel: _lambda_.13
= control target key start
LH: loop header
LB: loop body
LE: loop exit
PB: predicated region body
PF: predicated region fallthrough
CT: control target
= control target key end

     0   :  { %s398_s1 = inlined_call_operand.vmem [shape: f32[128,128], index: 1, kind: input, shape index: {}]   ;;  %s399_s0 = inlined_call_operand.vmem [shape: f32[64,128], index: 0, kind: input, shape index: {}]   ;;  %s400_s2 = inlined_call_operand.vmem [shape: f32[1,128], index: 2, kind: input, shape index: {}]   ;;  %s401_s3 = inlined_call_operand.vmem [shape: f32[64,128], index: 3, kind: output, shape index: {}]  }
   0x1   :  { %v22_v0 = vld [vmem:[%s398_s1] sm:$0xff]  ;;  %v23_v1 = vld [vmem:[%s398_s1 + $0x8] sm:$0xff]  ;;  %v24_v2 = vld [vmem:[%s398_s1 + $0x10] sm:$0xff] }
   0x2   :  { %v231_v3 = vpack.c.bf16 %v23_v1, %v22_v0  ;;  %v25_v4 = vld [vmem:[%s398_s1 + $0x18] sm:$0xff]  ;;  %v26_v6 = vld [vmem:[%s398_s1 + $0x20] sm:$0xff]  ;;  %v27_v7 = vld [vmem:[%s398_s1 + $0x28] sm:$0xff] }
   0x3   :  { %v235_v5 = vpack.c.bf16 %v25_v4, %v24_v2  ;;  %v239_v8 = vpack.c.bf16 %v27_v7, %v26_v6  ;;  %v14_v9 = vld [vmem:[%s399_s0] sm:$0xff]  ;;  %v28_v11 = vld [vmem:[%s398_s1 + $0x30] sm:$0xff]  ;;  %v29_v12 = vld [vmem:[%s398_s1 + $0x38] sm:$0xff] }
   0x4   :  { %232 = vmatprep.subr.bf16.mxu0 %v231_v3  ;;  %263 = vmatprep.subr.bf16.mxu1 %v231_v3  ;;  %v18_v10 = vld [vmem:[%s399_s0 + $0x20] sm:$0xff]  ;;  %v243_v13 = vpack.c.bf16 %v29_v12, %v28_v11  ;;  %v31_v15 = vld [vmem:[%s398_s1 + $0x48] sm:$0xff]  ;;  %v32_v17 = vld [vmem:[%s398_s1 + $0x50] sm:$0xff] }
   0x5   :  { %234 = vmatpush3.bf16.msra.mxu0 %v231_v3  ;;  %271 = vmatpush3.bf16.msra.mxu1 %v231_v3  ;;  %v30_v14 = vld [vmem:[%s398_s1 + $0x40] sm:$0xff]  ;;  %v33_v18 = vld [vmem:[%s398_s1 + $0x58] sm:$0xff]  ;;  %v35_v21 = vld [vmem:[%s398_s1 + $0x68] sm:$0xff] }
   0x6   :  { %236 = vmatprep.subr.bf16.mxu0 %v235_v5  ;;  %264 = vmatprep.subr.bf16.mxu1 %v235_v5  ;;  %v247_v16 = vpack.c.bf16 %v31_v15, %v30_v14  ;;  %v251_v19 = vpack.c.bf16 %v33_v18, %v32_v17  ;;  %v34_v20 = vld [vmem:[%s398_s1 + $0x60] sm:$0xff]  ;;  %v36_v23 = vld [vmem:[%s398_s1 + $0x70] sm:$0xff]  ;;  %v37_v24 = vld [vmem:[%s398_s1 + $0x78] sm:$0xff] }
   0x7   :  { %219 = vmatprep.mubr.f32.mxu0 %v14_v9  ;;  %225 = vmatprep.mubr.f32.mxu1 %v18_v10  ;;  %v255_v22 = vpack.c.bf16 %v35_v21, %v34_v20  ;;  %v259_v25 = vpack.c.bf16 %v37_v24, %v36_v23  ;;  %v15_v26 = vld [vmem:[%s399_s0 + $0x8] sm:$0xff]  ;;  %v16_v28 = vld [vmem:[%s399_s0 + $0x10] sm:$0xff]  ;;  %v17_v30 = vld [vmem:[%s399_s0 + $0x18] sm:$0xff] }
   0x8   :  { %v19_v27 = vld [vmem:[%s399_s0 + $0x28] sm:$0xff]  ;;  %v20_v29 = vld [vmem:[%s399_s0 + $0x30] sm:$0xff]  ;;  %v21_v31 = vld [vmem:[%s399_s0 + $0x38] sm:$0xff] }
   0x9   :  { %238 = vmatpush3.bf16.msra.mxu0 %v235_v5  ;;  %272 = vmatpush3.bf16.msra.mxu1 %v235_v5  ;;  %v162_v32 = vld [vmem:[%s400_s2] ss:$0 sm:$0xff] }
   0xa   :  { %240 = vmatprep.subr.bf16.mxu0 %v239_v8  ;;  %265 = vmatprep.subr.bf16.mxu1 %v239_v8 }
   0xd   :  { %242 = vmatpush3.bf16.msra.mxu0 %v239_v8  ;;  %273 = vmatpush3.bf16.msra.mxu1 %v239_v8 }
   0xe   :  { %244 = vmatprep.subr.bf16.mxu0 %v243_v13  ;;  %266 = vmatprep.subr.bf16.mxu1 %v243_v13 }
  0x11   :  { %246 = vmatpush3.bf16.msra.mxu0 %v243_v13  ;;  %274 = vmatpush3.bf16.msra.mxu1 %v243_v13 }
  0x12   :  { %248 = vmatprep.subr.bf16.mxu0 %v247_v16  ;;  %267 = vmatprep.subr.bf16.mxu1 %v247_v16 }
  0x15   :  { %250 = vmatpush3.bf16.msra.mxu0 %v247_v16  ;;  %275 = vmatpush3.bf16.msra.mxu1 %v247_v16 }
  0x16   :  { %252 = vmatprep.subr.bf16.mxu0 %v251_v19  ;;  %268 = vmatprep.subr.bf16.mxu1 %v251_v19 }
  0x19   :  { %254 = vmatpush3.bf16.msra.mxu0 %v251_v19  ;;  %276 = vmatpush3.bf16.msra.mxu1 %v251_v19 }
  0x1a   :  { %256 = vmatprep.subr.bf16.mxu0 %v255_v22  ;;  %269 = vmatprep.subr.bf16.mxu1 %v255_v22 }
  0x1d   :  { %258 = vmatpush3.bf16.msra.mxu0 %v255_v22  ;;  %277 = vmatpush3.bf16.msra.mxu1 %v255_v22 }
  0x1e   :  { %260 = vmatprep.subr.bf16.mxu0 %v259_v25  ;;  %270 = vmatprep.subr.bf16.mxu1 %v259_v25 }
  0x21   :  { %262 = vmatpush3.bf16.msra.mxu0 %v259_v25  ;;  %278 = vmatpush3.bf16.msra.mxu1 %v259_v25 }
  0x24   :  { %220 = vmatmul.mubr.f32.vlgmr.msra.gmra.mrb[0].mxu0 %v15_v26  ;;  %226 = vmatmul.mubr.f32.vlgmr.msra.gmra.mrb[0].mxu1 %v19_v27 }
  0x25   :  { %222 = vmatprep.mubr.f32.mxu0 %v16_v28  ;;  %228 = vmatprep.mubr.f32.mxu1 %v20_v29 }
  0x28   :  { %223 = vmatmul.mubr.f32.gmra.mrb[2].mxu0 %v17_v30  ;;  %229 = vmatmul.mubr.f32.gmra.mrb[2].mxu1 %v21_v31 }
  0xf7   :  { %v221_v33 = vpop.f32.mrb[0].mxu0  ;;  %v227_v34 = vpop.f32.mrb[0].mxu1 }
  0xf8   :  { %v117_v35 = vadd.f32 %v221_v33, %v162_v32  ;;  %v137_v36 = vadd.f32 %v227_v34, %v162_v32  ;;  %v111_v37 = vpop.f32.mrb[1].mxu0  ;;  %v131_v38 = vpop.f32.mrb[1].mxu1 }
  0xf9   :  { %v112_v39 = vadd.f32 %v162_v32, %v111_v37  ;;  %v132_v40 = vadd.f32 %v162_v32, %v131_v38 }
  0xfa   :  { %151 = vst [vmem:[%s401_s3 + $0x8] sm:$0xff] %v117_v35  ;;  %155 = vst [vmem:[%s401_s3 + $0x28] sm:$0xff] %v137_v36 }
  0xfb   :  { %150 = vst [vmem:[%s401_s3] sm:$0xff] %v112_v39  ;;  %154 = vst [vmem:[%s401_s3 + $0x20] sm:$0xff] %v132_v40  ;;  %v224_v41 = vpop.f32.mrb[2].mxu0  ;;  %v230_v42 = vpop.f32.mrb[2].mxu1 }
  0xfc   :  { %v127_v43 = vadd.f32 %v224_v41, %v162_v32  ;;  %v147_v44 = vadd.f32 %v230_v42, %v162_v32  ;;  %v121_v45 = vpop.f32.mrb[3].mxu0  ;;  %v141_v46 = vpop.f32.mrb[3].mxu1 }
  0xfd   :  { %v122_v47 = vadd.f32 %v162_v32, %v121_v45  ;;  %v142_v48 = vadd.f32 %v162_v32, %v141_v46 }
  0xfe   :  { %153 = vst [vmem:[%s401_s3 + $0x18] sm:$0xff] %v127_v43  ;;  %157 = vst [vmem:[%s401_s3 + $0x38] sm:$0xff] %v147_v44 }
  0xff   :  { %152 = vst [vmem:[%s401_s3 + $0x10] sm:$0xff] %v122_v47  ;;  %156 = vst [vmem:[%s401_s3 + $0x30] sm:$0xff] %v142_v48 }

// kernel: _lambda_.9
= control target key start
LH: loop header
LB: loop body
LE: loop exit
PB: predicated region body
PF: predicated region fallthrough
CT: control target
= control target key end

     0   :  { %v435_v3 = vmov 0.0   ;;  %s827_s1 = inlined_call_operand.vmem [shape: f32[128,512], index: 1, kind: input, shape index: {}]   ;;  %s828_s0 = inlined_call_operand.vmem [shape: f32[64,128], index: 0, kind: input, shape index: {}]   ;;  %s829_s2 = inlined_call_operand.vmem [shape: f32[1,512], index: 2, kind: input, shape index: {}]   ;;  %s830_s3 = inlined_call_operand.vmem [shape: f32[64,512], index: 3, kind: output, shape index: {}]  }
   0x1   :  { %v23_v0 = vld [vmem:[%s827_s1 + $0x8] sm:$0xff]  ;;  %v25_v2 = vld [vmem:[%s827_s1 + $0x18] sm:$0xff]  ;;  %172 = vmatprep.mubr.f32.mxu0 %v435_v3  ;;  %285 = vmatprep.mubr.f32.mxu1 %v435_v3  ;;  %v22_v6 = vld [vmem:[%s827_s1] sm:$0xff] }
   0x2   :  { %v27_v1 = vld [vmem:[%s827_s1 + $0x28] sm:$0xff]  ;;  %v29_v5 = vld [vmem:[%s827_s1 + $0x38] sm:$0xff]  ;;  %v26_v7 = vld [vmem:[%s827_s1 + $0x20] sm:$0xff] }
   0x3   :  { %v370_v4 = vpack.c.bf16 %v27_v1, %v23_v0  ;;  %v402_v8 = vpack.c.bf16 %v29_v5, %v25_v2  ;;  %v372_v9 = vpack.c.bf16 %v26_v7, %v22_v6  ;;  %v24_v10 = vld [vmem:[%s827_s1 + $0x10] sm:$0xff]  ;;  %v31_v12 = vld [vmem:[%s827_s1 + $0x48] sm:$0xff]  ;;  %v33_v15 = vld [vmem:[%s827_s1 + $0x58] sm:$0xff] }
   0x4   :  { %v28_v11 = vld [vmem:[%s827_s1 + $0x30] sm:$0xff]  ;;  %v35_v14 = vld [vmem:[%s827_s1 + $0x68] sm:$0xff]  ;;  %v37_v16 = vld [vmem:[%s827_s1 + $0x78] sm:$0xff] }
   0x5   :  { %371 = vmatprep.subr.bf16.mxu0 %v370_v4  ;;  %v404_v13 = vpack.c.bf16 %v28_v11, %v24_v10  ;;  %403 = vmatprep.subr.bf16.mxu1 %v402_v8  ;;  %v374_v17 = vpack.c.bf16 %v35_v14, %v31_v12  ;;  %v406_v18 = vpack.c.bf16 %v37_v16, %v33_v15  ;;  %v30_v19 = vld [vmem:[%s827_s1 + $0x40] sm:$0xff]  ;;  %v32_v21 = vld [vmem:[%s827_s1 + $0x50] sm:$0xff]  ;;  %v39_v24 = vld [vmem:[%s827_s1 + $0x88] sm:$0xff] }
   0x6   :  { %373 = vmatpush1.bf16.msra.mxu0 %v372_v9  ;;  %v34_v20 = vld [vmem:[%s827_s1 + $0x60] sm:$0xff]  ;;  %v36_v23 = vld [vmem:[%s827_s1 + $0x70] sm:$0xff]  ;;  %v43_v25 = vld [vmem:[%s827_s1 + $0xa8] sm:$0xff] }
   0x7   :  { %405 = vmatpush1.bf16.msra.mxu1 %v404_v13  ;;  %v376_v22 = vpack.c.bf16 %v34_v20, %v30_v19  ;;  %375 = vmatprep.subr.bf16.mxu0 %v374_v17  ;;  %v408_v26 = vpack.c.bf16 %v36_v23, %v32_v21  ;;  %v378_v27 = vpack.c.bf16 %v43_v25, %v39_v24  ;;  %v41_v28 = vld [vmem:[%s827_s1 + $0x98] sm:$0xff]  ;;  %v38_v30 = vld [vmem:[%s827_s1 + $0x80] sm:$0xff]  ;;  %v40_v33 = vld [vmem:[%s827_s1 + $0x90] sm:$0xff] }
   0x8   :  { %407 = vmatprep.subr.bf16.mxu1 %v406_v18  ;;  %v45_v29 = vld [vmem:[%s827_s1 + $0xb8] sm:$0xff]  ;;  %v42_v32 = vld [vmem:[%s827_s1 + $0xa0] sm:$0xff]  ;;  %v44_v34 = vld [vmem:[%s827_s1 + $0xb0] sm:$0xff] }
   0x9   :  { %v410_v31 = vpack.c.bf16 %v45_v29, %v41_v28  ;;  %v380_v35 = vpack.c.bf16 %v42_v32, %v38_v30  ;;  %v47_v36 = vld [vmem:[%s827_s1 + $0xc8] sm:$0xff]  ;;  %v49_v38 = vld [vmem:[%s827_s1 + $0xd8] sm:$0xff]  ;;  %v412_v39 = vpack.c.bf16 %v44_v34, %v40_v33  ;;  %v46_v42 = vld [vmem:[%s827_s1 + $0xc0] sm:$0xff] }
   0xa   :  { %377 = vmatpush1.bf16.msra.mxu0 %v376_v22  ;;  %v51_v37 = vld [vmem:[%s827_s1 + $0xe8] sm:$0xff]  ;;  %v53_v41 = vld [vmem:[%s827_s1 + $0xf8] sm:$0xff]  ;;  %v50_v43 = vld [vmem:[%s827_s1 + $0xe0] sm:$0xff] }
   0xb   :  { %409 = vmatpush1.bf16.msra.mxu1 %v408_v26  ;;  %379 = vmatprep.subr.bf16.mxu0 %v378_v27  ;;  %v382_v40 = vpack.c.bf16 %v51_v37, %v47_v36  ;;  %v414_v44 = vpack.c.bf16 %v53_v41, %v49_v38  ;;  %v48_v45 = vld [vmem:[%s827_s1 + $0xd0] sm:$0xff]  ;;  %v55_v47 = vld [vmem:[%s827_s1 + $0x108] sm:$0xff]  ;;  %v57_v49 = vld [vmem:[%s827_s1 + $0x118] sm:$0xff]  ;;  %v384_v51 = vpack.c.bf16 %v50_v43, %v46_v42  ;;  %v88_v42 = vlaneseq }
   0xc   :  { %411 = vmatprep.subr.bf16.mxu1 %v410_v31  ;;  %v52_v46 = vld [vmem:[%s827_s1 + $0xf0] sm:$0xff]  ;;  %v59_v48 = vld [vmem:[%s827_s1 + $0x128] sm:$0xff]  ;;  %v61_v50 = vld [vmem:[%s827_s1 + $0x138] sm:$0xff] }
   0xd   :  { %v416_v52 = vpack.c.bf16 %v52_v46, %v48_v45  ;;  %v386_v53 = vpack.c.bf16 %v59_v48, %v55_v47  ;;  %v54_v54 = vld [vmem:[%s827_s1 + $0x100] sm:$0xff]  ;;  %v56_v56 = vld [vmem:[%s827_s1 + $0x110] sm:$0xff]  ;;  %v418_v57 = vpack.c.bf16 %v61_v50, %v57_v49  ;;  %v63_v59 = vld [vmem:[%s827_s1 + $0x148] sm:$0xff]  ;;  %v89_v43 = vshrl.u32 %v88_v42, 7 }
   0xe   :  { %381 = vmatpush1.bf16.msra.mxu0 %v380_v35  ;;  %v58_v55 = vld [vmem:[%s827_s1 + $0x120] sm:$0xff]  ;;  %v60_v58 = vld [vmem:[%s827_s1 + $0x130] sm:$0xff]  ;;  %v67_v60 = vld [vmem:[%s827_s1 + $0x168] sm:$0xff] }
   0xf   :  { %413 = vmatpush1.bf16.msra.mxu1 %v412_v39  ;;  %383 = vmatprep.subr.bf16.mxu0 %v382_v40  ;;  %v65_v61 = vld [vmem:[%s827_s1 + $0x158] sm:$0xff]  ;;  %v388_v63 = vpack.c.bf16 %v58_v55, %v54_v54  ;;  %v420_v0 = vpack.c.bf16 %v60_v58, %v56_v56  ;;  %v390_v1 = vpack.c.bf16 %v67_v60, %v63_v59  ;;  %v62_v2 = vld [vmem:[%s827_s1 + $0x140] sm:$0xff]  ;;  %v64_v5 = vld [vmem:[%s827_s1 + $0x150] sm:$0xff]  ;;  %v98_v46 = vsub.s32 2, %v89_v43 }
  0x10   :  { %415 = vmatprep.subr.bf16.mxu1 %v414_v44  ;;  %v69_v62 = vld [vmem:[%s827_s1 + $0x178] sm:$0xff]  ;;  %v66_v4 = vld [vmem:[%s827_s1 + $0x160] sm:$0xff]  ;;  %v68_v7 = vld [vmem:[%s827_s1 + $0x170] sm:$0xff]  ;;  %v90_v44 = vsub.s32 0, %v89_v43  ;;  %v94_v47 = vsub.s32 1, %v89_v43  ;;  %v102_v48 = vsub.s32 3, %v89_v43 }
  0x11   :  { %v422_v6 = vpack.c.bf16 %v69_v62, %v65_v61  ;;  %v71_v8 = vld [vmem:[%s827_s1 + $0x188] sm:$0xff]  ;;  %v73_v10 = vld [vmem:[%s827_s1 + $0x198] sm:$0xff]  ;;  %v392_v12 = vpack.c.bf16 %v66_v4, %v62_v2  ;;  %v424_v13 = vpack.c.bf16 %v68_v7, %v64_v5  ;;  %v70_v15 = vld [vmem:[%s827_s1 + $0x180] sm:$0xff] }
  0x12   :  { %385 = vmatpush1.bf16.msra.mxu0 %v384_v51  ;;  %v75_v9 = vld [vmem:[%s827_s1 + $0x1a8] sm:$0xff]  ;;  %v77_v11 = vld [vmem:[%s827_s1 + $0x1b8] sm:$0xff]  ;;  %v74_v16 = vld [vmem:[%s827_s1 + $0x1a0] sm:$0xff] }
  0x13   :  { %417 = vmatpush1.bf16.msra.mxu1 %v416_v52  ;;  %387 = vmatprep.subr.bf16.mxu0 %v386_v53  ;;  %v394_v14 = vpack.c.bf16 %v75_v9, %v71_v8  ;;  %v72_v17 = vld [vmem:[%s827_s1 + $0x190] sm:$0xff]  ;;  %v426_v18 = vpack.c.bf16 %v77_v11, %v73_v10  ;;  %v79_v20 = vld [vmem:[%s827_s1 + $0x1c8] sm:$0xff]  ;;  %v81_v22 = vld [vmem:[%s827_s1 + $0x1d8] sm:$0xff]  ;;  %v396_v24 = vpack.c.bf16 %v74_v16, %v70_v15 }
  0x14   :  { %419 = vmatprep.subr.bf16.mxu1 %v418_v57  ;;  %v76_v19 = vld [vmem:[%s827_s1 + $0x1b0] sm:$0xff]  ;;  %v83_v21 = vld [vmem:[%s827_s1 + $0x1e8] sm:$0xff]  ;;  %v85_v23 = vld [vmem:[%s827_s1 + $0x1f8] sm:$0xff] }
  0x15   :  { %v428_v25 = vpack.c.bf16 %v76_v19, %v72_v17  ;;  %v398_v26 = vpack.c.bf16 %v83_v21, %v79_v20  ;;  %v78_v27 = vld [vmem:[%s827_s1 + $0x1c0] sm:$0xff]  ;;  %v430_v29 = vpack.c.bf16 %v85_v23, %v81_v22  ;;  %v80_v30 = vld [vmem:[%s827_s1 + $0x1d0] sm:$0xff]  ;;  %v15_v35 = vld [vmem:[%s828_s0 + $0x8] sm:$0xff] }
  0x16   :  { %389 = vmatpush1.bf16.msra.mxu0 %v388_v63  ;;  %v82_v28 = vld [vmem:[%s827_s1 + $0x1e0] sm:$0xff]  ;;  %v84_v31 = vld [vmem:[%s827_s1 + $0x1f0] sm:$0xff]  ;;  %v17_v37 = vld [vmem:[%s828_s0 + $0x18] sm:$0xff] }
  0x17   :  { %421 = vmatpush1.bf16.msra.mxu1 %v420_v0  ;;  %391 = vmatprep.subr.bf16.mxu0 %v390_v1  ;;  %v400_v32 = vpack.c.bf16 %v82_v28, %v78_v27  ;;  %v432_v33 = vpack.c.bf16 %v84_v31, %v80_v30  ;;  %v14_v34 = vld [vmem:[%s828_s0] sm:$0xff]  ;;  %v16_v36 = vld [vmem:[%s828_s0 + $0x10] sm:$0xff]  ;;  %v19_v39 = vld [vmem:[%s828_s0 + $0x28] sm:$0xff] }
  0x18   :  { %423 = vmatprep.subr.bf16.mxu1 %v422_v6  ;;  %v18_v38 = vld [vmem:[%s828_s0 + $0x20] sm:$0xff]  ;;  %v20_v40 = vld [vmem:[%s828_s0 + $0x30] sm:$0xff]  ;;  %v21_v41 = vld [vmem:[%s828_s0 + $0x38] sm:$0xff] }
  0x19   :  { %v86_v45 = vld [vmem:[%s829_s2] sm:$0xf] }
  0x1a   :  { %393 = vmatpush1.bf16.msra.mxu0 %v392_v12  ;;  %v691_v49 = vrot.slane %v86_v45, %v90_v44  ;;  %v693_v50 = vrot.slane %v86_v45, %v98_v46  ;;  %v695_v51 = vrot.slane %v86_v45, %v94_v47  ;;  %v697_v52 = vrot.slane %v86_v45, %v102_v48 }
  0x1b   :  { %425 = vmatpush1.bf16.msra.mxu1 %v424_v13  ;;  %395 = vmatprep.subr.bf16.mxu0 %v394_v14 }
  0x1c   :  { %427 = vmatprep.subr.bf16.mxu1 %v426_v18 }
  0x1e   :  { %397 = vmatpush1.bf16.msra.mxu0 %v396_v24 }
  0x1f   :  { %429 = vmatpush1.bf16.msra.mxu1 %v428_v25  ;;  %399 = vmatprep.subr.bf16.mxu0 %v398_v26 }
  0x20   :  { %431 = vmatprep.subr.bf16.mxu1 %v430_v29 }
  0x22   :  { %401 = vmatpush1.bf16.msra.mxu0 %v400_v32 }
  0x23   :  { %433 = vmatpush1.bf16.msra.mxu1 %v432_v33 }
  0x25   :  { %173 = vmatmul.mubr.f32.vlgmr.msra.gmra.mrb[0].mxu0 %v14_v34 }
  0x26   :  { %286 = vmatmul.mubr.f32.vlgmr.msra.gmra.mrb[0].mxu1 %v14_v34  ;;  %178 = vmatprep.mubr.f32.mxu0 %v435_v3 }
  0x27   :  { %291 = vmatprep.mubr.f32.mxu1 %v435_v3 }
  0x29   :  { %179 = vmatmul.mubr.f32.gmra.mrb[2].mxu0 %v15_v35 }
  0x2a   :  { %292 = vmatmul.mubr.f32.gmra.mrb[2].mxu1 %v15_v35  ;;  %184 = vmatprep.mubr.f32.mxu0 %v435_v3 }
  0x2b   :  { %297 = vmatprep.mubr.f32.mxu1 %v435_v3 }
  0x2d   :  { %185 = vmatmul.mubr.f32.gmra.mrb[4].mxu0 %v16_v36 }
  0x2e   :  { %298 = vmatmul.mubr.f32.gmra.mrb[4].mxu1 %v16_v36  ;;  %190 = vmatprep.mubr.f32.mxu0 %v435_v3 }
  0x2f   :  { %303 = vmatprep.mubr.f32.mxu1 %v435_v3 }
  0x31   :  { %191 = vmatmul.mubr.f32.gmra.mrb[6].mxu0 %v17_v37 }
  0x32   :  { %304 = vmatmul.mubr.f32.gmra.mrb[6].mxu1 %v17_v37  ;;  %196 = vmatprep.mubr.f32.mxu0 %v435_v3 }
  0x33   :  { %309 = vmatprep.mubr.f32.mxu1 %v435_v3 }
  0x35   :  { %197 = vmatmul.mubr.f32.gmra.mrb[8].mxu0 %v18_v38 }
  0x36   :  { %310 = vmatmul.mubr.f32.gmra.mrb[8].mxu1 %v18_v38  ;;  %202 = vmatprep.mubr.f32.mxu0 %v435_v3 }
  0x37   :  { %315 = vmatprep.mubr.f32.mxu1 %v435_v3 }
  0x39   :  { %203 = vmatmul.mubr.f32.gmra.mrb[10].mxu0 %v19_v39 }
  0x3a   :  { %316 = vmatmul.mubr.f32.gmra.mrb[10].mxu1 %v19_v39  ;;  %208 = vmatprep.mubr.f32.mxu0 %v435_v3 }
  0x3b   :  { %321 = vmatprep.mubr.f32.mxu1 %v435_v3 }
  0x3d   :  { %209 = vmatmul.mubr.f32.gmra.mrb[12].mxu0 %v20_v40 }
  0x3e   :  { %322 = vmatmul.mubr.f32.gmra.mrb[12].mxu1 %v20_v40  ;;  %214 = vmatprep.mubr.f32.mxu0 %v435_v3 }
  0x3f   :  { %327 = vmatprep.mubr.f32.mxu1 %v435_v3 }
  0x41   :  { %215 = vmatmul.mubr.f32.gmra.mrb[14].mxu0 %v21_v41 }
  0x42   :  { %328 = vmatmul.mubr.f32.gmra.mrb[14].mxu1 %v21_v41 }
  0xf8   :  { %v174_v3 = vpop.f32.mrb[0].mxu0 }
  0xf9   :  { %v175_v53 = vadd.f32 %v174_v3, %v691_v49  ;;  %v287_v54 = vpop.f32.mrb[0].mxu1  ;;  %v176_v55 = vpop.f32.mrb[1].mxu0 }
  0xfa   :  { %v288_v56 = vadd.f32 %v287_v54, %v693_v50  ;;  %v177_v57 = vadd.f32 %v176_v55, %v695_v51  ;;  %v289_v58 = vpop.f32.mrb[1].mxu1 }
  0xfb   :  { %334 = vst [vmem:[%s830_s3] sm:$0xff] %v175_v53  ;;  %v290_v59 = vadd.f32 %v289_v58, %v697_v52 }
  0xfc   :  { %336 = vst [vmem:[%s830_s3 + $0x10] sm:$0xff] %v288_v56  ;;  %335 = vst [vmem:[%s830_s3 + $0x8] sm:$0xff] %v177_v57  ;;  %v180_v60 = vpop.f32.mrb[2].mxu0 }
  0xfd   :  { %337 = vst [vmem:[%s830_s3 + $0x18] sm:$0xff] %v290_v59  ;;  %v181_v61 = vadd.f32 %v180_v60, %v691_v49  ;;  %v293_v62 = vpop.f32.mrb[2].mxu1  ;;  %v182_v63 = vpop.f32.mrb[3].mxu0 }
  0xfe   :  { %v294_v0 = vadd.f32 %v293_v62, %v693_v50  ;;  %v183_v1 = vadd.f32 %v182_v63, %v695_v51  ;;  %v295_v2 = vpop.f32.mrb[3].mxu1 }
  0xff   :  { %338 = vst [vmem:[%s830_s3 + $0x20] sm:$0xff] %v181_v61  ;;  %v296_v4 = vadd.f32 %v295_v2, %v697_v52 }
 0x100   :  { %340 = vst [vmem:[%s830_s3 + $0x30] sm:$0xff] %v294_v0  ;;  %339 = vst [vmem:[%s830_s3 + $0x28] sm:$0xff] %v183_v1  ;;  %v186_v5 = vpop.f32.mrb[4].mxu0 }
 0x101   :  { %341 = vst [vmem:[%s830_s3 + $0x38] sm:$0xff] %v296_v4  ;;  %v187_v6 = vadd.f32 %v186_v5, %v691_v49  ;;  %v299_v7 = vpop.f32.mrb[4].mxu1  ;;  %v188_v8 = vpop.f32.mrb[5].mxu0 }
 0x102   :  { %v300_v9 = vadd.f32 %v299_v7, %v693_v50  ;;  %v189_v10 = vadd.f32 %v188_v8, %v695_v51  ;;  %v301_v11 = vpop.f32.mrb[5].mxu1 }
 0x103   :  { %342 = vst [vmem:[%s830_s3 + $0x40] sm:$0xff] %v187_v6  ;;  %v302_v12 = vadd.f32 %v301_v11, %v697_v52 }
 0x104   :  { %344 = vst [vmem:[%s830_s3 + $0x50] sm:$0xff] %v300_v9  ;;  %343 = vst [vmem:[%s830_s3 + $0x48] sm:$0xff] %v189_v10  ;;  %v192_v13 = vpop.f32.mrb[6].mxu0 }
 0x105   :  { %345 = vst [vmem:[%s830_s3 + $0x58] sm:$0xff] %v302_v12  ;;  %v193_v14 = vadd.f32 %v192_v13, %v691_v49  ;;  %v305_v15 = vpop.f32.mrb[6].mxu1  ;;  %v194_v16 = vpop.f32.mrb[7].mxu0 }
 0x106   :  { %v306_v17 = vadd.f32 %v305_v15, %v693_v50  ;;  %v195_v18 = vadd.f32 %v194_v16, %v695_v51  ;;  %v307_v19 = vpop.f32.mrb[7].mxu1 }
 0x107   :  { %346 = vst [vmem:[%s830_s3 + $0x60] sm:$0xff] %v193_v14  ;;  %v308_v20 = vadd.f32 %v307_v19, %v697_v52 }
 0x108   :  { %348 = vst [vmem:[%s830_s3 + $0x70] sm:$0xff] %v306_v17  ;;  %347 = vst [vmem:[%s830_s3 + $0x68] sm:$0xff] %v195_v18  ;;  %v198_v21 = vpop.f32.mrb[8].mxu0 }
 0x109   :  { %349 = vst [vmem:[%s830_s3 + $0x78] sm:$0xff] %v308_v20  ;;  %v199_v22 = vadd.f32 %v198_v21, %v691_v49  ;;  %v311_v23 = vpop.f32.mrb[8].mxu1  ;;  %v200_v24 = vpop.f32.mrb[9].mxu0 }
 0x10a   :  { %v312_v25 = vadd.f32 %v311_v23, %v693_v50  ;;  %v201_v26 = vadd.f32 %v200_v24, %v695_v51  ;;  %v313_v27 = vpop.f32.mrb[9].mxu1 }
 0x10b   :  { %350 = vst [vmem:[%s830_s3 + $0x80] sm:$0xff] %v199_v22  ;;  %v314_v28 = vadd.f32 %v313_v27, %v697_v52 }
 0x10c   :  { %352 = vst [vmem:[%s830_s3 + $0x90] sm:$0xff] %v312_v25  ;;  %351 = vst [vmem:[%s830_s3 + $0x88] sm:$0xff] %v201_v26  ;;  %v204_v29 = vpop.f32.mrb[10].mxu0 }
 0x10d   :  { %353 = vst [vmem:[%s830_s3 + $0x98] sm:$0xff] %v314_v28  ;;  %v205_v30 = vadd.f32 %v204_v29, %v691_v49  ;;  %v317_v31 = vpop.f32.mrb[10].mxu1  ;;  %v206_v32 = vpop.f32.mrb[11].mxu0 }
 0x10e   :  { %v318_v33 = vadd.f32 %v317_v31, %v693_v50  ;;  %v207_v34 = vadd.f32 %v206_v32, %v695_v51  ;;  %v319_v35 = vpop.f32.mrb[11].mxu1 }
 0x10f   :  { %354 = vst [vmem:[%s830_s3 + $0xa0] sm:$0xff] %v205_v30  ;;  %v320_v36 = vadd.f32 %v319_v35, %v697_v52 }
 0x110   :  { %356 = vst [vmem:[%s830_s3 + $0xb0] sm:$0xff] %v318_v33  ;;  %355 = vst [vmem:[%s830_s3 + $0xa8] sm:$0xff] %v207_v34  ;;  %v210_v37 = vpop.f32.mrb[12].mxu0 }
 0x111   :  { %357 = vst [vmem:[%s830_s3 + $0xb8] sm:$0xff] %v320_v36  ;;  %v211_v38 = vadd.f32 %v210_v37, %v691_v49  ;;  %v323_v39 = vpop.f32.mrb[12].mxu1  ;;  %v212_v40 = vpop.f32.mrb[13].mxu0 }
 0x112   :  { %v324_v41 = vadd.f32 %v323_v39, %v693_v50  ;;  %v213_v42 = vadd.f32 %v212_v40, %v695_v51  ;;  %v325_v43 = vpop.f32.mrb[13].mxu1 }
 0x113   :  { %358 = vst [vmem:[%s830_s3 + $0xc0] sm:$0xff] %v211_v38  ;;  %v326_v44 = vadd.f32 %v325_v43, %v697_v52 }
 0x114   :  { %360 = vst [vmem:[%s830_s3 + $0xd0] sm:$0xff] %v324_v41  ;;  %359 = vst [vmem:[%s830_s3 + $0xc8] sm:$0xff] %v213_v42  ;;  %v216_v45 = vpop.f32.mrb[14].mxu0 }
 0x115   :  { %361 = vst [vmem:[%s830_s3 + $0xd8] sm:$0xff] %v326_v44  ;;  %v217_v46 = vadd.f32 %v216_v45, %v691_v49  ;;  %v329_v47 = vpop.f32.mrb[14].mxu1  ;;  %v218_v48 = vpop.f32.mrb[15].mxu0 }
 0x116   :  { %v330_v3 = vadd.f32 %v329_v47, %v693_v50  ;;  %v219_v53 = vadd.f32 %v218_v48, %v695_v51  ;;  %v331_v54 = vpop.f32.mrb[15].mxu1 }
 0x117   :  { %362 = vst [vmem:[%s830_s3 + $0xe0] sm:$0xff] %v217_v46  ;;  %v332_v55 = vadd.f32 %v331_v54, %v697_v52 }
 0x118   :  { %364 = vst [vmem:[%s830_s3 + $0xf0] sm:$0xff] %v330_v3  ;;  %363 = vst [vmem:[%s830_s3 + $0xe8] sm:$0xff] %v219_v53 }
 0x119   :  { %365 = vst [vmem:[%s830_s3 + $0xf8] sm:$0xff] %v332_v55 }

// kernel: _lambda_.7
= control target key start
LH: loop header
LB: loop body
LE: loop exit
PB: predicated region body
PF: predicated region fallthrough
CT: control target
= control target key end

     0   :  { %8 = vsyncpa [#allocation3], 0  ;;  %s477_s12 = smov [#allocation2]   ;;  %s692_s0 = inlined_call_operand.vmem [shape: f32[64,128], index: 0, kind: input, shape index: {}]   ;;  %s693_s1 = inlined_call_operand.hbm [shape: f32[128,512], index: 1, kind: input, shape index: {}]   ;;  %s694_s2 = inlined_call_operand.vmem [shape: f32[1,512], index: 2, kind: input, shape index: {}]   ;;  %s695_s3 = inlined_call_operand.vmem [shape: f32[64,512], index: 3, kind: output, shape index: {}]  }
   0x1   :  { %s16_s13 = sshll.u32 %s477_s12, 4  ;;  %s453_s16 = scalar_lea.hbm %s693_s1, 8192  ;;  %s17_s13 = int_to_ptr.vmem [resolvable:$true] %s16_s13 }
   0x2   :  { %p454_p0 = scmp.ne.s32.totalorder %s693_s1, %s453_s16  ;;  %p457_p1 = scmp.lt.u32.totalorder %s453_s16, %s693_s1 }
   0x4   :  { %p459_p2 = pnand %p457_p1, %p454_p0 }
   0x6   :  { %462 = shalt.err (!%p459_p2)
}
   0x7   :  { %s463_s21 = scalar_lea.vmem %s17_s13, 8192  ;;  %p468_p4 = scmp.lt.s32.totalorder %s17_s13, %s17_s13 }
   0x8   :  { %p464_p3 = scmp.ne.s32.totalorder %s17_s13, %s463_s21  ;;  %p469_p5 = scmp.lt.s32.totalorder %s463_s21, %s463_s21 }
   0xa   :  { %p470_p6 = por %p469_p5, %p468_p4 }
   0xc   :  { %p471_p7 = pnand %p470_p6, %p464_p3 }
   0xe   :  { %474 = shalt.err (!%p471_p7)
}
   0xf   :  { %s478_s22 = smov 512   ;;  %s479_s23 = smov 32  }
  0x10   :  { %22 = dma.hbm_to_vmem [thread:$0]  %s693_s1, 8192, %s17_s13, [#allocation3], %s478_s22, %s478_s22, %s479_s23  }
  0x11   :  { %475 = dma.done.wait [#allocation3], 8192  }
  0x12   :  { %476 = vsyncadd [#allocation3], 4294959104  ;;  %v480_v0 = vmov 0.0   ;;  %v37_v1 = vld [vmem:[#allocation2 + $0x8] sm:$0xff]  ;;  %v39_v3 = vld [vmem:[#allocation2 + $0x18] sm:$0xff] }
  0x13   :  { %186 = vmatprep.mubr.f32.mxu0 %v480_v0  ;;  %299 = vmatprep.mubr.f32.mxu1 %v480_v0  ;;  %v41_v2 = vld [vmem:[#allocation2 + $0x28] sm:$0xff]  ;;  %v43_v5 = vld [vmem:[#allocation2 + $0x38] sm:$0xff]  ;;  %v36_v6 = vld [vmem:[#allocation2] sm:$0xff] }
  0x14   :  { %v385_v4 = vpack.c.bf16 %v41_v2, %v37_v1  ;;  %v40_v7 = vld [vmem:[#allocation2 + $0x20] sm:$0xff]  ;;  %v417_v8 = vpack.c.bf16 %v43_v5, %v39_v3  ;;  %v38_v10 = vld [vmem:[#allocation2 + $0x10] sm:$0xff]  ;;  %v45_v12 = vld [vmem:[#allocation2 + $0x48] sm:$0xff] }
  0x15   :  { %v387_v9 = vpack.c.bf16 %v40_v7, %v36_v6  ;;  %v42_v11 = vld [vmem:[#allocation2 + $0x30] sm:$0xff]  ;;  %v49_v14 = vld [vmem:[#allocation2 + $0x68] sm:$0xff]  ;;  %v47_v15 = vld [vmem:[#allocation2 + $0x58] sm:$0xff] }
  0x16   :  { %386 = vmatprep.subr.bf16.mxu0 %v385_v4  ;;  %v419_v13 = vpack.c.bf16 %v42_v11, %v38_v10  ;;  %v51_v16 = vld [vmem:[#allocation2 + $0x78] sm:$0xff]  ;;  %418 = vmatprep.subr.bf16.mxu1 %v417_v8  ;;  %v389_v17 = vpack.c.bf16 %v49_v14, %v45_v12  ;;  %v44_v19 = vld [vmem:[#allocation2 + $0x40] sm:$0xff]  ;;  %v46_v21 = vld [vmem:[#allocation2 + $0x50] sm:$0xff] }
  0x17   :  { %388 = vmatpush1.bf16.msra.mxu0 %v387_v9  ;;  %v421_v18 = vpack.c.bf16 %v51_v16, %v47_v15  ;;  %v48_v20 = vld [vmem:[#allocation2 + $0x60] sm:$0xff]  ;;  %v50_v23 = vld [vmem:[#allocation2 + $0x70] sm:$0xff]  ;;  %v53_v24 = vld [vmem:[#allocation2 + $0x88] sm:$0xff] }
  0x18   :  { %420 = vmatpush1.bf16.msra.mxu1 %v419_v13  ;;  %v391_v22 = vpack.c.bf16 %v48_v20, %v44_v19  ;;  %v57_v25 = vld [vmem:[#allocation2 + $0xa8] sm:$0xff]  ;;  %390 = vmatprep.subr.bf16.mxu0 %v389_v17  ;;  %v423_v26 = vpack.c.bf16 %v50_v23, %v46_v21  ;;  %v55_v28 = vld [vmem:[#allocation2 + $0x98] sm:$0xff]  ;;  %v52_v30 = vld [vmem:[#allocation2 + $0x80] sm:$0xff] }
  0x19   :  { %422 = vmatprep.subr.bf16.mxu1 %v421_v18  ;;  %v393_v27 = vpack.c.bf16 %v57_v25, %v53_v24  ;;  %v59_v29 = vld [vmem:[#allocation2 + $0xb8] sm:$0xff]  ;;  %v56_v32 = vld [vmem:[#allocation2 + $0xa0] sm:$0xff]  ;;  %v54_v33 = vld [vmem:[#allocation2 + $0x90] sm:$0xff] }
  0x1a   :  { %v425_v31 = vpack.c.bf16 %v59_v29, %v55_v28  ;;  %v58_v34 = vld [vmem:[#allocation2 + $0xb0] sm:$0xff]  ;;  %v395_v35 = vpack.c.bf16 %v56_v32, %v52_v30  ;;  %v61_v36 = vld [vmem:[#allocation2 + $0xc8] sm:$0xff]  ;;  %v63_v38 = vld [vmem:[#allocation2 + $0xd8] sm:$0xff] }
  0x1b   :  { %392 = vmatpush1.bf16.msra.mxu0 %v391_v22  ;;  %v65_v37 = vld [vmem:[#allocation2 + $0xe8] sm:$0xff]  ;;  %v427_v39 = vpack.c.bf16 %v58_v34, %v54_v33  ;;  %v67_v41 = vld [vmem:[#allocation2 + $0xf8] sm:$0xff]  ;;  %v60_v42 = vld [vmem:[#allocation2 + $0xc0] sm:$0xff] }
  0x1c   :  { %424 = vmatpush1.bf16.msra.mxu1 %v423_v26  ;;  %394 = vmatprep.subr.bf16.mxu0 %v393_v27  ;;  %v397_v40 = vpack.c.bf16 %v65_v37, %v61_v36  ;;  %v64_v43 = vld [vmem:[#allocation2 + $0xe0] sm:$0xff]  ;;  %v429_v44 = vpack.c.bf16 %v67_v41, %v63_v38  ;;  %v62_v45 = vld [vmem:[#allocation2 + $0xd0] sm:$0xff]  ;;  %v69_v47 = vld [vmem:[#allocation2 + $0x108] sm:$0xff] }
  0x1d   :  { %426 = vmatprep.subr.bf16.mxu1 %v425_v31  ;;  %v66_v46 = vld [vmem:[#allocation2 + $0xf0] sm:$0xff]  ;;  %v73_v48 = vld [vmem:[#allocation2 + $0x128] sm:$0xff]  ;;  %v71_v49 = vld [vmem:[#allocation2 + $0x118] sm:$0xff]  ;;  %v399_v51 = vpack.c.bf16 %v64_v43, %v60_v42  ;;  %v102_v42 = vlaneseq }
  0x1e   :  { %v75_v50 = vld [vmem:[#allocation2 + $0x138] sm:$0xff]  ;;  %v431_v52 = vpack.c.bf16 %v66_v46, %v62_v45  ;;  %v401_v53 = vpack.c.bf16 %v73_v48, %v69_v47  ;;  %v68_v54 = vld [vmem:[#allocation2 + $0x100] sm:$0xff]  ;;  %v70_v56 = vld [vmem:[#allocation2 + $0x110] sm:$0xff] }
  0x1f   :  { %396 = vmatpush1.bf16.msra.mxu0 %v395_v35  ;;  %v72_v55 = vld [vmem:[#allocation2 + $0x120] sm:$0xff]  ;;  %v433_v57 = vpack.c.bf16 %v75_v50, %v71_v49  ;;  %v74_v58 = vld [vmem:[#allocation2 + $0x130] sm:$0xff]  ;;  %v77_v59 = vld [vmem:[#allocation2 + $0x148] sm:$0xff]  ;;  %v103_v43 = vshrl.u32 %v102_v42, 7 }
  0x20   :  { %428 = vmatpush1.bf16.msra.mxu1 %v427_v39  ;;  %398 = vmatprep.subr.bf16.mxu0 %v397_v40  ;;  %v81_v60 = vld [vmem:[#allocation2 + $0x168] sm:$0xff]  ;;  %v79_v61 = vld [vmem:[#allocation2 + $0x158] sm:$0xff]  ;;  %v403_v63 = vpack.c.bf16 %v72_v55, %v68_v54  ;;  %v435_v1 = vpack.c.bf16 %v74_v58, %v70_v56  ;;  %v76_v3 = vld [vmem:[#allocation2 + $0x140] sm:$0xff] }
  0x21   :  { %430 = vmatprep.subr.bf16.mxu1 %v429_v44  ;;  %v83_v62 = vld [vmem:[#allocation2 + $0x178] sm:$0xff]  ;;  %v405_v2 = vpack.c.bf16 %v81_v60, %v77_v59  ;;  %v80_v4 = vld [vmem:[#allocation2 + $0x160] sm:$0xff]  ;;  %v78_v5 = vld [vmem:[#allocation2 + $0x150] sm:$0xff]  ;;  %v104_v44 = vsub.s32 0, %v103_v43  ;;  %v112_v46 = vsub.s32 2, %v103_v43  ;;  %v108_v47 = vsub.s32 1, %v103_v43 }
  0x22   :  { %v437_v6 = vpack.c.bf16 %v83_v62, %v79_v61  ;;  %v82_v7 = vld [vmem:[#allocation2 + $0x170] sm:$0xff]  ;;  %v85_v8 = vld [vmem:[#allocation2 + $0x188] sm:$0xff]  ;;  %v87_v10 = vld [vmem:[#allocation2 + $0x198] sm:$0xff]  ;;  %v407_v12 = vpack.c.bf16 %v80_v4, %v76_v3  ;;  %v116_v48 = vsub.s32 3, %v103_v43 }
  0x23   :  { %400 = vmatpush1.bf16.msra.mxu0 %v399_v51  ;;  %v89_v9 = vld [vmem:[#allocation2 + $0x1a8] sm:$0xff]  ;;  %v91_v11 = vld [vmem:[#allocation2 + $0x1b8] sm:$0xff]  ;;  %v439_v13 = vpack.c.bf16 %v82_v7, %v78_v5  ;;  %v84_v15 = vld [vmem:[#allocation2 + $0x180] sm:$0xff] }
  0x24   :  { %432 = vmatpush1.bf16.msra.mxu1 %v431_v52  ;;  %402 = vmatprep.subr.bf16.mxu0 %v401_v53  ;;  %v409_v14 = vpack.c.bf16 %v89_v9, %v85_v8  ;;  %v88_v16 = vld [vmem:[#allocation2 + $0x1a0] sm:$0xff]  ;;  %v86_v17 = vld [vmem:[#allocation2 + $0x190] sm:$0xff]  ;;  %v441_v18 = vpack.c.bf16 %v91_v11, %v87_v10  ;;  %v93_v20 = vld [vmem:[#allocation2 + $0x1c8] sm:$0xff] }
  0x25   :  { %434 = vmatprep.subr.bf16.mxu1 %v433_v57  ;;  %v90_v19 = vld [vmem:[#allocation2 + $0x1b0] sm:$0xff]  ;;  %v97_v21 = vld [vmem:[#allocation2 + $0x1e8] sm:$0xff]  ;;  %v95_v22 = vld [vmem:[#allocation2 + $0x1d8] sm:$0xff]  ;;  %v411_v24 = vpack.c.bf16 %v88_v16, %v84_v15 }
  0x26   :  { %v99_v23 = vld [vmem:[#allocation2 + $0x1f8] sm:$0xff]  ;;  %v443_v25 = vpack.c.bf16 %v90_v19, %v86_v17  ;;  %v413_v26 = vpack.c.bf16 %v97_v21, %v93_v20  ;;  %v92_v27 = vld [vmem:[#allocation2 + $0x1c0] sm:$0xff]  ;;  %v94_v30 = vld [vmem:[#allocation2 + $0x1d0] sm:$0xff] }
  0x27   :  { %404 = vmatpush1.bf16.msra.mxu0 %v403_v63  ;;  %v96_v28 = vld [vmem:[#allocation2 + $0x1e0] sm:$0xff]  ;;  %v445_v29 = vpack.c.bf16 %v99_v23, %v95_v22  ;;  %v98_v31 = vld [vmem:[#allocation2 + $0x1f0] sm:$0xff]  ;;  %v29_v35 = vld [vmem:[%s692_s0 + $0x8] sm:$0xff] }
  0x28   :  { %436 = vmatpush1.bf16.msra.mxu1 %v435_v1  ;;  %406 = vmatprep.subr.bf16.mxu0 %v405_v2  ;;  %v415_v32 = vpack.c.bf16 %v96_v28, %v92_v27  ;;  %v447_v33 = vpack.c.bf16 %v98_v31, %v94_v30  ;;  %v28_v34 = vld [vmem:[%s692_s0] sm:$0xff]  ;;  %v30_v36 = vld [vmem:[%s692_s0 + $0x10] sm:$0xff]  ;;  %v31_v37 = vld [vmem:[%s692_s0 + $0x18] sm:$0xff] }
  0x29   :  { %438 = vmatprep.subr.bf16.mxu1 %v437_v6  ;;  %v32_v38 = vld [vmem:[%s692_s0 + $0x20] sm:$0xff]  ;;  %v33_v39 = vld [vmem:[%s692_s0 + $0x28] sm:$0xff]  ;;  %v34_v40 = vld [vmem:[%s692_s0 + $0x30] sm:$0xff] }
  0x2a   :  { %v35_v41 = vld [vmem:[%s692_s0 + $0x38] sm:$0xff]  ;;  %v100_v45 = vld [vmem:[%s694_s2] sm:$0xf] }
  0x2b   :  { %408 = vmatpush1.bf16.msra.mxu0 %v407_v12  ;;  %v556_v49 = vrot.slane %v100_v45, %v104_v44  ;;  %v558_v50 = vrot.slane %v100_v45, %v112_v46  ;;  %v560_v51 = vrot.slane %v100_v45, %v108_v47  ;;  %v562_v52 = vrot.slane %v100_v45, %v116_v48 }
  0x2c   :  { %440 = vmatpush1.bf16.msra.mxu1 %v439_v13  ;;  %410 = vmatprep.subr.bf16.mxu0 %v409_v14 }
  0x2d   :  { %442 = vmatprep.subr.bf16.mxu1 %v441_v18 }
  0x2f   :  { %412 = vmatpush1.bf16.msra.mxu0 %v411_v24 }
  0x30   :  { %444 = vmatpush1.bf16.msra.mxu1 %v443_v25  ;;  %414 = vmatprep.subr.bf16.mxu0 %v413_v26 }
  0x31   :  { %446 = vmatprep.subr.bf16.mxu1 %v445_v29 }
  0x33   :  { %416 = vmatpush1.bf16.msra.mxu0 %v415_v32 }
  0x34   :  { %448 = vmatpush1.bf16.msra.mxu1 %v447_v33 }
  0x36   :  { %187 = vmatmul.mubr.f32.vlgmr.msra.gmra.mrb[0].mxu0 %v28_v34 }
  0x37   :  { %300 = vmatmul.mubr.f32.vlgmr.msra.gmra.mrb[0].mxu1 %v28_v34  ;;  %192 = vmatprep.mubr.f32.mxu0 %v480_v0 }
  0x38   :  { %305 = vmatprep.mubr.f32.mxu1 %v480_v0 }
  0x3a   :  { %193 = vmatmul.mubr.f32.gmra.mrb[2].mxu0 %v29_v35 }
  0x3b   :  { %306 = vmatmul.mubr.f32.gmra.mrb[2].mxu1 %v29_v35  ;;  %198 = vmatprep.mubr.f32.mxu0 %v480_v0 }
  0x3c   :  { %311 = vmatprep.mubr.f32.mxu1 %v480_v0 }
  0x3e   :  { %199 = vmatmul.mubr.f32.gmra.mrb[4].mxu0 %v30_v36 }
  0x3f   :  { %312 = vmatmul.mubr.f32.gmra.mrb[4].mxu1 %v30_v36  ;;  %204 = vmatprep.mubr.f32.mxu0 %v480_v0 }
  0x40   :  { %317 = vmatprep.mubr.f32.mxu1 %v480_v0 }
  0x42   :  { %205 = vmatmul.mubr.f32.gmra.mrb[6].mxu0 %v31_v37 }
  0x43   :  { %318 = vmatmul.mubr.f32.gmra.mrb[6].mxu1 %v31_v37  ;;  %210 = vmatprep.mubr.f32.mxu0 %v480_v0 }
  0x44   :  { %323 = vmatprep.mubr.f32.mxu1 %v480_v0 }
  0x46   :  { %211 = vmatmul.mubr.f32.gmra.mrb[8].mxu0 %v32_v38 }
  0x47   :  { %324 = vmatmul.mubr.f32.gmra.mrb[8].mxu1 %v32_v38  ;;  %216 = vmatprep.mubr.f32.mxu0 %v480_v0 }
  0x48   :  { %329 = vmatprep.mubr.f32.mxu1 %v480_v0 }
  0x4a   :  { %217 = vmatmul.mubr.f32.gmra.mrb[10].mxu0 %v33_v39 }
  0x4b   :  { %330 = vmatmul.mubr.f32.gmra.mrb[10].mxu1 %v33_v39  ;;  %222 = vmatprep.mubr.f32.mxu0 %v480_v0 }
  0x4c   :  { %335 = vmatprep.mubr.f32.mxu1 %v480_v0 }
  0x4e   :  { %223 = vmatmul.mubr.f32.gmra.mrb[12].mxu0 %v34_v40 }
  0x4f   :  { %336 = vmatmul.mubr.f32.gmra.mrb[12].mxu1 %v34_v40  ;;  %228 = vmatprep.mubr.f32.mxu0 %v480_v0 }
  0x50   :  { %341 = vmatprep.mubr.f32.mxu1 %v480_v0 }
  0x52   :  { %229 = vmatmul.mubr.f32.gmra.mrb[14].mxu0 %v35_v41 }
  0x53   :  { %342 = vmatmul.mubr.f32.gmra.mrb[14].mxu1 %v35_v41 }
 0x109   :  { %v188_v0 = vpop.f32.mrb[0].mxu0 }
 0x10a   :  { %v189_v53 = vadd.f32 %v188_v0, %v556_v49  ;;  %v301_v54 = vpop.f32.mrb[0].mxu1  ;;  %v190_v55 = vpop.f32.mrb[1].mxu0 }
 0x10b   :  { %v302_v56 = vadd.f32 %v301_v54, %v558_v50  ;;  %v191_v57 = vadd.f32 %v190_v55, %v560_v51  ;;  %v303_v58 = vpop.f32.mrb[1].mxu1 }
 0x10c   :  { %348 = vst [vmem:[%s695_s3] sm:$0xff] %v189_v53  ;;  %v304_v59 = vadd.f32 %v303_v58, %v562_v52 }
 0x10d   :  { %350 = vst [vmem:[%s695_s3 + $0x10] sm:$0xff] %v302_v56  ;;  %349 = vst [vmem:[%s695_s3 + $0x8] sm:$0xff] %v191_v57  ;;  %v194_v60 = vpop.f32.mrb[2].mxu0 }
 0x10e   :  { %351 = vst [vmem:[%s695_s3 + $0x18] sm:$0xff] %v304_v59  ;;  %v195_v61 = vadd.f32 %v194_v60, %v556_v49  ;;  %v307_v62 = vpop.f32.mrb[2].mxu1  ;;  %v196_v63 = vpop.f32.mrb[3].mxu0 }
 0x10f   :  { %v308_v1 = vadd.f32 %v307_v62, %v558_v50  ;;  %v197_v2 = vadd.f32 %v196_v63, %v560_v51  ;;  %v309_v3 = vpop.f32.mrb[3].mxu1 }
 0x110   :  { %352 = vst [vmem:[%s695_s3 + $0x20] sm:$0xff] %v195_v61  ;;  %v310_v4 = vadd.f32 %v309_v3, %v562_v52 }
 0x111   :  { %354 = vst [vmem:[%s695_s3 + $0x30] sm:$0xff] %v308_v1  ;;  %353 = vst [vmem:[%s695_s3 + $0x28] sm:$0xff] %v197_v2  ;;  %v200_v5 = vpop.f32.mrb[4].mxu0 }
 0x112   :  { %355 = vst [vmem:[%s695_s3 + $0x38] sm:$0xff] %v310_v4  ;;  %v201_v6 = vadd.f32 %v200_v5, %v556_v49  ;;  %v313_v7 = vpop.f32.mrb[4].mxu1  ;;  %v202_v8 = vpop.f32.mrb[5].mxu0 }
 0x113   :  { %v314_v9 = vadd.f32 %v313_v7, %v558_v50  ;;  %v203_v10 = vadd.f32 %v202_v8, %v560_v51  ;;  %v315_v11 = vpop.f32.mrb[5].mxu1 }
 0x114   :  { %356 = vst [vmem:[%s695_s3 + $0x40] sm:$0xff] %v201_v6  ;;  %v316_v12 = vadd.f32 %v315_v11, %v562_v52 }
 0x115   :  { %358 = vst [vmem:[%s695_s3 + $0x50] sm:$0xff] %v314_v9  ;;  %357 = vst [vmem:[%s695_s3 + $0x48] sm:$0xff] %v203_v10  ;;  %v206_v13 = vpop.f32.mrb[6].mxu0 }
 0x116   :  { %359 = vst [vmem:[%s695_s3 + $0x58] sm:$0xff] %v316_v12  ;;  %v207_v14 = vadd.f32 %v206_v13, %v556_v49  ;;  %v319_v15 = vpop.f32.mrb[6].mxu1  ;;  %v208_v16 = vpop.f32.mrb[7].mxu0 }
 0x117   :  { %v320_v17 = vadd.f32 %v319_v15, %v558_v50  ;;  %v209_v18 = vadd.f32 %v208_v16, %v560_v51  ;;  %v321_v19 = vpop.f32.mrb[7].mxu1 }
 0x118   :  { %360 = vst [vmem:[%s695_s3 + $0x60] sm:$0xff] %v207_v14  ;;  %v322_v20 = vadd.f32 %v321_v19, %v562_v52 }
 0x119   :  { %362 = vst [vmem:[%s695_s3 + $0x70] sm:$0xff] %v320_v17  ;;  %361 = vst [vmem:[%s695_s3 + $0x68] sm:$0xff] %v209_v18  ;;  %v212_v21 = vpop.f32.mrb[8].mxu0 }
 0x11a   :  { %363 = vst [vmem:[%s695_s3 + $0x78] sm:$0xff] %v322_v20  ;;  %v213_v22 = vadd.f32 %v212_v21, %v556_v49  ;;  %v325_v23 = vpop.f32.mrb[8].mxu1  ;;  %v214_v24 = vpop.f32.mrb[9].mxu0 }
 0x11b   :  { %v326_v25 = vadd.f32 %v325_v23, %v558_v50  ;;  %v215_v26 = vadd.f32 %v214_v24, %v560_v51  ;;  %v327_v27 = vpop.f32.mrb[9].mxu1 }
 0x11c   :  { %364 = vst [vmem:[%s695_s3 + $0x80] sm:$0xff] %v213_v22  ;;  %v328_v28 = vadd.f32 %v327_v27, %v562_v52 }
 0x11d   :  { %366 = vst [vmem:[%s695_s3 + $0x90] sm:$0xff] %v326_v25  ;;  %365 = vst [vmem:[%s695_s3 + $0x88] sm:$0xff] %v215_v26  ;;  %v218_v29 = vpop.f32.mrb[10].mxu0 }
 0x11e   :  { %367 = vst [vmem:[%s695_s3 + $0x98] sm:$0xff] %v328_v28  ;;  %v219_v30 = vadd.f32 %v218_v29, %v556_v49  ;;  %v331_v31 = vpop.f32.mrb[10].mxu1  ;;  %v220_v32 = vpop.f32.mrb[11].mxu0 }
 0x11f   :  { %v332_v33 = vadd.f32 %v331_v31, %v558_v50  ;;  %v221_v34 = vadd.f32 %v220_v32, %v560_v51  ;;  %v333_v35 = vpop.f32.mrb[11].mxu1 }
 0x120   :  { %368 = vst [vmem:[%s695_s3 + $0xa0] sm:$0xff] %v219_v30  ;;  %v334_v36 = vadd.f32 %v333_v35, %v562_v52 }
 0x121   :  { %370 = vst [vmem:[%s695_s3 + $0xb0] sm:$0xff] %v332_v33  ;;  %369 = vst [vmem:[%s695_s3 + $0xa8] sm:$0xff] %v221_v34  ;;  %v224_v37 = vpop.f32.mrb[12].mxu0 }
 0x122   :  { %371 = vst [vmem:[%s695_s3 + $0xb8] sm:$0xff] %v334_v36  ;;  %v225_v38 = vadd.f32 %v224_v37, %v556_v49  ;;  %v337_v39 = vpop.f32.mrb[12].mxu1  ;;  %v226_v40 = vpop.f32.mrb[13].mxu0 }
 0x123   :  { %v338_v41 = vadd.f32 %v337_v39, %v558_v50  ;;  %v227_v42 = vadd.f32 %v226_v40, %v560_v51  ;;  %v339_v43 = vpop.f32.mrb[13].mxu1 }
 0x124   :  { %372 = vst [vmem:[%s695_s3 + $0xc0] sm:$0xff] %v225_v38  ;;  %v340_v44 = vadd.f32 %v339_v43, %v562_v52 }
 0x125   :  { %374 = vst [vmem:[%s695_s3 + $0xd0] sm:$0xff] %v338_v41  ;;  %373 = vst [vmem:[%s695_s3 + $0xc8] sm:$0xff] %v227_v42  ;;  %v230_v45 = vpop.f32.mrb[14].mxu0 }
 0x126   :  { %375 = vst [vmem:[%s695_s3 + $0xd8] sm:$0xff] %v340_v44  ;;  %v231_v46 = vadd.f32 %v230_v45, %v556_v49  ;;  %v343_v47 = vpop.f32.mrb[14].mxu1  ;;  %v232_v48 = vpop.f32.mrb[15].mxu0 }
 0x127   :  { %v344_v0 = vadd.f32 %v343_v47, %v558_v50  ;;  %v233_v53 = vadd.f32 %v232_v48, %v560_v51  ;;  %v345_v54 = vpop.f32.mrb[15].mxu1 }
 0x128   :  { %376 = vst [vmem:[%s695_s3 + $0xe0] sm:$0xff] %v231_v46  ;;  %v346_v55 = vadd.f32 %v345_v54, %v562_v52 }
 0x129   :  { %378 = vst [vmem:[%s695_s3 + $0xf0] sm:$0xff] %v344_v0  ;;  %377 = vst [vmem:[%s695_s3 + $0xe8] sm:$0xff] %v233_v53 }
 0x12a   :  { %379 = vst [vmem:[%s695_s3 + $0xf8] sm:$0xff] %v346_v55 }
 0x12b   :  { %384 = vsyncpa [#allocation3], 1 }

// kernel: _lambda_.8
= control target key start
LH: loop header
LB: loop body
LE: loop exit
PB: predicated region body
PF: predicated region fallthrough
CT: control target
= control target key end

     0   :  { %v2698_v3 = vmov 0.0   ;;  %s3749_s1 = inlined_call_operand.vmem [shape: f32[128,512], index: 1, kind: input, shape index: {}]   ;;  %s3750_s2 = inlined_call_operand.vmem [shape: f32[8,128], index: 2, kind: input, shape index: {}]   ;;  %s3751_s0 = inlined_call_operand.vmem [shape: f32[8,8,512], index: 0, kind: input, shape index: {}]   ;;  %s3752_s3 = inlined_call_operand.vmem [shape: f32[8,128], index: 3, kind: input, shape index: {}]   ;;  %s3753_s4 = inlined_call_operand.vmem [shape: f32[8,8,128], index: 4, kind: output, shape index: {0}]   ;;  %s3754_s6 = inlined_call_operand.vmem [shape: f32[8,128], index: 6, kind: output, shape index: {2}]   ;;  %s3755_s5 = inlined_call_operand.vmem [shape: f32[8,128], index: 5, kind: output, shape index: {1}]  }
   0x1   :  { %v35_v0 = vld [vmem:[%s3749_s1 + $0x8] sm:$0xff]  ;;  %v34_v2 = vld [vmem:[%s3749_s1] sm:$0xff]  ;;  %162 = vmatprep.mubr.f32.mxu0 %v2698_v3  ;;  %233 = vmatprep.mubr.f32.mxu1 %v2698_v3  ;;  %v37_v19 = vld [vmem:[%s3749_s1 + $0x18] sm:$0xff] }
   0x2   :  { %v39_v1 = vld [vmem:[%s3749_s1 + $0x28] sm:$0xff]  ;;  %v38_v5 = vld [vmem:[%s3749_s1 + $0x20] sm:$0xff]  ;;  %v41_v20 = vld [vmem:[%s3749_s1 + $0x38] sm:$0xff] }
   0x3   :  { %v2745_v4 = vpack.c.bf16 %v39_v1, %v35_v0  ;;  %v43_v6 = vld [vmem:[%s3749_s1 + $0x48] sm:$0xff]  ;;  %v2756_v8 = vpack.c.bf16 %v38_v5, %v34_v2  ;;  %v42_v10 = vld [vmem:[%s3749_s1 + $0x40] sm:$0xff]  ;;  %v2797_v22 = vpack.c.bf16 %v41_v20, %v37_v19  ;;  %v36_v23 = vld [vmem:[%s3749_s1 + $0x10] sm:$0xff] }
   0x4   :  { %v47_v7 = vld [vmem:[%s3749_s1 + $0x68] sm:$0xff]  ;;  %v46_v11 = vld [vmem:[%s3749_s1 + $0x60] sm:$0xff]  ;;  %v40_v24 = vld [vmem:[%s3749_s1 + $0x30] sm:$0xff] }
   0x5   :  { %v2758_v9 = vpack.c.bf16 %v47_v7, %v43_v6  ;;  %v51_v12 = vld [vmem:[%s3749_s1 + $0x88] sm:$0xff]  ;;  %2058 = vmatprep.subr.bf16.mxu0 %v2745_v4  ;;  %v2774_v14 = vpack.c.bf16 %v46_v11, %v42_v10  ;;  %v50_v15 = vld [vmem:[%s3749_s1 + $0x80] sm:$0xff]  ;;  %v2805_v25 = vpack.c.bf16 %v40_v24, %v36_v23  ;;  %2090 = vmatprep.subr.bf16.mxu1 %v2797_v22  ;;  %v45_v27 = vld [vmem:[%s3749_s1 + $0x58] sm:$0xff] }
   0x6   :  { %v55_v13 = vld [vmem:[%s3749_s1 + $0xa8] sm:$0xff]  ;;  %2060 = vmatpush1.bf16.msra.mxu0 %v2756_v8  ;;  %v54_v16 = vld [vmem:[%s3749_s1 + $0xa0] sm:$0xff]  ;;  %v49_v28 = vld [vmem:[%s3749_s1 + $0x78] sm:$0xff] }
   0x7   :  { %2062 = vmatprep.subr.bf16.mxu0 %v2758_v9  ;;  %v2783_v17 = vpack.c.bf16 %v55_v13, %v51_v12  ;;  %v59_v18 = vld [vmem:[%s3749_s1 + $0xc8] sm:$0xff]  ;;  %v2808_v26 = vpack.c.bf16 %v54_v16, %v50_v15  ;;  %v44_v29 = vld [vmem:[%s3749_s1 + $0x50] sm:$0xff]  ;;  %v58_v31 = vld [vmem:[%s3749_s1 + $0xc0] sm:$0xff]  ;;  %2092 = vmatpush1.bf16.msra.mxu1 %v2805_v25  ;;  %v2830_v33 = vpack.c.bf16 %v49_v28, %v45_v27 }
   0x8   :  { %v63_v21 = vld [vmem:[%s3749_s1 + $0xe8] sm:$0xff]  ;;  %v62_v32 = vld [vmem:[%s3749_s1 + $0xe0] sm:$0xff]  ;;  %v48_v34 = vld [vmem:[%s3749_s1 + $0x70] sm:$0xff] }
   0x9   :  { %v2821_v30 = vpack.c.bf16 %v63_v21, %v59_v18  ;;  %v67_v35 = vld [vmem:[%s3749_s1 + $0x108] sm:$0xff]  ;;  %v2841_v37 = vpack.c.bf16 %v48_v34, %v44_v29  ;;  %v53_v38 = vld [vmem:[%s3749_s1 + $0x98] sm:$0xff]  ;;  %2094 = vmatprep.subr.bf16.mxu1 %v2830_v33  ;;  %v52_v40 = vld [vmem:[%s3749_s1 + $0x90] sm:$0xff]  ;;  %v2857_v42 = vpack.c.bf16 %v62_v32, %v58_v31 }
   0xa   :  { %2064 = vmatpush1.bf16.msra.mxu0 %v2774_v14  ;;  %v71_v36 = vld [vmem:[%s3749_s1 + $0x128] sm:$0xff]  ;;  %v57_v39 = vld [vmem:[%s3749_s1 + $0xb8] sm:$0xff]  ;;  %v56_v41 = vld [vmem:[%s3749_s1 + $0xb0] sm:$0xff] }
   0xb   :  { %2066 = vmatprep.subr.bf16.mxu0 %v2783_v17  ;;  %v66_v43 = vld [vmem:[%s3749_s1 + $0x100] sm:$0xff]  ;;  %v2865_v45 = vpack.c.bf16 %v57_v39, %v53_v38  ;;  %v2868_v46 = vpack.c.bf16 %v71_v36, %v67_v35  ;;  %2096 = vmatpush1.bf16.msra.mxu1 %v2841_v37  ;;  %v75_v47 = vld [vmem:[%s3749_s1 + $0x148] sm:$0xff]  ;;  %v2874_v48 = vpack.c.bf16 %v56_v41, %v52_v40  ;;  %v61_v49 = vld [vmem:[%s3749_s1 + $0xd8] sm:$0xff] }
   0xc   :  { %v70_v44 = vld [vmem:[%s3749_s1 + $0x120] sm:$0xff]  ;;  %v65_v50 = vld [vmem:[%s3749_s1 + $0xf8] sm:$0xff]  ;;  %v79_v51 = vld [vmem:[%s3749_s1 + $0x168] sm:$0xff] }
   0xd   :  { %2098 = vmatprep.subr.bf16.mxu1 %v2865_v45  ;;  %v2886_v52 = vpack.c.bf16 %v65_v50, %v61_v49  ;;  %v60_v53 = vld [vmem:[%s3749_s1 + $0xd0] sm:$0xff]  ;;  %v2895_v55 = vpack.c.bf16 %v70_v44, %v66_v43  ;;  %v69_v56 = vld [vmem:[%s3749_s1 + $0x118] sm:$0xff]  ;;  %v2904_v58 = vpack.c.bf16 %v79_v51, %v75_v47  ;;  %v74_v59 = vld [vmem:[%s3749_s1 + $0x140] sm:$0xff] }
   0xe   :  { %2068 = vmatpush1.bf16.msra.mxu0 %v2808_v26  ;;  %v64_v54 = vld [vmem:[%s3749_s1 + $0xf0] sm:$0xff]  ;;  %v73_v57 = vld [vmem:[%s3749_s1 + $0x138] sm:$0xff]  ;;  %v78_v60 = vld [vmem:[%s3749_s1 + $0x160] sm:$0xff] }
   0xf   :  { %2070 = vmatprep.subr.bf16.mxu0 %v2821_v30  ;;  %2100 = vmatpush1.bf16.msra.mxu1 %v2874_v48  ;;  %v83_v61 = vld [vmem:[%s3749_s1 + $0x188] sm:$0xff]  ;;  %v2916_v62 = vpack.c.bf16 %v64_v54, %v60_v53  ;;  %v2922_v0 = vpack.c.bf16 %v73_v57, %v69_v56  ;;  %v68_v1 = vld [vmem:[%s3749_s1 + $0x110] sm:$0xff]  ;;  %v77_v5 = vld [vmem:[%s3749_s1 + $0x158] sm:$0xff]  ;;  %v2937_v7 = vpack.c.bf16 %v78_v60, %v74_v59 }
  0x10   :  { %v87_v63 = vld [vmem:[%s3749_s1 + $0x1a8] sm:$0xff]  ;;  %2102 = vmatprep.subr.bf16.mxu1 %v2886_v52  ;;  %v72_v2 = vld [vmem:[%s3749_s1 + $0x130] sm:$0xff]  ;;  %v81_v6 = vld [vmem:[%s3749_s1 + $0x178] sm:$0xff] }
  0x11   :  { %v2940_v10 = vpack.c.bf16 %v87_v63, %v83_v61  ;;  %v82_v11 = vld [vmem:[%s3749_s1 + $0x180] sm:$0xff]  ;;  %v91_v13 = vld [vmem:[%s3749_s1 + $0x1c8] sm:$0xff]  ;;  %v2952_v15 = vpack.c.bf16 %v72_v2, %v68_v1  ;;  %v2958_v18 = vpack.c.bf16 %v81_v6, %v77_v5  ;;  %v76_v19 = vld [vmem:[%s3749_s1 + $0x150] sm:$0xff] }
  0x12   :  { %2072 = vmatpush1.bf16.msra.mxu0 %v2857_v42  ;;  %v86_v12 = vld [vmem:[%s3749_s1 + $0x1a0] sm:$0xff]  ;;  %v95_v16 = vld [vmem:[%s3749_s1 + $0x1e8] sm:$0xff]  ;;  %v80_v20 = vld [vmem:[%s3749_s1 + $0x170] sm:$0xff] }
  0x13   :  { %2074 = vmatprep.subr.bf16.mxu0 %v2868_v46  ;;  %2104 = vmatpush1.bf16.msra.mxu1 %v2916_v62  ;;  %v85_v21 = vld [vmem:[%s3749_s1 + $0x198] sm:$0xff]  ;;  %v2973_v24 = vpack.c.bf16 %v86_v12, %v82_v11  ;;  %v2976_v27 = vpack.c.bf16 %v95_v16, %v91_v13  ;;  %v90_v28 = vld [vmem:[%s3749_s1 + $0x1c0] sm:$0xff]  ;;  %v2985_v31 = vpack.c.bf16 %v80_v20, %v76_v19  ;;  %v84_v34 = vld [vmem:[%s3749_s1 + $0x190] sm:$0xff] }
  0x14   :  { %2106 = vmatprep.subr.bf16.mxu1 %v2922_v0  ;;  %v89_v23 = vld [vmem:[%s3749_s1 + $0x1b8] sm:$0xff]  ;;  %v94_v29 = vld [vmem:[%s3749_s1 + $0x1e0] sm:$0xff]  ;;  %v88_v35 = vld [vmem:[%s3749_s1 + $0x1b0] sm:$0xff] }
  0x15   :  { %v2988_v32 = vpack.c.bf16 %v89_v23, %v85_v21  ;;  %v93_v36 = vld [vmem:[%s3749_s1 + $0x1d8] sm:$0xff]  ;;  %v3003_v39 = vpack.c.bf16 %v94_v29, %v90_v28  ;;  %v3007_v40 = vpack.c.bf16 %v88_v35, %v84_v34  ;;  %v92_v43 = vld [vmem:[%s3749_s1 + $0x1d0] sm:$0xff]  ;;  %v24_v47 = vld [vmem:[%s3750_s2] sm:$0xff] }
  0x16   :  { %2076 = vmatpush1.bf16.msra.mxu0 %v2895_v55  ;;  %v97_v38 = vld [vmem:[%s3749_s1 + $0x1f8] sm:$0xff]  ;;  %v96_v44 = vld [vmem:[%s3749_s1 + $0x1f0] sm:$0xff]  ;;  %v30_v50 = vld [vmem:[%s3751_s0] sm:$0xff] }
  0x17   :  { %2078 = vmatprep.subr.bf16.mxu0 %v2904_v58  ;;  %2108 = vmatpush1.bf16.msra.mxu1 %v2952_v15  ;;  %v3010_v41 = vpack.c.bf16 %v97_v38, %v93_v36  ;;  %v3023_v49 = vpack.c.bf16 %v96_v44, %v92_v43  ;;  %v31_v51 = vld [vmem:[%s3751_s0 + $0x8] sm:$0xff]  ;;  %v33_v61 = vld [vmem:[%s3751_s0 + $0x18] sm:$0xff]  ;;  %v32_v5 = vld [vmem:[%s3751_s0 + $0x10] sm:$0xff] }
  0x18   :  { %2110 = vmatprep.subr.bf16.mxu1 %v2958_v18  ;;  %v26_v23 = vld [vmem:[%s3752_s3] sm:$0xff] }
  0x1a   :  { %2080 = vmatpush1.bf16.msra.mxu0 %v2937_v7 }
  0x1b   :  { %2082 = vmatprep.subr.bf16.mxu0 %v2940_v10  ;;  %2112 = vmatpush1.bf16.msra.mxu1 %v2985_v31 }
  0x1c   :  { %2114 = vmatprep.subr.bf16.mxu1 %v2988_v32 }
  0x1e   :  { %2084 = vmatpush1.bf16.msra.mxu0 %v2973_v24 }
  0x1f   :  { %2086 = vmatprep.subr.bf16.mxu0 %v2976_v27  ;;  %2116 = vmatpush1.bf16.msra.mxu1 %v3007_v40 }
  0x20   :  { %2118 = vmatprep.subr.bf16.mxu1 %v3010_v41 }
  0x22   :  { %2088 = vmatpush1.bf16.msra.mxu0 %v3003_v39 }
  0x23   :  { %2122 = vmatprep.subr.bf16.mxu0 %v2745_v4  ;;  %2120 = vmatpush1.bf16.msra.mxu1 %v3023_v49 }
  0x24   :  { %2154 = vmatprep.subr.bf16.mxu1 %v2797_v22 }
  0x25   :  { %163 = vmatmul.mubr.f32.vlgmr.msra.gmra.mrb[0].mxu0 %v24_v47 }
  0x26   :  { %2124 = vmatpush1.bf16.msra.mxu0 %v2756_v8  ;;  %406 = vmatprep.mubr.f32.mxu0 %v2698_v3 }
  0x27   :  { %2126 = vmatprep.subr.bf16.mxu0 %v2758_v9  ;;  %234 = vmatmul.mubr.f32.vlgmr.msra.gmra.mrb[0].mxu1 %v24_v47 }
  0x28   :  { %2156 = vmatpush1.bf16.msra.mxu1 %v2805_v25  ;;  %477 = vmatprep.mubr.f32.mxu1 %v2698_v3 }
  0x29   :  { %2158 = vmatprep.subr.bf16.mxu1 %v2830_v33 }
  0x2a   :  { %2128 = vmatpush1.bf16.msra.mxu0 %v2774_v14 }
  0x2b   :  { %2130 = vmatprep.subr.bf16.mxu0 %v2783_v17 }
  0x2c   :  { %2160 = vmatpush1.bf16.msra.mxu1 %v2841_v37 }
  0x2d   :  { %2162 = vmatprep.subr.bf16.mxu1 %v2865_v45 }
  0x2e   :  { %2132 = vmatpush1.bf16.msra.mxu0 %v2808_v26 }
  0x2f   :  { %2134 = vmatprep.subr.bf16.mxu0 %v2821_v30 }
  0x30   :  { %2164 = vmatpush1.bf16.msra.mxu1 %v2874_v48 }
  0x31   :  { %2166 = vmatprep.subr.bf16.mxu1 %v2886_v52 }
  0x32   :  { %2136 = vmatpush1.bf16.msra.mxu0 %v2857_v42 }
  0x33   :  { %2138 = vmatprep.subr.bf16.mxu0 %v2868_v46 }
  0x34   :  { %2168 = vmatpush1.bf16.msra.mxu1 %v2916_v62 }
  0x35   :  { %2170 = vmatprep.subr.bf16.mxu1 %v2922_v0 }
  0x36   :  { %2140 = vmatpush1.bf16.msra.mxu0 %v2895_v55 }
  0x37   :  { %2142 = vmatprep.subr.bf16.mxu0 %v2904_v58 }
  0x38   :  { %2172 = vmatpush1.bf16.msra.mxu1 %v2952_v15 }
  0x39   :  { %2174 = vmatprep.subr.bf16.mxu1 %v2958_v18 }
  0x3a   :  { %2144 = vmatpush1.bf16.msra.mxu0 %v2937_v7 }
  0x3b   :  { %2146 = vmatprep.subr.bf16.mxu0 %v2940_v10 }
  0x3c   :  { %2176 = vmatpush1.bf16.msra.mxu1 %v2985_v31 }
  0x3d   :  { %2178 = vmatprep.subr.bf16.mxu1 %v2988_v32 }
  0x3e   :  { %2148 = vmatpush1.bf16.msra.mxu0 %v2973_v24 }
  0x3f   :  { %2150 = vmatprep.subr.bf16.mxu0 %v2976_v27 }
  0x40   :  { %2180 = vmatpush1.bf16.msra.mxu1 %v3007_v40 }
  0x41   :  { %2182 = vmatprep.subr.bf16.mxu1 %v3010_v41 }
  0x42   :  { %2152 = vmatpush1.bf16.msra.mxu0 %v3003_v39 }
  0x43   :  { %2186 = vmatprep.subr.bf16.mxu0 %v2745_v4 }
  0x44   :  { %2184 = vmatpush1.bf16.msra.mxu1 %v3023_v49 }
  0x45   :  { %2218 = vmatprep.subr.bf16.mxu1 %v2797_v22 }
  0xf8   :  { %v164_v53 = vpop.f32.mrb[0].mxu0 }
  0xf9   :  { %v240_v54 = vadd.f32 %v164_v53, %v30_v50  ;;  %v166_v56 = vpop.f32.mrb[1].mxu0 }
  0xfa   :  { %v241_v57 = vadd.f32 %v166_v56, %v31_v51  ;;  %v235_v63 = vpop.f32.mrb[0].mxu1 }
  0xfb   :  { %v1998_v59 = vmul.f32 -1.442695, %v240_v54  ;;  %v237_v1 = vpop.f32.mrb[1].mxu1  ;;  %v242_v11 = vadd.f32 %v235_v63, %v32_v5 }
  0xfc   :  { %v1999_v60 = vmul.f32 -1.442695, %v241_v57  ;;  %v243_v2 = vadd.f32 %v237_v1, %v33_v61 }
  0xfd   :  { %2570 = vpow2.f32 %v1998_v59 }
  0xfe   :  { %2572 = vpow2.f32 %v1999_v60  ;;  %v2000_v6 = vmul.f32 -1.442695, %v243_v2 }
 0x100   :  { %2574 = vpow2.f32 %v2000_v6  ;;  %v793_v6 = vld [vmem:[%s3749_s1 + $0xc8] sm:$0xff] }
 0x101   :  { %2576 = vtanh.f32 %v242_v11  ;;  %v797_v11 = vld [vmem:[%s3749_s1 + $0xe8] sm:$0xff] }
 0x107   :  { %v2571_v12 = vpop.eup %2570 }
 0x108   :  { %v2573_v13 = vpop.eup %2572  ;;  %v247_v16 = vadd.f32 1.0, %v2571_v12  ;;  %v3205_v12 = vpack.c.bf16 %v797_v11, %v793_v6 }
 0x109   :  { %v253_v19 = vadd.f32 1.0, %v2573_v13  ;;  %v792_v13 = vld [vmem:[%s3749_s1 + $0xc0] sm:$0xff] }
 0x10a   :  { %2578 = vrcp.f32 %v247_v16  ;;  %v2575_v20 = vpop.eup %2574  ;;  %v796_v16 = vld [vmem:[%s3749_s1 + $0xe0] sm:$0xff] }
 0x10b   :  { %2580 = vrcp.f32 %v253_v19  ;;  %v2577_v21 = vpop.eup %2576  ;;  %v260_v29 = vadd.f32 1.0, %v2575_v20  ;;  %v3213_v19 = vpack.c.bf16 %v796_v16, %v792_v13  ;;  %v801_v20 = vld [vmem:[%s3749_s1 + $0x108] sm:$0xff] }
 0x10c   :  { %v1018_v16 = vld [vmem:[%s3749_s1 + $0x28] sm:$0xff] }
 0x10d   :  { %2582 = vrcp.f32 %v260_v29  ;;  %v804_v29 = vld [vmem:[%s3749_s1 + $0x120] sm:$0xff] }
 0x114   :  { %v2579_v28 = vpop.eup %2578 }
 0x115   :  { %v2581_v34 = vpop.eup %2580  ;;  %v264_v35 = vmul.f32 %v2579_v28, %v2577_v21  ;;  %v805_v21 = vld [vmem:[%s3749_s1 + $0x128] sm:$0xff]  ;;  %v800_v28 = vld [vmem:[%s3749_s1 + $0x100] sm:$0xff] }
 0x116   :  { %v263_v36 = vmul.f32 %v2581_v34, %v26_v23  ;;  %v3223_v23 = vpack.c.bf16 %v805_v21, %v801_v20  ;;  %v3231_v34 = vpack.c.bf16 %v804_v29, %v800_v28  ;;  %v1016_v20 = vld [vmem:[%s3749_s1 + $0x18] sm:$0xff]  ;;  %v1015_v29 = vld [vmem:[%s3749_s1 + $0x10] sm:$0xff] }
 0x117   :  { %v2583_v43 = vpop.eup %2582  ;;  %v1020_v28 = vld [vmem:[%s3749_s1 + $0x38] sm:$0xff] }
 0x118   :  { %v3078_v38 = vadd.f32 %v264_v35, %v263_v36  ;;  %v809_v35 = vld [vmem:[%s3749_s1 + $0x148] sm:$0xff] }
 0x119   :  { %v813_v36 = vld [vmem:[%s3749_s1 + $0x168] sm:$0xff] }
 0x11a   :  { %2584 = vtanh.f32 %v3078_v38 }
 0x124   :  { %v2585_v44 = vpop.eup %2584 }
 0x125   :  { %v267_v47 = vmul.f32 %v2585_v44, %v2583_v43  ;;  %v808_v43 = vld [vmem:[%s3749_s1 + $0x140] sm:$0xff] }
 0x126   :  { %v812_v44 = vld [vmem:[%s3749_s1 + $0x160] sm:$0xff] }
 0x127   :  { %270 = vst [vmem:[%s3753_s4] sm:$0xff] %v267_v47  ;;  %407 = vmatmul.mubr.f32.vlgmr.msra.gmra.mrb[2].mxu0 %v267_v47  ;;  %478 = vmatmul.mubr.f32.vlgmr.msra.gmra.mrb[2].mxu1 %v267_v47  ;;  %v3249_v47 = vpack.c.bf16 %v812_v44, %v808_v43  ;;  %v1024_v44 = vld [vmem:[%s3749_s1 + $0x58] sm:$0xff] }
 0x128   :  { %2188 = vmatpush1.bf16.msra.mxu0 %v2756_v8  ;;  %2220 = vmatpush1.bf16.msra.mxu1 %v2805_v25  ;;  %v2001_v8 = vld [vmem:[%s3751_s0 + $0x20] sm:$0xff] }
 0x129   :  { %2190 = vmatprep.subr.bf16.mxu0 %v2758_v9  ;;  %2222 = vmatprep.subr.bf16.mxu1 %v2830_v33  ;;  %v2002_v9 = vld [vmem:[%s3751_s0 + $0x28] sm:$0xff] }
 0x12a   :  { %651 = vmatprep.mubr.f32.mxu0 %v2698_v3  ;;  %722 = vmatprep.mubr.f32.mxu1 %v2698_v3 }
 0x12c   :  { %2192 = vmatpush1.bf16.msra.mxu0 %v2774_v14  ;;  %2224 = vmatpush1.bf16.msra.mxu1 %v2841_v37 }
 0x12d   :  { %2194 = vmatprep.subr.bf16.mxu0 %v2783_v17  ;;  %2226 = vmatprep.subr.bf16.mxu1 %v2865_v45 }
 0x130   :  { %2196 = vmatpush1.bf16.msra.mxu0 %v2808_v26  ;;  %2228 = vmatpush1.bf16.msra.mxu1 %v2874_v48 }
 0x131   :  { %2198 = vmatprep.subr.bf16.mxu0 %v2821_v30  ;;  %2230 = vmatprep.subr.bf16.mxu1 %v2886_v52 }
 0x134   :  { %2200 = vmatpush1.bf16.msra.mxu0 %v2857_v42  ;;  %2232 = vmatpush1.bf16.msra.mxu1 %v2916_v62 }
 0x135   :  { %2202 = vmatprep.subr.bf16.mxu0 %v2868_v46  ;;  %2234 = vmatprep.subr.bf16.mxu1 %v2922_v0 }
 0x138   :  { %2204 = vmatpush1.bf16.msra.mxu0 %v2895_v55  ;;  %2236 = vmatpush1.bf16.msra.mxu1 %v2952_v15 }
 0x139   :  { %2206 = vmatprep.subr.bf16.mxu0 %v2904_v58  ;;  %2238 = vmatprep.subr.bf16.mxu1 %v2958_v18 }
 0x13c   :  { %2208 = vmatpush1.bf16.msra.mxu0 %v2937_v7  ;;  %2240 = vmatpush1.bf16.msra.mxu1 %v2985_v31  ;;  %v2003_v7 = vld [vmem:[%s3751_s0 + $0x30] sm:$0xff] }
 0x13d   :  { %2210 = vmatprep.subr.bf16.mxu0 %v2940_v10  ;;  %2242 = vmatprep.subr.bf16.mxu1 %v2988_v32 }
 0x140   :  { %2212 = vmatpush1.bf16.msra.mxu0 %v2973_v24  ;;  %2244 = vmatpush1.bf16.msra.mxu1 %v3007_v40 }
 0x141   :  { %2214 = vmatprep.subr.bf16.mxu0 %v2976_v27  ;;  %2246 = vmatprep.subr.bf16.mxu1 %v3010_v41 }
 0x144   :  { %2216 = vmatpush1.bf16.msra.mxu0 %v3003_v39  ;;  %2248 = vmatpush1.bf16.msra.mxu1 %v3023_v49 }
 0x145   :  { %2250 = vmatprep.subr.bf16.mxu0 %v2745_v4  ;;  %2282 = vmatprep.subr.bf16.mxu1 %v2797_v22  ;;  %v2004_v4 = vld [vmem:[%s3751_s0 + $0x38] sm:$0xff] }
 0x1fa   :  { %v408_v14 = vpop.f32.mrb[2].mxu0  ;;  %v479_v17 = vpop.f32.mrb[2].mxu1 }
 0x1fb   :  { %v484_v26 = vadd.f32 %v2001_v8, %v408_v14  ;;  %v410_v30 = vpop.f32.mrb[3].mxu0  ;;  %v481_v42 = vpop.f32.mrb[3].mxu1  ;;  %v486_v24 = vadd.f32 %v2003_v7, %v479_v17  ;;  %v817_v8 = vld [vmem:[%s3749_s1 + $0x188] sm:$0xff]  ;;  %v816_v17 = vld [vmem:[%s3749_s1 + $0x180] sm:$0xff] }
 0x1fc   :  { %v485_v46 = vadd.f32 %v2002_v9, %v410_v30  ;;  %v487_v22 = vadd.f32 %v2004_v4, %v481_v42  ;;  %v821_v9 = vld [vmem:[%s3749_s1 + $0x1a8] sm:$0xff]  ;;  %v828_v4 = vld [vmem:[%s3749_s1 + $0x1e0] sm:$0xff] }
 0x1fd   :  { %v2005_v55 = vmul.f32 -1.442695, %v484_v26  ;;  %v3259_v14 = vpack.c.bf16 %v821_v9, %v817_v8  ;;  %v820_v26 = vld [vmem:[%s3749_s1 + $0x1a0] sm:$0xff]  ;;  %v825_v42 = vld [vmem:[%s3749_s1 + $0x1c8] sm:$0xff]  ;;  %v1028_v8 = vld [vmem:[%s3749_s1 + $0x78] sm:$0xff] }
 0x1fe   :  { %v2006_v58 = vmul.f32 -1.442695, %v485_v46  ;;  %v2007_v10 = vmul.f32 -1.442695, %v487_v22  ;;  %v3267_v30 = vpack.c.bf16 %v820_v26, %v816_v17  ;;  %v829_v46 = vld [vmem:[%s3749_s1 + $0x1e8] sm:$0xff]  ;;  %v2009_v7 = vld [vmem:[%s3751_s0 + $0x40] sm:$0xff]  ;;  %v3345_v9 = vpack.c.bf16 %v1028_v8, %v1024_v44 }
 0x1ff   :  { %2586 = vpow2.f32 %v2005_v55  ;;  %v3277_v55 = vpack.c.bf16 %v829_v46, %v825_v42  ;;  %v1023_v17 = vld [vmem:[%s3749_s1 + $0x50] sm:$0xff]  ;;  %v1032_v46 = vld [vmem:[%s3749_s1 + $0x98] sm:$0xff] }
 0x200   :  { %2588 = vpow2.f32 %v2006_v58  ;;  %v824_v58 = vld [vmem:[%s3749_s1 + $0x1c0] sm:$0xff]  ;;  %v1027_v26 = vld [vmem:[%s3749_s1 + $0x70] sm:$0xff] }
 0x201   :  { %2590 = vpow2.f32 %v2007_v10  ;;  %v3285_v22 = vpack.c.bf16 %v828_v4, %v824_v58  ;;  %v2010_v10 = vld [vmem:[%s3751_s0 + $0x48] sm:$0xff]  ;;  %v3353_v42 = vpack.c.bf16 %v1027_v26, %v1023_v17  ;;  %v1036_v58 = vld [vmem:[%s3749_s1 + $0xb8] sm:$0xff] }
 0x202   :  { %2592 = vtanh.f32 %v486_v24  ;;  %v3365_v4 = vpack.c.bf16 %v1036_v58, %v1032_v46 }
 0x209   :  { %v2587_v27 = vpop.eup %2586 }
 0x20a   :  { %v2589_v39 = vpop.eup %2588  ;;  %v491_v50 = vadd.f32 1.0, %v2587_v27 }
 0x20b   :  { %v497_v51 = vadd.f32 1.0, %v2589_v39  ;;  %v2591_v53 = vpop.eup %2590 }
 0x20c   :  { %2594 = vrcp.f32 %v491_v50  ;;  %v2593_v54 = vpop.eup %2592  ;;  %v504_v60 = vadd.f32 1.0, %v2591_v53 }
 0x20d   :  { %2596 = vrcp.f32 %v497_v51 }
 0x20e   :  { %2598 = vrcp.f32 %v504_v60  ;;  %v2011_v60 = vld [vmem:[%s3751_s0 + $0x50] sm:$0xff] }
 0x216   :  { %v2595_v56 = vpop.eup %2594 }
 0x217   :  { %v2597_v57 = vpop.eup %2596  ;;  %v508_v59 = vmul.f32 %v2595_v56, %v2593_v54 }
 0x218   :  { %v507_v61 = vmul.f32 %v2597_v57, %v3078_v38  ;;  %v2599_v1 = vpop.eup %2598  ;;  %v3241_v38 = vpack.c.bf16 %v813_v36, %v809_v35  ;;  %v2012_v57 = vld [vmem:[%s3751_s0 + $0x58] sm:$0xff]  ;;  %v1019_v35 = vld [vmem:[%s3749_s1 + $0x30] sm:$0xff]  ;;  %v3330_v36 = vpack.c.bf16 %v1020_v28, %v1016_v20 }
 0x219   :  { %v3332_v43 = vpack.c.bf16 %v1019_v35, %v1015_v29  ;;  %v1075_v20 = vld [vmem:[%s3749_s1 + $0x1f0] sm:$0xff]  ;;  %v2017_v29 = vld [vmem:[%s3751_s0 + $0x60] sm:$0xff]  ;;  %v2018_v35 = vld [vmem:[%s3751_s0 + $0x68] sm:$0xff] }
 0x21a   :  { %v3131_v63 = vadd.f32 %v508_v59, %v507_v61 }
 0x21c   :  { %2600 = vtanh.f32 %v3131_v63 }
 0x226   :  { %v2601_v2 = vpop.eup %2600 }
 0x227   :  { %v511_v5 = vmul.f32 %v2601_v2, %v2599_v1 }
 0x229   :  { %2008 = vst [vmem:[%s3753_s4 + $0x8] sm:$0xff] %v511_v5  ;;  %652 = vmatmul.mubr.f32.vlgmr.msra.gmra.mrb[4].mxu0 %v511_v5  ;;  %723 = vmatmul.mubr.f32.vlgmr.msra.gmra.mrb[4].mxu1 %v511_v5 }
 0x22a   :  { %2284 = vmatpush1.bf16.msra.mxu1 %v2805_v25  ;;  %896 = vmatprep.mubr.f32.mxu0 %v2698_v3  ;;  %v768_v25 = vld [vmem:[%s3749_s1] sm:$0xff] }
 0x22b   :  { %2286 = vmatprep.subr.bf16.mxu1 %v2830_v33  ;;  %967 = vmatprep.mubr.f32.mxu1 %v2698_v3  ;;  %v772_v33 = vld [vmem:[%s3749_s1 + $0x20] sm:$0xff] }
 0x22e   :  { %2288 = vmatpush1.bf16.msra.mxu1 %v2841_v37  ;;  %v3160_v37 = vpack.c.bf16 %v772_v33, %v768_v25 }
 0x22f   :  { %2290 = vmatprep.subr.bf16.mxu1 %v2865_v45  ;;  %v777_v45 = vld [vmem:[%s3749_s1 + $0x48] sm:$0xff] }
 0x230   :  { %2252 = vmatpush1.bf16.msra.mxu0 %v3160_v37 }
 0x232   :  { %2292 = vmatpush1.bf16.msra.mxu1 %v2874_v48  ;;  %v781_v48 = vld [vmem:[%s3749_s1 + $0x68] sm:$0xff] }
 0x233   :  { %2294 = vmatprep.subr.bf16.mxu1 %v2886_v52  ;;  %v3169_v52 = vpack.c.bf16 %v781_v48, %v777_v45 }
 0x235   :  { %2254 = vmatprep.subr.bf16.mxu0 %v3169_v52 }
 0x236   :  { %2296 = vmatpush1.bf16.msra.mxu1 %v2916_v62  ;;  %v776_v62 = vld [vmem:[%s3749_s1 + $0x40] sm:$0xff] }
 0x237   :  { %2298 = vmatprep.subr.bf16.mxu1 %v2922_v0  ;;  %v780_v0 = vld [vmem:[%s3749_s1 + $0x60] sm:$0xff] }
 0x23a   :  { %2300 = vmatpush1.bf16.msra.mxu1 %v2952_v15  ;;  %v3177_v15 = vpack.c.bf16 %v780_v0, %v776_v62 }
 0x23b   :  { %2302 = vmatprep.subr.bf16.mxu1 %v2958_v18  ;;  %v785_v18 = vld [vmem:[%s3749_s1 + $0x88] sm:$0xff] }
 0x23c   :  { %2256 = vmatpush1.bf16.msra.mxu0 %v3177_v15 }
 0x23e   :  { %2304 = vmatpush1.bf16.msra.mxu1 %v2985_v31  ;;  %v789_v31 = vld [vmem:[%s3749_s1 + $0xa8] sm:$0xff] }
 0x23f   :  { %2306 = vmatprep.subr.bf16.mxu1 %v2988_v32  ;;  %v3187_v32 = vpack.c.bf16 %v789_v31, %v785_v18 }
 0x241   :  { %2258 = vmatprep.subr.bf16.mxu0 %v3187_v32 }
 0x242   :  { %2308 = vmatpush1.bf16.msra.mxu1 %v3007_v40  ;;  %v784_v40 = vld [vmem:[%s3749_s1 + $0x80] sm:$0xff] }
 0x243   :  { %2310 = vmatprep.subr.bf16.mxu1 %v3010_v41  ;;  %v788_v41 = vld [vmem:[%s3749_s1 + $0xa0] sm:$0xff] }
 0x246   :  { %2312 = vmatpush1.bf16.msra.mxu1 %v3023_v49  ;;  %v3195_v49 = vpack.c.bf16 %v788_v41, %v784_v40 }
 0x247   :  { %2346 = vmatprep.subr.bf16.mxu1 %v3330_v36 }
 0x248   :  { %2260 = vmatpush1.bf16.msra.mxu0 %v3195_v49 }
 0x249   :  { %2262 = vmatprep.subr.bf16.mxu0 %v3205_v12 }
 0x24c   :  { %2264 = vmatpush1.bf16.msra.mxu0 %v3213_v19 }
 0x24d   :  { %2266 = vmatprep.subr.bf16.mxu0 %v3223_v23 }
 0x250   :  { %2268 = vmatpush1.bf16.msra.mxu0 %v3231_v34 }
 0x251   :  { %2270 = vmatprep.subr.bf16.mxu0 %v3241_v38 }
 0x254   :  { %2272 = vmatpush1.bf16.msra.mxu0 %v3249_v47 }
 0x255   :  { %2274 = vmatprep.subr.bf16.mxu0 %v3259_v14 }
 0x258   :  { %2276 = vmatpush1.bf16.msra.mxu0 %v3267_v30 }
 0x259   :  { %2278 = vmatprep.subr.bf16.mxu0 %v3277_v55 }
 0x25c   :  { %2280 = vmatpush1.bf16.msra.mxu0 %v3285_v22 }
 0x2fc   :  { %v653_v24 = vpop.f32.mrb[4].mxu0  ;;  %v724_v27 = vpop.f32.mrb[4].mxu1 }
 0x2fd   :  { %v729_v39 = vadd.f32 %v2009_v7, %v653_v24  ;;  %v655_v50 = vpop.f32.mrb[5].mxu0  ;;  %v726_v51 = vpop.f32.mrb[5].mxu1  ;;  %v731_v1 = vadd.f32 %v2011_v60, %v724_v27  ;;  %v1031_v7 = vld [vmem:[%s3749_s1 + $0x90] sm:$0xff]  ;;  %v1040_v27 = vld [vmem:[%s3749_s1 + $0xd8] sm:$0xff] }
 0x2fe   :  { %v730_v53 = vadd.f32 %v2010_v10, %v655_v50  ;;  %v732_v59 = vadd.f32 %v2012_v57, %v726_v51  ;;  %v1035_v10 = vld [vmem:[%s3749_s1 + $0xb0] sm:$0xff]  ;;  %v1052_v57 = vld [vmem:[%s3749_s1 + $0x138] sm:$0xff] }
 0x2ff   :  { %v2013_v54 = vmul.f32 -1.442695, %v729_v39  ;;  %v3373_v24 = vpack.c.bf16 %v1035_v10, %v1031_v7  ;;  %v1044_v39 = vld [vmem:[%s3749_s1 + $0xf8] sm:$0xff]  ;;  %v1039_v51 = vld [vmem:[%s3749_s1 + $0xd0] sm:$0xff] }
 0x300   :  { %v2014_v56 = vmul.f32 -1.442695, %v730_v53  ;;  %v2015_v61 = vmul.f32 -1.442695, %v732_v59  ;;  %v3385_v50 = vpack.c.bf16 %v1044_v39, %v1040_v27  ;;  %v1043_v53 = vld [vmem:[%s3749_s1 + $0xf0] sm:$0xff]  ;;  %v2020_v27 = vld [vmem:[%s3751_s0 + $0x78] sm:$0xff] }
 0x301   :  { %2602 = vpow2.f32 %v2013_v54  ;;  %v3393_v54 = vpack.c.bf16 %v1043_v53, %v1039_v51  ;;  %v1047_v60 = vld [vmem:[%s3749_s1 + $0x110] sm:$0xff] }
 0x302   :  { %2604 = vpow2.f32 %v2014_v56  ;;  %v1048_v56 = vld [vmem:[%s3749_s1 + $0x118] sm:$0xff]  ;;  %v2019_v51 = vld [vmem:[%s3751_s0 + $0x70] sm:$0xff] }
 0x303   :  { %2606 = vpow2.f32 %v2015_v61  ;;  %v3405_v59 = vpack.c.bf16 %v1052_v57, %v1048_v56  ;;  %v1051_v61 = vld [vmem:[%s3749_s1 + $0x130] sm:$0xff] }
 0x304   :  { %2608 = vtanh.f32 %v731_v1  ;;  %v3413_v1 = vpack.c.bf16 %v1051_v61, %v1047_v60 }
 0x30b   :  { %v2603_v2 = vpop.eup %2602 }
 0x30c   :  { %v2605_v5 = vpop.eup %2604  ;;  %v736_v25 = vadd.f32 1.0, %v2603_v2  ;;  %v1056_v2 = vld [vmem:[%s3749_s1 + $0x158] sm:$0xff] }
 0x30d   :  { %v742_v33 = vadd.f32 1.0, %v2605_v5  ;;  %v2607_v45 = vpop.eup %2606  ;;  %v1060_v5 = vld [vmem:[%s3749_s1 + $0x178] sm:$0xff] }
 0x30e   :  { %2610 = vrcp.f32 %v736_v25  ;;  %v2609_v48 = vpop.eup %2608  ;;  %v749_v31 = vadd.f32 1.0, %v2607_v45  ;;  %v3425_v25 = vpack.c.bf16 %v1060_v5, %v1056_v2  ;;  %v1059_v45 = vld [vmem:[%s3749_s1 + $0x170] sm:$0xff] }
 0x30f   :  { %2612 = vrcp.f32 %v742_v33  ;;  %v1055_v33 = vld [vmem:[%s3749_s1 + $0x150] sm:$0xff] }
 0x310   :  { %2614 = vrcp.f32 %v749_v31  ;;  %v1063_v31 = vld [vmem:[%s3749_s1 + $0x190] sm:$0xff] }
 0x318   :  { %v2611_v62 = vpop.eup %2610 }
 0x319   :  { %v2613_v0 = vpop.eup %2612  ;;  %v753_v18 = vmul.f32 %v2611_v62, %v2609_v48  ;;  %v3433_v48 = vpack.c.bf16 %v1059_v45, %v1055_v33  ;;  %v1064_v62 = vld [vmem:[%s3749_s1 + $0x198] sm:$0xff] }
 0x31a   :  { %v752_v40 = vmul.f32 %v2613_v0, %v3131_v63  ;;  %v2615_v6 = vpop.eup %2614  ;;  %v1014_v63 = vld [vmem:[%s3749_s1 + $0x8] sm:$0xff]  ;;  %v1068_v0 = vld [vmem:[%s3749_s1 + $0x1b8] sm:$0xff] }
 0x31b   :  { %v3319_v21 = vpack.c.bf16 %v1018_v16, %v1014_v63  ;;  %v1071_v16 = vld [vmem:[%s3749_s1 + $0x1d0] sm:$0xff] }
 0x31c   :  { %v3302_v41 = vadd.f32 %v753_v18, %v752_v40  ;;  %v3445_v18 = vpack.c.bf16 %v1068_v0, %v1064_v62  ;;  %v1067_v40 = vld [vmem:[%s3749_s1 + $0x1b0] sm:$0xff]  ;;  %v3473_v28 = vpack.c.bf16 %v1075_v20, %v1071_v16 }
 0x31d   :  { %2314 = vmatprep.subr.bf16.mxu0 %v3319_v21 }
 0x31e   :  { %2616 = vtanh.f32 %v3302_v41 }
 0x328   :  { %v2617_v11 = vpop.eup %2616 }
 0x329   :  { %v756_v13 = vmul.f32 %v2617_v11, %v2615_v6  ;;  %v3453_v6 = vpack.c.bf16 %v1067_v40, %v1063_v31  ;;  %v1072_v11 = vld [vmem:[%s3749_s1 + $0x1d8] sm:$0xff] }
 0x32b   :  { %2016 = vst [vmem:[%s3753_s4 + $0x10] sm:$0xff] %v756_v13  ;;  %897 = vmatmul.mubr.f32.vlgmr.msra.gmra.mrb[6].mxu0 %v756_v13  ;;  %968 = vmatmul.mubr.f32.vlgmr.msra.gmra.mrb[6].mxu1 %v756_v13  ;;  %v1076_v13 = vld [vmem:[%s3749_s1 + $0x1f8] sm:$0xff] }
 0x32c   :  { %1141 = vmatprep.mubr.f32.mxu0 %v2698_v3  ;;  %1212 = vmatprep.mubr.f32.mxu1 %v2698_v3  ;;  %v3465_v63 = vpack.c.bf16 %v1076_v13, %v1072_v11 }
 0x32d   :  { %2316 = vmatpush1.bf16.msra.mxu0 %v3160_v37  ;;  %2348 = vmatpush1.bf16.msra.mxu1 %v3332_v43 }
 0x32e   :  { %2318 = vmatprep.subr.bf16.mxu0 %v3169_v52  ;;  %2350 = vmatprep.subr.bf16.mxu1 %v3345_v9 }
 0x331   :  { %2320 = vmatpush1.bf16.msra.mxu0 %v3177_v15  ;;  %2352 = vmatpush1.bf16.msra.mxu1 %v3353_v42 }
 0x332   :  { %2322 = vmatprep.subr.bf16.mxu0 %v3187_v32  ;;  %2354 = vmatprep.subr.bf16.mxu1 %v3365_v4 }
 0x335   :  { %2324 = vmatpush1.bf16.msra.mxu0 %v3195_v49  ;;  %2356 = vmatpush1.bf16.msra.mxu1 %v3373_v24 }
 0x336   :  { %2326 = vmatprep.subr.bf16.mxu0 %v3205_v12  ;;  %2358 = vmatprep.subr.bf16.mxu1 %v3385_v50 }
 0x339   :  { %2328 = vmatpush1.bf16.msra.mxu0 %v3213_v19  ;;  %2360 = vmatpush1.bf16.msra.mxu1 %v3393_v54 }
 0x33a   :  { %2330 = vmatprep.subr.bf16.mxu0 %v3223_v23  ;;  %2362 = vmatprep.subr.bf16.mxu1 %v3405_v59 }
 0x33d   :  { %2332 = vmatpush1.bf16.msra.mxu0 %v3231_v34  ;;  %2364 = vmatpush1.bf16.msra.mxu1 %v3413_v1 }
 0x33e   :  { %2334 = vmatprep.subr.bf16.mxu0 %v3241_v38  ;;  %2366 = vmatprep.subr.bf16.mxu1 %v3425_v25 }
 0x341   :  { %2336 = vmatpush1.bf16.msra.mxu0 %v3249_v47  ;;  %2368 = vmatpush1.bf16.msra.mxu1 %v3433_v48 }
 0x342   :  { %2338 = vmatprep.subr.bf16.mxu0 %v3259_v14  ;;  %2370 = vmatprep.subr.bf16.mxu1 %v3445_v18 }
 0x345   :  { %2340 = vmatpush1.bf16.msra.mxu0 %v3267_v30  ;;  %2372 = vmatpush1.bf16.msra.mxu1 %v3453_v6 }
 0x346   :  { %2342 = vmatprep.subr.bf16.mxu0 %v3277_v55  ;;  %2374 = vmatprep.subr.bf16.mxu1 %v3465_v63 }
 0x349   :  { %2344 = vmatpush1.bf16.msra.mxu0 %v3285_v22  ;;  %2376 = vmatpush1.bf16.msra.mxu1 %v3473_v28 }
 0x34a   :  { %2378 = vmatprep.subr.bf16.mxu0 %v3319_v21  ;;  %2410 = vmatprep.subr.bf16.mxu1 %v3330_v36 }
 0x3fe   :  { %v898_v44 = vpop.f32.mrb[6].mxu0  ;;  %v969_v8 = vpop.f32.mrb[6].mxu1 }
 0x3ff   :  { %v974_v17 = vadd.f32 %v2017_v29, %v898_v44  ;;  %v900_v26 = vpop.f32.mrb[7].mxu0  ;;  %v971_v46 = vpop.f32.mrb[7].mxu1  ;;  %v976_v56 = vadd.f32 %v2019_v51, %v969_v8  ;;  %v2026_v29 = vld [vmem:[%s3751_s0 + $0x88] sm:$0xff] }
 0x400   :  { %v975_v58 = vadd.f32 %v2018_v35, %v900_v26  ;;  %v977_v39 = vadd.f32 %v2020_v27, %v971_v46 }
 0x401   :  { %v2021_v7 = vmul.f32 -1.442695, %v974_v17 }
 0x402   :  { %v2022_v10 = vmul.f32 -1.442695, %v975_v58  ;;  %v2023_v53 = vmul.f32 -1.442695, %v977_v39  ;;  %v2027_v39 = vld [vmem:[%s3751_s0 + $0x90] sm:$0xff] }
 0x403   :  { %2618 = vpow2.f32 %v2021_v7 }
 0x404   :  { %2620 = vpow2.f32 %v2022_v10  ;;  %v2028_v10 = vld [vmem:[%s3751_s0 + $0x98] sm:$0xff] }
 0x405   :  { %2622 = vpow2.f32 %v2023_v53 }
 0x406   :  { %2624 = vtanh.f32 %v976_v56 }
 0x40d   :  { %v2619_v57 = vpop.eup %2618 }
 0x40e   :  { %v2621_v60 = vpop.eup %2620  ;;  %v981_v61 = vadd.f32 1.0, %v2619_v57 }
 0x40f   :  { %v987_v2 = vadd.f32 1.0, %v2621_v60  ;;  %v2623_v5 = vpop.eup %2622 }
 0x410   :  { %2626 = vrcp.f32 %v981_v61  ;;  %v2625_v33 = vpop.eup %2624  ;;  %v994_v31 = vadd.f32 1.0, %v2623_v5 }
 0x411   :  { %2628 = vrcp.f32 %v987_v2 }
 0x412   :  { %2630 = vrcp.f32 %v994_v31 }
 0x41a   :  { %v2627_v45 = vpop.eup %2626 }
 0x41b   :  { %v2629_v62 = vpop.eup %2628  ;;  %v998_v0 = vmul.f32 %v2627_v45, %v2625_v33 }
 0x41c   :  { %v997_v40 = vmul.f32 %v2629_v62, %v3302_v41  ;;  %v2631_v13 = vpop.eup %2630  ;;  %v2025_v41 = vld [vmem:[%s3751_s0 + $0x80] sm:$0xff] }
 0x41e   :  { %v3493_v11 = vadd.f32 %v998_v0, %v997_v40 }
 0x420   :  { %2632 = vtanh.f32 %v3493_v11 }
 0x42a   :  { %v2633_v16 = vpop.eup %2632 }
 0x42b   :  { %v1001_v20 = vmul.f32 %v2633_v16, %v2631_v13 }
 0x42d   :  { %2024 = vst [vmem:[%s3753_s4 + $0x18] sm:$0xff] %v1001_v20  ;;  %1142 = vmatmul.mubr.f32.vlgmr.msra.gmra.mrb[8].mxu0 %v1001_v20  ;;  %1213 = vmatmul.mubr.f32.vlgmr.msra.gmra.mrb[8].mxu1 %v1001_v20 }
 0x42e   :  { %2380 = vmatpush1.bf16.msra.mxu0 %v3160_v37  ;;  %2412 = vmatpush1.bf16.msra.mxu1 %v3332_v43 }
 0x42f   :  { %2382 = vmatprep.subr.bf16.mxu0 %v3169_v52  ;;  %2414 = vmatprep.subr.bf16.mxu1 %v3345_v9 }
 0x430   :  { %1386 = vmatprep.mubr.f32.mxu0 %v2698_v3  ;;  %1457 = vmatprep.mubr.f32.mxu1 %v2698_v3 }
 0x432   :  { %2384 = vmatpush1.bf16.msra.mxu0 %v3177_v15  ;;  %2416 = vmatpush1.bf16.msra.mxu1 %v3353_v42 }
 0x433   :  { %2386 = vmatprep.subr.bf16.mxu0 %v3187_v32  ;;  %2418 = vmatprep.subr.bf16.mxu1 %v3365_v4 }
 0x436   :  { %2388 = vmatpush1.bf16.msra.mxu0 %v3195_v49  ;;  %2420 = vmatpush1.bf16.msra.mxu1 %v3373_v24 }
 0x437   :  { %2390 = vmatprep.subr.bf16.mxu0 %v3205_v12  ;;  %2422 = vmatprep.subr.bf16.mxu1 %v3385_v50 }
 0x43a   :  { %2392 = vmatpush1.bf16.msra.mxu0 %v3213_v19  ;;  %2424 = vmatpush1.bf16.msra.mxu1 %v3393_v54 }
 0x43b   :  { %2394 = vmatprep.subr.bf16.mxu0 %v3223_v23  ;;  %2426 = vmatprep.subr.bf16.mxu1 %v3405_v59 }
 0x43e   :  { %2396 = vmatpush1.bf16.msra.mxu0 %v3231_v34  ;;  %2428 = vmatpush1.bf16.msra.mxu1 %v3413_v1 }
 0x43f   :  { %2398 = vmatprep.subr.bf16.mxu0 %v3241_v38  ;;  %2430 = vmatprep.subr.bf16.mxu1 %v3425_v25 }
 0x442   :  { %2400 = vmatpush1.bf16.msra.mxu0 %v3249_v47  ;;  %2432 = vmatpush1.bf16.msra.mxu1 %v3433_v48 }
 0x443   :  { %2402 = vmatprep.subr.bf16.mxu0 %v3259_v14  ;;  %2434 = vmatprep.subr.bf16.mxu1 %v3445_v18 }
 0x446   :  { %2404 = vmatpush1.bf16.msra.mxu0 %v3267_v30  ;;  %2436 = vmatpush1.bf16.msra.mxu1 %v3453_v6 }
 0x447   :  { %2406 = vmatprep.subr.bf16.mxu0 %v3277_v55  ;;  %2438 = vmatprep.subr.bf16.mxu1 %v3465_v63 }
 0x44a   :  { %2408 = vmatpush1.bf16.msra.mxu0 %v3285_v22  ;;  %2440 = vmatpush1.bf16.msra.mxu1 %v3473_v28 }
 0x44b   :  { %2442 = vmatprep.subr.bf16.mxu0 %v3319_v21  ;;  %2474 = vmatprep.subr.bf16.mxu1 %v3330_v36 }
 0x500   :  { %v1143_v35 = vpop.f32.mrb[8].mxu0  ;;  %v1214_v44 = vpop.f32.mrb[8].mxu1 }
 0x501   :  { %v1219_v8 = vadd.f32 %v2025_v41, %v1143_v35  ;;  %v1145_v17 = vpop.f32.mrb[9].mxu0  ;;  %v1216_v26 = vpop.f32.mrb[9].mxu1  ;;  %v1221_v53 = vadd.f32 %v2027_v39, %v1214_v44  ;;  %v1777_v39 = vld [vmem:[%s3749_s1 + $0xe8] sm:$0xff] }
 0x502   :  { %v1220_v46 = vadd.f32 %v2026_v29, %v1145_v17  ;;  %v1222_v27 = vadd.f32 %v2028_v10, %v1216_v26 }
 0x503   :  { %v2029_v58 = vmul.f32 -1.442695, %v1219_v8 }
 0x504   :  { %v2030_v7 = vmul.f32 -1.442695, %v1220_v46  ;;  %v2031_v51 = vmul.f32 -1.442695, %v1222_v27 }
 0x505   :  { %2634 = vpow2.f32 %v2029_v58 }
 0x506   :  { %2636 = vpow2.f32 %v2030_v7 }
 0x507   :  { %2638 = vpow2.f32 %v2031_v51 }
 0x508   :  { %2640 = vtanh.f32 %v1221_v53  ;;  %v1772_v53 = vld [vmem:[%s3749_s1 + $0xc0] sm:$0xff] }
 0x50f   :  { %v2635_v56 = vpop.eup %2634 }
 0x510   :  { %v2637_v57 = vpop.eup %2636  ;;  %v1226_v60 = vadd.f32 1.0, %v2635_v56  ;;  %v1776_v56 = vld [vmem:[%s3749_s1 + $0xe0] sm:$0xff] }
 0x511   :  { %v1232_v61 = vadd.f32 1.0, %v2637_v57  ;;  %v2639_v2 = vpop.eup %2638  ;;  %v2519_v57 = vpack.c.bf16 %v1776_v56, %v1772_v53 }
 0x512   :  { %2642 = vrcp.f32 %v1226_v60  ;;  %v2641_v5 = vpop.eup %2640  ;;  %v1239_v0 = vadd.f32 1.0, %v2639_v2  ;;  %v1781_v60 = vld [vmem:[%s3749_s1 + $0x108] sm:$0xff] }
 0x513   :  { %2644 = vrcp.f32 %v1232_v61  ;;  %v1785_v61 = vld [vmem:[%s3749_s1 + $0x128] sm:$0xff] }
 0x514   :  { %2646 = vrcp.f32 %v1239_v0  ;;  %v2521_v2 = vpack.c.bf16 %v1785_v61, %v1781_v60  ;;  %v1793_v0 = vld [vmem:[%s3749_s1 + $0x168] sm:$0xff]  ;;  %v2052_v60 = vld [vmem:[%s3751_s0 + $0xf8] sm:$0xff] }
 0x51c   :  { %v2643_v33 = vpop.eup %2642 }
 0x51d   :  { %v2645_v45 = vpop.eup %2644  ;;  %v1243_v62 = vmul.f32 %v2643_v33, %v2641_v5  ;;  %v1780_v5 = vld [vmem:[%s3749_s1 + $0x100] sm:$0xff] }
 0x51e   :  { %v1242_v31 = vmul.f32 %v2645_v45, %v3493_v11  ;;  %v2647_v13 = vpop.eup %2646  ;;  %v1784_v33 = vld [vmem:[%s3749_s1 + $0x120] sm:$0xff] }
 0x51f   :  { %v2523_v45 = vpack.c.bf16 %v1784_v33, %v1780_v5 }
 0x520   :  { %v3546_v40 = vadd.f32 %v1243_v62, %v1242_v31  ;;  %v1789_v62 = vld [vmem:[%s3749_s1 + $0x148] sm:$0xff] }
 0x521   :  { %v2525_v31 = vpack.c.bf16 %v1793_v0, %v1789_v62 }
 0x522   :  { %2648 = vtanh.f32 %v3546_v40 }
 0x52c   :  { %v2649_v16 = vpop.eup %2648 }
 0x52d   :  { %v1246_v20 = vmul.f32 %v2649_v16, %v2647_v13  ;;  %v1792_v13 = vld [vmem:[%s3749_s1 + $0x160] sm:$0xff] }
 0x52f   :  { %2032 = vst [vmem:[%s3753_s4 + $0x20] sm:$0xff] %v1246_v20  ;;  %1387 = vmatmul.mubr.f32.vlgmr.msra.gmra.mrb[10].mxu0 %v1246_v20  ;;  %1458 = vmatmul.mubr.f32.vlgmr.msra.gmra.mrb[10].mxu1 %v1246_v20  ;;  %v1797_v20 = vld [vmem:[%s3749_s1 + $0x188] sm:$0xff] }
 0x530   :  { %2444 = vmatpush1.bf16.msra.mxu0 %v3160_v37  ;;  %2476 = vmatpush1.bf16.msra.mxu1 %v3332_v43  ;;  %v2033_v37 = vld [vmem:[%s3751_s0 + $0xa0] sm:$0xff] }
 0x531   :  { %2446 = vmatprep.subr.bf16.mxu0 %v3169_v52  ;;  %2478 = vmatprep.subr.bf16.mxu1 %v3345_v9  ;;  %v2034_v52 = vld [vmem:[%s3751_s0 + $0xa8] sm:$0xff] }
 0x532   :  { %1631 = vmatprep.mubr.f32.mxu0 %v2698_v3  ;;  %1702 = vmatprep.mubr.f32.mxu1 %v2698_v3 }
 0x534   :  { %2448 = vmatpush1.bf16.msra.mxu0 %v3177_v15  ;;  %2480 = vmatpush1.bf16.msra.mxu1 %v3353_v42 }
 0x535   :  { %2450 = vmatprep.subr.bf16.mxu0 %v3187_v32  ;;  %2482 = vmatprep.subr.bf16.mxu1 %v3365_v4 }
 0x538   :  { %2452 = vmatpush1.bf16.msra.mxu0 %v3195_v49  ;;  %2484 = vmatpush1.bf16.msra.mxu1 %v3373_v24 }
 0x539   :  { %2454 = vmatprep.subr.bf16.mxu0 %v3205_v12  ;;  %2486 = vmatprep.subr.bf16.mxu1 %v3385_v50 }
 0x53c   :  { %2456 = vmatpush1.bf16.msra.mxu0 %v3213_v19  ;;  %2488 = vmatpush1.bf16.msra.mxu1 %v3393_v54 }
 0x53d   :  { %2458 = vmatprep.subr.bf16.mxu0 %v3223_v23  ;;  %2490 = vmatprep.subr.bf16.mxu1 %v3405_v59 }
 0x540   :  { %2460 = vmatpush1.bf16.msra.mxu0 %v3231_v34  ;;  %2492 = vmatpush1.bf16.msra.mxu1 %v3413_v1 }
 0x541   :  { %2462 = vmatprep.subr.bf16.mxu0 %v3241_v38  ;;  %2494 = vmatprep.subr.bf16.mxu1 %v3425_v25 }
 0x544   :  { %2464 = vmatpush1.bf16.msra.mxu0 %v3249_v47  ;;  %2496 = vmatpush1.bf16.msra.mxu1 %v3433_v48  ;;  %v2036_v47 = vld [vmem:[%s3751_s0 + $0xb8] sm:$0xff] }
 0x545   :  { %2466 = vmatprep.subr.bf16.mxu0 %v3259_v14  ;;  %2498 = vmatprep.subr.bf16.mxu1 %v3445_v18 }
 0x548   :  { %2468 = vmatpush1.bf16.msra.mxu0 %v3267_v30  ;;  %2500 = vmatpush1.bf16.msra.mxu1 %v3453_v6  ;;  %v2035_v30 = vld [vmem:[%s3751_s0 + $0xb0] sm:$0xff] }
 0x549   :  { %2470 = vmatprep.subr.bf16.mxu0 %v3277_v55  ;;  %2502 = vmatprep.subr.bf16.mxu1 %v3465_v63 }
 0x54c   :  { %2472 = vmatpush1.bf16.msra.mxu0 %v3285_v22  ;;  %2504 = vmatpush1.bf16.msra.mxu1 %v3473_v28 }
 0x54d   :  { %2506 = vmatprep.subr.bf16.mxu0 %v3319_v21  ;;  %2538 = vmatprep.subr.bf16.mxu1 %v3330_v36 }
 0x602   :  { %v1388_v15 = vpop.f32.mrb[10].mxu0  ;;  %v1459_v32 = vpop.f32.mrb[10].mxu1 }
 0x603   :  { %v1464_v49 = vadd.f32 %v2033_v37, %v1388_v15  ;;  %v1390_v12 = vpop.f32.mrb[11].mxu0  ;;  %v1461_v19 = vpop.f32.mrb[11].mxu1  ;;  %v1466_v22 = vadd.f32 %v2035_v30, %v1459_v32  ;;  %v1801_v37 = vld [vmem:[%s3749_s1 + $0x1a8] sm:$0xff]  ;;  %v1796_v15 = vld [vmem:[%s3749_s1 + $0x180] sm:$0xff] }
 0x604   :  { %v1465_v23 = vadd.f32 %v2034_v52, %v1390_v12  ;;  %v1467_v14 = vadd.f32 %v2036_v47, %v1461_v19  ;;  %v2529_v52 = vpack.c.bf16 %v1801_v37, %v1797_v20  ;;  %v1800_v32 = vld [vmem:[%s3749_s1 + $0x1a0] sm:$0xff]  ;;  %v1805_v12 = vld [vmem:[%s3749_s1 + $0x1c8] sm:$0xff] }
 0x605   :  { %v2037_v34 = vmul.f32 -1.442695, %v1464_v49  ;;  %v2531_v49 = vpack.c.bf16 %v1800_v32, %v1796_v15  ;;  %v1809_v19 = vld [vmem:[%s3749_s1 + $0x1e8] sm:$0xff] }
 0x606   :  { %v2038_v38 = vmul.f32 -1.442695, %v1465_v23  ;;  %v2039_v55 = vmul.f32 -1.442695, %v1467_v14  ;;  %v2533_v23 = vpack.c.bf16 %v1809_v19, %v1805_v12  ;;  %v2041_v14 = vld [vmem:[%s3751_s0 + $0xc0] sm:$0xff]  ;;  %v2042_v30 = vld [vmem:[%s3751_s0 + $0xc8] sm:$0xff] }
 0x607   :  { %2650 = vpow2.f32 %v2037_v34  ;;  %v1804_v34 = vld [vmem:[%s3749_s1 + $0x1c0] sm:$0xff] }
 0x608   :  { %2652 = vpow2.f32 %v2038_v38  ;;  %v1808_v38 = vld [vmem:[%s3749_s1 + $0x1e0] sm:$0xff] }
 0x609   :  { %2654 = vpow2.f32 %v2039_v55  ;;  %v2535_v47 = vpack.c.bf16 %v1808_v38, %v1804_v34 }
 0x60a   :  { %2656 = vtanh.f32 %v1466_v22 }
 0x611   :  { %v2651_v21 = vpop.eup %2650 }
 0x612   :  { %v2653_v36 = vpop.eup %2652  ;;  %v1471_v11 = vadd.f32 1.0, %v2651_v21 }
 0x613   :  { %v1477_v41 = vadd.f32 1.0, %v2653_v36  ;;  %v2655_v29 = vpop.eup %2654 }
 0x614   :  { %2658 = vrcp.f32 %v1471_v11  ;;  %v2657_v35 = vpop.eup %2656  ;;  %v1484_v26 = vadd.f32 1.0, %v2655_v29 }
 0x615   :  { %2660 = vrcp.f32 %v1477_v41 }
 0x616   :  { %2662 = vrcp.f32 %v1484_v26 }
 0x61e   :  { %v2659_v44 = vpop.eup %2658 }
 0x61f   :  { %v2661_v8 = vpop.eup %2660  ;;  %v1488_v17 = vmul.f32 %v2659_v44, %v2657_v35  ;;  %v2044_v44 = vld [vmem:[%s3751_s0 + $0xd8] sm:$0xff] }
 0x620   :  { %v1487_v46 = vmul.f32 %v2661_v8, %v3546_v40  ;;  %v2663_v7 = vpop.eup %2662  ;;  %v1788_v40 = vld [vmem:[%s3749_s1 + $0x140] sm:$0xff] }
 0x621   :  { %v2527_v16 = vpack.c.bf16 %v1792_v13, %v1788_v40 }
 0x622   :  { %v3599_v58 = vadd.f32 %v1488_v17, %v1487_v46  ;;  %v2043_v17 = vld [vmem:[%s3751_s0 + $0xd0] sm:$0xff] }
 0x624   :  { %2664 = vtanh.f32 %v3599_v58 }
 0x62e   :  { %v2665_v10 = vpop.eup %2664 }
 0x62f   :  { %v1491_v27 = vmul.f32 %v2665_v10, %v2663_v7 }
 0x631   :  { %2040 = vst [vmem:[%s3753_s4 + $0x28] sm:$0xff] %v1491_v27  ;;  %1632 = vmatmul.mubr.f32.vlgmr.msra.gmra.mrb[12].mxu0 %v1491_v27  ;;  %1703 = vmatmul.mubr.f32.vlgmr.msra.gmra.mrb[12].mxu1 %v1491_v27 }
 0x632   :  { %2540 = vmatpush1.bf16.msra.mxu1 %v3332_v43  ;;  %1876 = vmatprep.mubr.f32.mxu0 %v2698_v3  ;;  %v1752_v43 = vld [vmem:[%s3749_s1 + $0x20] sm:$0xff] }
 0x633   :  { %2542 = vmatprep.subr.bf16.mxu1 %v3345_v9  ;;  %1947 = vmatprep.mubr.f32.mxu1 %v2698_v3  ;;  %v1748_v3 = vld [vmem:[%s3749_s1] sm:$0xff] }
 0x634   :  { %v2507_v9 = vpack.c.bf16 %v1752_v43, %v1748_v3 }
 0x636   :  { %2544 = vmatpush1.bf16.msra.mxu1 %v3353_v42  ;;  %2508 = vmatpush1.bf16.msra.mxu0 %v2507_v9  ;;  %v1757_v42 = vld [vmem:[%s3749_s1 + $0x48] sm:$0xff] }
 0x637   :  { %2546 = vmatprep.subr.bf16.mxu1 %v3365_v4  ;;  %v1761_v4 = vld [vmem:[%s3749_s1 + $0x68] sm:$0xff] }
 0x63a   :  { %2548 = vmatpush1.bf16.msra.mxu1 %v3373_v24  ;;  %v2509_v24 = vpack.c.bf16 %v1761_v4, %v1757_v42 }
 0x63b   :  { %2550 = vmatprep.subr.bf16.mxu1 %v3385_v50  ;;  %v1756_v50 = vld [vmem:[%s3749_s1 + $0x40] sm:$0xff] }
 0x63c   :  { %2510 = vmatprep.subr.bf16.mxu0 %v2509_v24 }
 0x63e   :  { %2552 = vmatpush1.bf16.msra.mxu1 %v3393_v54  ;;  %v1760_v54 = vld [vmem:[%s3749_s1 + $0x60] sm:$0xff] }
 0x63f   :  { %2554 = vmatprep.subr.bf16.mxu1 %v3405_v59  ;;  %v2511_v59 = vpack.c.bf16 %v1760_v54, %v1756_v50 }
 0x641   :  { %2512 = vmatpush1.bf16.msra.mxu0 %v2511_v59 }
 0x642   :  { %2556 = vmatpush1.bf16.msra.mxu1 %v3413_v1  ;;  %v1765_v1 = vld [vmem:[%s3749_s1 + $0x88] sm:$0xff] }
 0x643   :  { %2558 = vmatprep.subr.bf16.mxu1 %v3425_v25  ;;  %v1769_v25 = vld [vmem:[%s3749_s1 + $0xa8] sm:$0xff] }
 0x646   :  { %2560 = vmatpush1.bf16.msra.mxu1 %v3433_v48  ;;  %v2513_v48 = vpack.c.bf16 %v1769_v25, %v1765_v1 }
 0x647   :  { %2562 = vmatprep.subr.bf16.mxu1 %v3445_v18  ;;  %v1764_v18 = vld [vmem:[%s3749_s1 + $0x80] sm:$0xff] }
 0x648   :  { %2514 = vmatprep.subr.bf16.mxu0 %v2513_v48 }
 0x64a   :  { %2564 = vmatpush1.bf16.msra.mxu1 %v3453_v6  ;;  %v1768_v6 = vld [vmem:[%s3749_s1 + $0xa0] sm:$0xff] }
 0x64b   :  { %2566 = vmatprep.subr.bf16.mxu1 %v3465_v63  ;;  %v2515_v63 = vpack.c.bf16 %v1768_v6, %v1764_v18  ;;  %v2049_v18 = vld [vmem:[%s3751_s0 + $0xe0] sm:$0xff] }
 0x64d   :  { %2516 = vmatpush1.bf16.msra.mxu0 %v2515_v63 }
 0x64e   :  { %2568 = vmatpush1.bf16.msra.mxu1 %v3473_v28  ;;  %v1773_v28 = vld [vmem:[%s3749_s1 + $0xc8] sm:$0xff] }
 0x64f   :  { %v2517_v51 = vpack.c.bf16 %v1777_v39, %v1773_v28 }
 0x651   :  { %2518 = vmatprep.subr.bf16.mxu0 %v2517_v51 }
 0x652   :  { %2520 = vmatpush1.bf16.msra.mxu0 %v2519_v57 }
 0x653   :  { %2522 = vmatprep.subr.bf16.mxu0 %v2521_v2  ;;  %v2051_v2 = vld [vmem:[%s3751_s0 + $0xf0] sm:$0xff] }
 0x656   :  { %2524 = vmatpush1.bf16.msra.mxu0 %v2523_v45 }
 0x657   :  { %2526 = vmatprep.subr.bf16.mxu0 %v2525_v31 }
 0x65a   :  { %2528 = vmatpush1.bf16.msra.mxu0 %v2527_v16 }
 0x65b   :  { %2530 = vmatprep.subr.bf16.mxu0 %v2529_v52 }
 0x65e   :  { %2532 = vmatpush1.bf16.msra.mxu0 %v2531_v49 }
 0x65f   :  { %2534 = vmatprep.subr.bf16.mxu0 %v2533_v23 }
 0x662   :  { %2536 = vmatpush1.bf16.msra.mxu0 %v2535_v47 }
 0x704   :  { %v1633_v55 = vpop.f32.mrb[12].mxu0  ;;  %v1704_v22 = vpop.f32.mrb[12].mxu1 }
 0x705   :  { %v1709_v21 = vadd.f32 %v2041_v14, %v1633_v55  ;;  %v1635_v36 = vpop.f32.mrb[13].mxu0  ;;  %v1706_v11 = vpop.f32.mrb[13].mxu1  ;;  %v1711_v46 = vadd.f32 %v2043_v17, %v1704_v22 }
 0x706   :  { %v1710_v41 = vadd.f32 %v2042_v30, %v1635_v36  ;;  %v1712_v8 = vadd.f32 %v2044_v44, %v1706_v11 }
 0x707   :  { %v2045_v29 = vmul.f32 -1.442695, %v1709_v21 }
 0x708   :  { %v2046_v35 = vmul.f32 -1.442695, %v1710_v41  ;;  %v2047_v26 = vmul.f32 -1.442695, %v1712_v8 }
 0x709   :  { %2666 = vpow2.f32 %v2045_v29 }
 0x70a   :  { %2668 = vpow2.f32 %v2046_v35 }
 0x70b   :  { %2670 = vpow2.f32 %v2047_v26 }
 0x70c   :  { %2672 = vtanh.f32 %v1711_v46 }
 0x713   :  { %v2667_v7 = vpop.eup %2666 }
 0x714   :  { %v2669_v10 = vpop.eup %2668  ;;  %v1716_v27 = vadd.f32 1.0, %v2667_v7 }
 0x715   :  { %v1722_v3 = vadd.f32 1.0, %v2669_v10  ;;  %v2671_v43 = vpop.eup %2670 }
 0x716   :  { %2674 = vrcp.f32 %v1716_v27  ;;  %v2673_v9 = vpop.eup %2672  ;;  %v1729_v50 = vadd.f32 1.0, %v2671_v43 }
 0x717   :  { %2676 = vrcp.f32 %v1722_v3 }
 0x718   :  { %2678 = vrcp.f32 %v1729_v50 }
 0x720   :  { %v2675_v42 = vpop.eup %2674 }
 0x721   :  { %v2677_v4 = vpop.eup %2676  ;;  %v1733_v24 = vmul.f32 %v2675_v42, %v2673_v9 }
 0x722   :  { %v1732_v54 = vmul.f32 %v2677_v4, %v3599_v58  ;;  %v2679_v1 = vpop.eup %2678  ;;  %v2050_v58 = vld [vmem:[%s3751_s0 + $0xe8] sm:$0xff] }
 0x724   :  { %v1734_v59 = vadd.f32 %v1733_v24, %v1732_v54 }
 0x726   :  { %2680 = vtanh.f32 %v1734_v59 }
 0x730   :  { %v2681_v25 = vpop.eup %2680 }
 0x731   :  { %v1736_v48 = vmul.f32 %v2681_v25, %v2679_v1 }
 0x733   :  { %2048 = vst [vmem:[%s3753_s4 + $0x30] sm:$0xff] %v1736_v48  ;;  %1877 = vmatmul.mubr.f32.vlgmr.msra.gmra.mrb[14].mxu0 %v1736_v48  ;;  %1948 = vmatmul.mubr.f32.vlgmr.msra.gmra.mrb[14].mxu1 %v1736_v48 }
 0x806   :  { %v1878_v6 = vpop.f32.mrb[14].mxu0  ;;  %v1949_v63 = vpop.f32.mrb[14].mxu1 }
 0x807   :  { %v1954_v28 = vadd.f32 %v2049_v18, %v1878_v6  ;;  %v1880_v39 = vpop.f32.mrb[15].mxu0  ;;  %v1951_v51 = vpop.f32.mrb[15].mxu1  ;;  %v1956_v33 = vadd.f32 %v2051_v2, %v1949_v63 }
 0x808   :  { %v1955_v53 = vadd.f32 %v2050_v58, %v1880_v39  ;;  %v1957_v61 = vadd.f32 %v2052_v60, %v1951_v51 }
 0x809   :  { %v2053_v56 = vmul.f32 -1.442695, %v1954_v28 }
 0x80a   :  { %v2054_v57 = vmul.f32 -1.442695, %v1955_v53  ;;  %v2055_v5 = vmul.f32 -1.442695, %v1957_v61 }
 0x80b   :  { %2682 = vpow2.f32 %v2053_v56 }
 0x80c   :  { %2684 = vpow2.f32 %v2054_v57 }
 0x80d   :  { %2686 = vpow2.f32 %v2055_v5 }
 0x80e   :  { %2688 = vtanh.f32 %v1956_v33 }
 0x815   :  { %v2683_v45 = vpop.eup %2682 }
 0x816   :  { %v2685_v62 = vpop.eup %2684  ;;  %v1961_v0 = vadd.f32 1.0, %v2683_v45 }
 0x817   :  { %v1967_v31 = vadd.f32 1.0, %v2685_v62  ;;  %v2687_v40 = vpop.eup %2686 }
 0x818   :  { %2690 = vrcp.f32 %v1961_v0  ;;  %v2689_v13 = vpop.eup %2688  ;;  %v1974_v52 = vadd.f32 1.0, %v2687_v40 }
 0x819   :  { %2692 = vrcp.f32 %v1967_v31 }
 0x81a   :  { %2694 = vrcp.f32 %v1974_v52 }
 0x822   :  { %v2691_v16 = vpop.eup %2690 }
 0x823   :  { %v2693_v20 = vpop.eup %2692  ;;  %v1978_v37 = vmul.f32 %v2691_v16, %v2689_v13 }
 0x824   :  { %v1977_v15 = vmul.f32 %v2693_v20, %v1734_v59  ;;  %v2695_v49 = vpop.eup %2694 }
 0x826   :  { %v1979_v32 = vadd.f32 %v1978_v37, %v1977_v15 }
 0x828   :  { %2696 = vtanh.f32 %v1979_v32  ;;  %1983 = vst [vmem:[%s3754_s6] sm:$0xff] %v1979_v32 }
 0x832   :  { %v2697_v12 = vpop.eup %2696 }
 0x833   :  { %v1981_v19 = vmul.f32 %v2697_v12, %v2695_v49 }
 0x835   :  { %1982 = vst [vmem:[%s3755_s5] sm:$0xff] %v1981_v19  ;;  %2056 = vst [vmem:[%s3753_s4 + $0x38] sm:$0xff] %v1981_v19 }

</bundles_post_ra>
